<compile_context>
chip_gen: v6e
topology: v6e:2x2x1
jax: 0.10.0
libtpu: 0.0.40
codegen_flags: <defaults>
</compile_context>

<pallas_src>
import functools

import jax
import jax.numpy as jnp
from jax.experimental import pallas as pl
from jax.experimental.pallas import tpu as pltpu


def _round_up(x, m):
    return (x + m - 1) // m * m


# ------------------------------- fused kernel --------------------------------


def _osa_fused_kernel(n_layers, H, W, head,
                      x_ref, w0_ref, wr_ref, b_ref, wp_ref, bp_ref,
                      o_ref, *bufs):
    """One grid step == one batch element; everything stays in VMEM.

    Layout ("CHW-flat"): an image Y (H, W) with channels C is stored as a (C, LBUF)
    buffer where Y[h, w] lives at lane  head + h*RS + w  (RS = W + 2).  The two spare
    lanes per row, the `head` prologue and a small tail are zero, so every 3x3 tap of a
    "same"-padded conv is just the contiguous lane window
        buf[:, head + (dy-1)*RS + (dx-1) : ... + H*RS].
    Garbage columns (lane position within a row >= W) are masked to zero before being
    stored, which simultaneously re-establishes the per-row zero padding of the next buffer.

    Args after the constants:
      x_ref  : (C_in, LBUF)      pre-padded block input (segment 0 of the concat)
      w0_ref : (3, 3, cmid, C_in)     layer-1 weight, per-tap (out, in), BN scale folded
      wr_ref : (n-1, 3, 3, cmid, cmid) layers 2..n stacked, same layout
      b_ref  : (cmid, n)          per-layer folded biases (f32)
      wp_ref : (cout, C_tot)      1x1 projection weight (BN folded), concat order [x, y1..yn]
      bp_ref : (cout, 1)          projection bias (f32)
      o_ref  : (cout, H*RS)       lane-dense output block (wrapper strips the 2 pad cols/row)
      bufs   : n VMEM scratch buffers (cmid, LBUF), one per conv output
    """
    RS = W + 2
    LQ = H * RS
    cmid = bufs[0].shape[0]
    cout = o_ref.shape[0]

    # (review #2) zero only the small never-written border windows, every step.
    for buf in bufs:
        buf[:, head - RS - 1:head] = jnp.zeros((cmid, RS + 1), buf.dtype)
        buf[:, head + LQ:head + LQ + W + 1] = jnp.zeros((cmid, W + 1), buf.dtype)

    # Lane-position validity mask (column-within-row < W), hoisted and reused by all layers.
    # Integer iota + f32 reciprocal-multiply + truncating cast == floor division by RS.
    col_i = jax.lax.broadcasted_iota(jnp.int32, (1, LQ), 1)
    row_i = (col_i.astype(jnp.float32) * (1.0 / RS) + 1e-4).astype(jnp.int32)
    valid = (col_i - row_i * RS) < W                       # (1, LQ) bool

    sources = [x_ref] + list(bufs)                         # concat segments [x, y1..yn]

    # n_layers x (3x3 conv + folded-BN bias + ReLU), all VMEM resident.
    for i in range(n_layers):
        src = sources[i]
        acc = jnp.zeros((cmid, LQ), jnp.float32)
        # 9 contiguous lane-window tap reads, one uninterrupted MXU accumulation chain.
        for dy in range(3):
            for dx in range(3):
                start = head + (dy - 1) * RS + (dx - 1)
                patch = src[:, start:start + LQ]                       # (c_in, LQ) ref window
                w_tap = w0_ref[dy, dx] if i == 0 else wr_ref[i - 1, dy, dx]
                acc = acc + jnp.dot(w_tap, patch,
                                    preferred_element_type=jnp.float32)
        # f32 epilogue; masking garbage columns also rewrites the row padding with zeros.
        y = jnp.where(valid, jnp.maximum(acc + b_ref[:, i:i + 1], 0.0), 0.0)
        bufs[i][:, head:head + LQ] = y.astype(bufs[i].dtype)           # aligned interior store

    # 1x1 projection over the (virtual) channel concat [x, y_1, ..., y_n].
    z = jnp.zeros((cout, LQ), jnp.float32)
    off = 0
    for s in range(n_layers + 1):
        src = sources[s]
        c_s = src.shape[0]
        seg = src[:, head:head + LQ]                                   # (c_s, LQ)
        z = z + jnp.dot(wp_ref[:, off:off + c_s], seg,
                        preferred_element_type=jnp.float32)
        off += c_s
    z = jnp.maximum(z + bp_ref[...], 0.0)
    o_ref[...] = z.astype(o_ref.dtype)


# --------------------------------- wrapper -----------------------------------


def _pick_vmem_limit():
    """(review #12) per-generation scoped-VMEM limit with safe fallback."""
    try:
        cap = pltpu.get_tpu_info().vmem_capacity_bytes
    except Exception:
        return None
    return min(int(cap * 3 // 4), 110 * 1024 * 1024)


@functools.partial(jax.jit, static_argnames=("compute_dtype",))
def osa_forward_nchw(x_nchw, params, *, compute_dtype=jnp.float32):
    N, cin, H, W = x_nchw.shape
    convs = params["convs"]
    n_layers = len(convs)
    assert n_layers >= 2
    cmid = convs[0]["w"].shape[-1]
    proj = params["project"]
    cout = proj["w"].shape[-1]

    RS = W + 2                                  # row stride in the flat lane layout
    HEAD = _round_up(RS + 1, 128)               # zero prologue (top halo); keeps stores aligned
    LQ = H * RS                                 # extended (row-padded) output length
    LBUF = _round_up(HEAD + LQ + RS + 1, 128)   # buffer length incl. tail slack

    # NCHW -> CHW-flat padded layout (pure pads + reshapes, no transpose).
    xf = jnp.pad(x_nchw, ((0, 0), (0, 0), (0, 0), (0, RS - W))).reshape(N, cin, LQ)
    xf = jnp.pad(xf, ((0, 0), (0, 0), (HEAD, LBUF - HEAD - LQ))).astype(compute_dtype)

    # Conv weights (BN scale folded at init): HWIO -> per-tap (out, in); layer-1 separate,
    # layers 2..n stacked into one array (review #8).  Biases stacked, kept f32.
    w0 = jnp.transpose(convs[0]["w"], (0, 1, 3, 2)).astype(compute_dtype)
    wr = jnp.stack([jnp.transpose(p["w"], (0, 1, 3, 2)) for p in convs[1:]]
                   ).astype(compute_dtype)
    b_all = jnp.stack([p["bias"] for p in convs], axis=1)              # (cmid, n) f32
    wp = proj["w"].T.astype(compute_dtype)                             # (cout, ctot)
    bp = proj["bias"].reshape(cout, 1)                                 # (cout, 1) f32

    kernel = functools.partial(_osa_fused_kernel, n_layers, H, W, HEAD)

    out = pl.pallas_call(
        kernel,
        out_shape=jax.ShapeDtypeStruct((N, cout, LQ), x_nchw.dtype),
        grid=(N,),
        in_specs=[
            pl.BlockSpec((None, cin, LBUF), lambda n: (n, 0, 0)),
            # Weights/biases use constant index_maps -> loaded to VMEM once, grid-resident.
            pl.BlockSpec(w0.shape, lambda n: (0, 0, 0, 0)),
            pl.BlockSpec(wr.shape, lambda n: (0, 0, 0, 0, 0)),
            pl.BlockSpec(b_all.shape, lambda n: (0, 0)),
            pl.BlockSpec(wp.shape, lambda n: (0, 0)),
            pl.BlockSpec(bp.shape, lambda n: (0, 0)),
        ],
        out_specs=pl.BlockSpec((None, cout, LQ), lambda n: (n, 0, 0)),
        scratch_shapes=[pltpu.VMEM((cmid, LBUF), compute_dtype)
                        for _ in range(n_layers)],
        compiler_params=pltpu.CompilerParams(
            dimension_semantics=("parallel",),
            vmem_limit_bytes=_pick_vmem_limit(),
        ),
    )(xf, w0, wr, b_all, wp, bp)

    # (N, cout, H, RS) -> strip the 2 spare lanes per row -> NCHW.
    return out.reshape(N, cout, H, RS)[:, :, :, :W]


# ----------------------------- parameter creation ----------------------------


def _fold_bn(gamma, beta, mean, var, eps=1e-5):
    scale = gamma / jnp.sqrt(var + eps)
    bias = beta - mean * scale
    return scale, bias


def init_osa_params(key, in_channels, mid_channels, out_channels, n=5):
    """Conv weights are stored with the (eval-mode) BN scale pre-folded in."""
    params = {"convs": []}
    channels = in_channels
    for _ in range(n):
        key, kw, kg, kb, km, kv = jax.random.split(key, 6)
        w = jax.random.normal(kw, (3, 3, channels, mid_channels), jnp.float32) * 0.1
        gamma = 1.0 + 0.1 * jax.random.normal(kg, (mid_channels,), jnp.float32)
        beta = 0.1 * jax.random.normal(kb, (mid_channels,), jnp.float32)
        mean = 0.05 * jax.random.normal(km, (mid_channels,), jnp.float32)
        var = 1.0 + 0.1 * jax.random.uniform(kv, (mid_channels,), jnp.float32)
        scale, bias = _fold_bn(gamma, beta, mean, var)
        params["convs"].append({"w": w * scale, "bias": bias})
        channels = mid_channels

    cat_channels = in_channels + mid_channels * n
    key, kw, kg, kb, km, kv = jax.random.split(key, 6)
    w = jax.random.normal(kw, (cat_channels, out_channels), jnp.float32) * 0.1
    gamma = 1.0 + 0.1 * jax.random.normal(kg, (out_channels,), jnp.float32)
    beta = 0.1 * jax.random.normal(kb, (out_channels,), jnp.float32)
    mean = 0.05 * jax.random.normal(km, (out_channels,), jnp.float32)
    var = 1.0 + 0.1 * jax.random.uniform(kv, (out_channels,), jnp.float32)
    scale, bias = _fold_bn(gamma, beta, mean, var)
    params["project"] = {"w": w * scale, "bias": bias}
    return params


# ----------------------------- pure-JAX reference -----------------------------


def _ref_conv_bias_relu(x_nhwc, w_hwio, bias, pad):
    y = jax.lax.conv_general_dilated(
        x_nhwc, w_hwio, window_strides=(1, 1),
        padding=[(pad, pad), (pad, pad)],
        dimension_numbers=("NHWC", "HWIO", "NHWC"),
    )
    return jnp.maximum(y + bias, 0.0)


def osa_forward_ref_nchw(x_nchw, params):
    x = jnp.transpose(x_nchw, (0, 2, 3, 1))
    xs = [x]
    cur = x
    for p in params["convs"]:
        cur = _ref_conv_bias_relu(cur, p["w"], p["bias"], pad=1)
        xs.append(cur)
    cat = jnp.concatenate(xs, axis=-1)
    pp = params["project"]
    w1 = pp["w"].reshape(1, 1, *pp["w"].shape)
    y = _ref_conv_bias_relu(cat, w1, pp["bias"], pad=0)
    return jnp.transpose(y, (0, 3, 1, 2))


# ----------------------------------- main -------------------------------------


if __name__ == "__main__":
    N, C_in, H, W = 2, 4, 16, 16
    mid_channels, out_channels, n_layers = 8, 16, 5

    key = jax.random.PRNGKey(0)
    key, kx, kp = jax.random.split(key, 3)
    x_nchw = jax.random.normal(kx, (N, C_in, H, W), jnp.float32)
    params = init_osa_params(kp, C_in, mid_channels, out_channels, n=n_layers)

    ref = osa_forward_ref_nchw(x_nchw, params)

    # f32 path: exact PyTorch eval semantics (tight tolerance).
    out = jax.block_until_ready(
        osa_forward_nchw(x_nchw, params, compute_dtype=jnp.float32))
    assert out.shape == (N, out_channels, H, W), out.shape
    max_err = float(jnp.max(jnp.abs(out - ref)))
    assert jnp.allclose(out, ref, atol=2e-3, rtol=2e-3), max_err

    # bf16-MXU path (review recommendation for v6e/v7x): f32 accumulation, looser tolerance.
    out_bf16 = jax.block_until_ready(
        osa_forward_nchw(x_nchw, params, compute_dtype=jnp.bfloat16))
    max_err_bf16 = float(jnp.max(jnp.abs(out_bf16 - ref)))
    assert jnp.allclose(out_bf16, ref, atol=6e-2, rtol=6e-2), max_err_bf16

    print("KERNEL_OK")
</pallas_src>

<mosaic_0001>
module attributes {stable_mosaic.version = 11 : i64} {
  func.func @_osa_fused_kernel(%arg0: i32, %arg1: memref<1x4x512xf32, #tpu.memory_space<vmem>>, %arg2: memref<3x3x8x4xf32, #tpu.memory_space<vmem>>, %arg3: memref<4x3x3x8x8xf32, #tpu.memory_space<vmem>>, %arg4: memref<8x5xf32, #tpu.memory_space<vmem>>, %arg5: memref<16x44xf32, #tpu.memory_space<vmem>>, %arg6: memref<16x1xf32, #tpu.memory_space<vmem>>, %arg7: memref<1x16x288xf32, #tpu.memory_space<vmem>>, %arg8: memref<8x512xf32, #tpu.memory_space<vmem>>, %arg9: memref<8x512xf32, #tpu.memory_space<vmem>>, %arg10: memref<8x512xf32, #tpu.memory_space<vmem>>, %arg11: memref<8x512xf32, #tpu.memory_space<vmem>>, %arg12: memref<8x512xf32, #tpu.memory_space<vmem>>) attributes {dimension_semantics = [#tpu.dimension_semantics<parallel>], iteration_bounds = array<i64: 2>, scalar_prefetch = 0 : i64, scratch_operands = 5 : i64, tpu.core_type = #tpu.core_type<tc>, window_params = [{transform_indices = @transform_0, window_bounds = array<i64: 1, 4, 512>}, {pipeline_mode = #tpu.pipeline_mode<synchronous>, transform_indices = @transform_1, window_bounds = array<i64: 3, 3, 8, 4>}, {pipeline_mode = #tpu.pipeline_mode<synchronous>, transform_indices = @transform_2, window_bounds = array<i64: 4, 3, 3, 8, 8>}, {pipeline_mode = #tpu.pipeline_mode<synchronous>, transform_indices = @transform_3, window_bounds = array<i64: 8, 5>}, {pipeline_mode = #tpu.pipeline_mode<synchronous>, transform_indices = @transform_4, window_bounds = array<i64: 16, 44>}, {pipeline_mode = #tpu.pipeline_mode<synchronous>, transform_indices = @transform_5, window_bounds = array<i64: 16, 1>}, {transform_indices = @transform_6, window_bounds = array<i64: 1, 16, 288>}]} {
    %cst = arith.constant 0.000000e+00 : f32
    %0 = vector.broadcast %cst : f32 to vector<8x19xf32>
    %c0 = arith.constant 0 : index
    %c109 = arith.constant 109 : index
    %1 = vector.load %arg8[%c0, %c109] : memref<8x512xf32, #tpu.memory_space<vmem>>, vector<8x19xf32>
    tpu.vector_store %arg8[%c0, %c109], %0 {strides = array<i32>} : memref<8x512xf32, #tpu.memory_space<vmem>>, vector<8x19xf32>,
    %cst_0 = arith.constant 0.000000e+00 : f32
    %2 = vector.broadcast %cst_0 : f32 to vector<8x17xf32>
    %c0_1 = arith.constant 0 : index
    %c416 = arith.constant 416 : index
    %3 = vector.load %arg8[%c0_1, %c416] : memref<8x512xf32, #tpu.memory_space<vmem>>, vector<8x17xf32>
    tpu.vector_store %arg8[%c0_1, %c416], %2 {strides = array<i32>} : memref<8x512xf32, #tpu.memory_space<vmem>>, vector<8x17xf32>,
    %cst_2 = arith.constant 0.000000e+00 : f32
    %4 = vector.broadcast %cst_2 : f32 to vector<8x19xf32>
    %c0_3 = arith.constant 0 : index
    %c109_4 = arith.constant 109 : index
    %5 = vector.load %arg9[%c0_3, %c109_4] : memref<8x512xf32, #tpu.memory_space<vmem>>, vector<8x19xf32>
    tpu.vector_store %arg9[%c0_3, %c109_4], %4 {strides = array<i32>} : memref<8x512xf32, #tpu.memory_space<vmem>>, vector<8x19xf32>,
    %cst_5 = arith.constant 0.000000e+00 : f32
    %6 = vector.broadcast %cst_5 : f32 to vector<8x17xf32>
    %c0_6 = arith.constant 0 : index
    %c416_7 = arith.constant 416 : index
    %7 = vector.load %arg9[%c0_6, %c416_7] : memref<8x512xf32, #tpu.memory_space<vmem>>, vector<8x17xf32>
    tpu.vector_store %arg9[%c0_6, %c416_7], %6 {strides = array<i32>} : memref<8x512xf32, #tpu.memory_space<vmem>>, vector<8x17xf32>,
    %cst_8 = arith.constant 0.000000e+00 : f32
    %8 = vector.broadcast %cst_8 : f32 to vector<8x19xf32>
    %c0_9 = arith.constant 0 : index
    %c109_10 = arith.constant 109 : index
    %9 = vector.load %arg10[%c0_9, %c109_10] : memref<8x512xf32, #tpu.memory_space<vmem>>, vector<8x19xf32>
    tpu.vector_store %arg10[%c0_9, %c109_10], %8 {strides = array<i32>} : memref<8x512xf32, #tpu.memory_space<vmem>>, vector<8x19xf32>,
    %cst_11 = arith.constant 0.000000e+00 : f32
    %10 = vector.broadcast %cst_11 : f32 to vector<8x17xf32>
    %c0_12 = arith.constant 0 : index
    %c416_13 = arith.constant 416 : index
    %11 = vector.load %arg10[%c0_12, %c416_13] : memref<8x512xf32, #tpu.memory_space<vmem>>, vector<8x17xf32>
    tpu.vector_store %arg10[%c0_12, %c416_13], %10 {strides = array<i32>} : memref<8x512xf32, #tpu.memory_space<vmem>>, vector<8x17xf32>,
    %cst_14 = arith.constant 0.000000e+00 : f32
    %12 = vector.broadcast %cst_14 : f32 to vector<8x19xf32>
    %c0_15 = arith.constant 0 : index
    %c109_16 = arith.constant 109 : index
    %13 = vector.load %arg11[%c0_15, %c109_16] : memref<8x512xf32, #tpu.memory_space<vmem>>, vector<8x19xf32>
    tpu.vector_store %arg11[%c0_15, %c109_16], %12 {strides = array<i32>} : memref<8x512xf32, #tpu.memory_space<vmem>>, vector<8x19xf32>,
    %cst_17 = arith.constant 0.000000e+00 : f32
    %14 = vector.broadcast %cst_17 : f32 to vector<8x17xf32>
    %c0_18 = arith.constant 0 : index
    %c416_19 = arith.constant 416 : index
    %15 = vector.load %arg11[%c0_18, %c416_19] : memref<8x512xf32, #tpu.memory_space<vmem>>, vector<8x17xf32>
    tpu.vector_store %arg11[%c0_18, %c416_19], %14 {strides = array<i32>} : memref<8x512xf32, #tpu.memory_space<vmem>>, vector<8x17xf32>,
    %cst_20 = arith.constant 0.000000e+00 : f32
    %16 = vector.broadcast %cst_20 : f32 to vector<8x19xf32>
    %c0_21 = arith.constant 0 : index
    %c109_22 = arith.constant 109 : index
    %17 = vector.load %arg12[%c0_21, %c109_22] : memref<8x512xf32, #tpu.memory_space<vmem>>, vector<8x19xf32>
    tpu.vector_store %arg12[%c0_21, %c109_22], %16 {strides = array<i32>} : memref<8x512xf32, #tpu.memory_space<vmem>>, vector<8x19xf32>,
    %cst_23 = arith.constant 0.000000e+00 : f32
    %18 = vector.broadcast %cst_23 : f32 to vector<8x17xf32>
    %c0_24 = arith.constant 0 : index
    %c416_25 = arith.constant 416 : index
    %19 = vector.load %arg12[%c0_24, %c416_25] : memref<8x512xf32, #tpu.memory_space<vmem>>, vector<8x17xf32>
    tpu.vector_store %arg12[%c0_24, %c416_25], %18 {strides = array<i32>} : memref<8x512xf32, #tpu.memory_space<vmem>>, vector<8x17xf32>,
    %20 = tpu.iota {dimensions = array<i32: 1>} : vector<1x288xi32>
    %21 = arith.sitofp %20 : vector<1x288xi32> to vector<1x288xf32>
    %cst_26 = arith.constant 0.055555556 : f32
    %22 = vector.broadcast %cst_26 : f32 to vector<1x288xf32>
    %23 = arith.mulf %21, %22 : vector<1x288xf32>
    %cst_27 = arith.constant 9.99999974E-5 : f32
    %24 = vector.broadcast %cst_27 : f32 to vector<1x288xf32>
    %25 = arith.addf %23, %24 : vector<1x288xf32>
    %26 = arith.fptosi %25 : vector<1x288xf32> to vector<1x288xi32>
    %c18_i32 = arith.constant 18 : i32
    %27 = vector.broadcast %c18_i32 : i32 to vector<1x288xi32>
    %28 = arith.muli %26, %27 : vector<1x288xi32>
    %29 = arith.subi %20, %28 : vector<1x288xi32>
    %c16_i32 = arith.constant 16 : i32
    %30 = vector.broadcast %c16_i32 : i32 to vector<1x288xi32>
    %31 = arith.cmpi slt, %29, %30 : vector<1x288xi32>
    %cst_28 = arith.constant 0.000000e+00 : f32
    %32 = vector.broadcast %cst_28 : f32 to vector<8x288xf32>
    %c0_29 = arith.constant 0 : index
    %c0_30 = arith.constant 0 : index
    %c109_31 = arith.constant 109 : index
    %33 = vector.load %arg1[%c0_29, %c0_30, %c109_31] : memref<1x4x512xf32, #tpu.memory_space<vmem>>, vector<1x4x288xf32>
    %34 = vector.shape_cast %33 : vector<1x4x288xf32> to vector<4x288xf32>
    %c0_32 = arith.constant 0 : index
    %c0_33 = arith.constant 0 : index
    %c0_34 = arith.constant 0 : index
    %c0_35 = arith.constant 0 : index
    %35 = vector.load %arg2[%c0_32, %c0_33, %c0_34, %c0_35] : memref<3x3x8x4xf32, #tpu.memory_space<vmem>>, vector<1x1x8x4xf32>
    %36 = vector.shape_cast %35 : vector<1x1x8x4xf32> to vector<8x4xf32>
    %cst_36 = arith.constant dense<0.000000e+00> : vector<8x288xf32>
    %37 = tpu.matmul %36, %34, %cst_36 {dimension_numbers = #tpu.dot_dimension_numbers<[1], [0], [0], [1], [0, 0, 1, 1], [], []>} : vector<8x4xf32>, vector<4x288xf32>, vector<8x288xf32> -> vector<8x288xf32>
    %38 = arith.addf %32, %37 : vector<8x288xf32>
    %c0_37 = arith.constant 0 : index
    %c0_38 = arith.constant 0 : index
    %c110 = arith.constant 110 : index
    %39 = vector.load %arg1[%c0_37, %c0_38, %c110] : memref<1x4x512xf32, #tpu.memory_space<vmem>>, vector<1x4x288xf32>
    %40 = vector.shape_cast %39 : vector<1x4x288xf32> to vector<4x288xf32>
    %c0_39 = arith.constant 0 : index
    %c1 = arith.constant 1 : index
    %c0_40 = arith.constant 0 : index
    %c0_41 = arith.constant 0 : index
    %41 = vector.load %arg2[%c0_39, %c1, %c0_40, %c0_41] : memref<3x3x8x4xf32, #tpu.memory_space<vmem>>, vector<1x1x8x4xf32>
    %42 = vector.shape_cast %41 : vector<1x1x8x4xf32> to vector<8x4xf32>
    %cst_42 = arith.constant dense<0.000000e+00> : vector<8x288xf32>
    %43 = tpu.matmul %42, %40, %cst_42 {dimension_numbers = #tpu.dot_dimension_numbers<[1], [0], [0], [1], [0, 0, 1, 1], [], []>} : vector<8x4xf32>, vector<4x288xf32>, vector<8x288xf32> -> vector<8x288xf32>
    %44 = arith.addf %38, %43 : vector<8x288xf32>
    %c0_43 = arith.constant 0 : index
    %c0_44 = arith.constant 0 : index
    %c111 = arith.constant 111 : index
    %45 = vector.load %arg1[%c0_43, %c0_44, %c111] : memref<1x4x512xf32, #tpu.memory_space<vmem>>, vector<1x4x288xf32>
    %46 = vector.shape_cast %45 : vector<1x4x288xf32> to vector<4x288xf32>
    %c0_45 = arith.constant 0 : index
    %c2 = arith.constant 2 : index
    %c0_46 = arith.constant 0 : index
    %c0_47 = arith.constant 0 : index
    %47 = vector.load %arg2[%c0_45, %c2, %c0_46, %c0_47] : memref<3x3x8x4xf32, #tpu.memory_space<vmem>>, vector<1x1x8x4xf32>
    %48 = vector.shape_cast %47 : vector<1x1x8x4xf32> to vector<8x4xf32>
    %cst_48 = arith.constant dense<0.000000e+00> : vector<8x288xf32>
    %49 = tpu.matmul %48, %46, %cst_48 {dimension_numbers = #tpu.dot_dimension_numbers<[1], [0], [0], [1], [0, 0, 1, 1], [], []>} : vector<8x4xf32>, vector<4x288xf32>, vector<8x288xf32> -> vector<8x288xf32>
    %50 = arith.addf %44, %49 : vector<8x288xf32>
    %c0_49 = arith.constant 0 : index
    %c0_50 = arith.constant 0 : index
    %c127 = arith.constant 127 : index
    %51 = vector.load %arg1[%c0_49, %c0_50, %c127] : memref<1x4x512xf32, #tpu.memory_space<vmem>>, vector<1x4x288xf32>
    %52 = vector.shape_cast %51 : vector<1x4x288xf32> to vector<4x288xf32>
    %c1_51 = arith.constant 1 : index
    %c0_52 = arith.constant 0 : index
    %c0_53 = arith.constant 0 : index
    %c0_54 = arith.constant 0 : index
    %53 = vector.load %arg2[%c1_51, %c0_52, %c0_53, %c0_54] : memref<3x3x8x4xf32, #tpu.memory_space<vmem>>, vector<1x1x8x4xf32>
    %54 = vector.shape_cast %53 : vector<1x1x8x4xf32> to vector<8x4xf32>
    %cst_55 = arith.constant dense<0.000000e+00> : vector<8x288xf32>
    %55 = tpu.matmul %54, %52, %cst_55 {dimension_numbers = #tpu.dot_dimension_numbers<[1], [0], [0], [1], [0, 0, 1, 1], [], []>} : vector<8x4xf32>, vector<4x288xf32>, vector<8x288xf32> -> vector<8x288xf32>
    %56 = arith.addf %50, %55 : vector<8x288xf32>
    %c0_56 = arith.constant 0 : index
    %c0_57 = arith.constant 0 : index
    %c128 = arith.constant 128 : index
    %57 = vector.load %arg1[%c0_56, %c0_57, %c128] : memref<1x4x512xf32, #tpu.memory_space<vmem>>, vector<1x4x288xf32>
    %58 = vector.shape_cast %57 : vector<1x4x288xf32> to vector<4x288xf32>
    %c1_58 = arith.constant 1 : index
    %c1_59 = arith.constant 1 : index
    %c0_60 = arith.constant 0 : index
    %c0_61 = arith.constant 0 : index
    %59 = vector.load %arg2[%c1_58, %c1_59, %c0_60, %c0_61] : memref<3x3x8x4xf32, #tpu.memory_space<vmem>>, vector<1x1x8x4xf32>
    %60 = vector.shape_cast %59 : vector<1x1x8x4xf32> to vector<8x4xf32>
    %cst_62 = arith.constant dense<0.000000e+00> : vector<8x288xf32>
    %61 = tpu.matmul %60, %58, %cst_62 {dimension_numbers = #tpu.dot_dimension_numbers<[1], [0], [0], [1], [0, 0, 1, 1], [], []>} : vector<8x4xf32>, vector<4x288xf32>, vector<8x288xf32> -> vector<8x288xf32>
    %62 = arith.addf %56, %61 : vector<8x288xf32>
    %c0_63 = arith.constant 0 : index
    %c0_64 = arith.constant 0 : index
    %c129 = arith.constant 129 : index
    %63 = vector.load %arg1[%c0_63, %c0_64, %c129] : memref<1x4x512xf32, #tpu.memory_space<vmem>>, vector<1x4x288xf32>
    %64 = vector.shape_cast %63 : vector<1x4x288xf32> to vector<4x288xf32>
    %c1_65 = arith.constant 1 : index
    %c2_66 = arith.constant 2 : index
    %c0_67 = arith.constant 0 : index
    %c0_68 = arith.constant 0 : index
    %65 = vector.load %arg2[%c1_65, %c2_66, %c0_67, %c0_68] : memref<3x3x8x4xf32, #tpu.memory_space<vmem>>, vector<1x1x8x4xf32>
    %66 = vector.shape_cast %65 : vector<1x1x8x4xf32> to vector<8x4xf32>
    %cst_69 = arith.constant dense<0.000000e+00> : vector<8x288xf32>
    %67 = tpu.matmul %66, %64, %cst_69 {dimension_numbers = #tpu.dot_dimension_numbers<[1], [0], [0], [1], [0, 0, 1, 1], [], []>} : vector<8x4xf32>, vector<4x288xf32>, vector<8x288xf32> -> vector<8x288xf32>
    %68 = arith.addf %62, %67 : vector<8x288xf32>
    %c0_70 = arith.constant 0 : index
    %c0_71 = arith.constant 0 : index
    %c145 = arith.constant 145 : index
    %69 = vector.load %arg1[%c0_70, %c0_71, %c145] : memref<1x4x512xf32, #tpu.memory_space<vmem>>, vector<1x4x288xf32>
    %70 = vector.shape_cast %69 : vector<1x4x288xf32> to vector<4x288xf32>
    %c2_72 = arith.constant 2 : index
    %c0_73 = arith.constant 0 : index
    %c0_74 = arith.constant 0 : index
    %c0_75 = arith.constant 0 : index
    %71 = vector.load %arg2[%c2_72, %c0_73, %c0_74, %c0_75] : memref<3x3x8x4xf32, #tpu.memory_space<vmem>>, vector<1x1x8x4xf32>
    %72 = vector.shape_cast %71 : vector<1x1x8x4xf32> to vector<8x4xf32>
    %cst_76 = arith.constant dense<0.000000e+00> : vector<8x288xf32>
    %73 = tpu.matmul %72, %70, %cst_76 {dimension_numbers = #tpu.dot_dimension_numbers<[1], [0], [0], [1], [0, 0, 1, 1], [], []>} : vector<8x4xf32>, vector<4x288xf32>, vector<8x288xf32> -> vector<8x288xf32>
    %74 = arith.addf %68, %73 : vector<8x288xf32>
    %c0_77 = arith.constant 0 : index
    %c0_78 = arith.constant 0 : index
    %c146 = arith.constant 146 : index
    %75 = vector.load %arg1[%c0_77, %c0_78, %c146] : memref<1x4x512xf32, #tpu.memory_space<vmem>>, vector<1x4x288xf32>
    %76 = vector.shape_cast %75 : vector<1x4x288xf32> to vector<4x288xf32>
    %c2_79 = arith.constant 2 : index
    %c1_80 = arith.constant 1 : index
    %c0_81 = arith.constant 0 : index
    %c0_82 = arith.constant 0 : index
    %77 = vector.load %arg2[%c2_79, %c1_80, %c0_81, %c0_82] : memref<3x3x8x4xf32, #tpu.memory_space<vmem>>, vector<1x1x8x4xf32>
    %78 = vector.shape_cast %77 : vector<1x1x8x4xf32> to vector<8x4xf32>
    %cst_83 = arith.constant dense<0.000000e+00> : vector<8x288xf32>
    %79 = tpu.matmul %78, %76, %cst_83 {dimension_numbers = #tpu.dot_dimension_numbers<[1], [0], [0], [1], [0, 0, 1, 1], [], []>} : vector<8x4xf32>, vector<4x288xf32>, vector<8x288xf32> -> vector<8x288xf32>
    %80 = arith.addf %74, %79 : vector<8x288xf32>
    %c0_84 = arith.constant 0 : index
    %c0_85 = arith.constant 0 : index
    %c147 = arith.constant 147 : index
    %81 = vector.load %arg1[%c0_84, %c0_85, %c147] : memref<1x4x512xf32, #tpu.memory_space<vmem>>, vector<1x4x288xf32>
    %82 = vector.shape_cast %81 : vector<1x4x288xf32> to vector<4x288xf32>
    %c2_86 = arith.constant 2 : index
    %c2_87 = arith.constant 2 : index
    %c0_88 = arith.constant 0 : index
    %c0_89 = arith.constant 0 : index
    %83 = vector.load %arg2[%c2_86, %c2_87, %c0_88, %c0_89] : memref<3x3x8x4xf32, #tpu.memory_space<vmem>>, vector<1x1x8x4xf32>
    %84 = vector.shape_cast %83 : vector<1x1x8x4xf32> to vector<8x4xf32>
    %cst_90 = arith.constant dense<0.000000e+00> : vector<8x288xf32>
    %85 = tpu.matmul %84, %82, %cst_90 {dimension_numbers = #tpu.dot_dimension_numbers<[1], [0], [0], [1], [0, 0, 1, 1], [], []>} : vector<8x4xf32>, vector<4x288xf32>, vector<8x288xf32> -> vector<8x288xf32>
    %86 = arith.addf %80, %85 : vector<8x288xf32>
    %c0_91 = arith.constant 0 : index
    %c0_92 = arith.constant 0 : index
    %87 = vector.load %arg4[%c0_91, %c0_92] : memref<8x5xf32, #tpu.memory_space<vmem>>, vector<8x1xf32>
    %88 = vector.broadcast %87 : vector<8x1xf32> to vector<8x288xf32>
    %89 = arith.addf %86, %88 : vector<8x288xf32>
    %cst_93 = arith.constant 0.000000e+00 : f32
    %90 = vector.broadcast %cst_93 : f32 to vector<8x288xf32>
    %91 = arith.maximumf %89, %90 : vector<8x288xf32>
    %cst_94 = arith.constant 0.000000e+00 : f32
    %92 = vector.shape_cast %31 : vector<1x288xi1> to vector<1x288xi1>
    %93 = vector.broadcast %92 : vector<1x288xi1> to vector<8x288xi1>
    %94 = vector.broadcast %cst_94 : f32 to vector<8x288xf32>
    %95 = arith.select %93, %91, %94 : vector<8x288xi1>, vector<8x288xf32>
    %c0_95 = arith.constant 0 : index
    %c128_96 = arith.constant 128 : index
    %96 = vector.load %arg8[%c0_95, %c128_96] : memref<8x512xf32, #tpu.memory_space<vmem>>, vector<8x288xf32>
    tpu.vector_store %arg8[%c0_95, %c128_96], %95 {strides = array<i32>} : memref<8x512xf32, #tpu.memory_space<vmem>>, vector<8x288xf32>,
    %cst_97 = arith.constant 0.000000e+00 : f32
    %97 = vector.broadcast %cst_97 : f32 to vector<8x288xf32>
    %c0_98 = arith.constant 0 : index
    %c109_99 = arith.constant 109 : index
    %98 = vector.load %arg8[%c0_98, %c109_99] : memref<8x512xf32, #tpu.memory_space<vmem>>, vector<8x288xf32>
    %c0_100 = arith.constant 0 : index
    %c0_101 = arith.constant 0 : index
    %c0_102 = arith.constant 0 : index
    %c0_103 = arith.constant 0 : index
    %c0_104 = arith.constant 0 : index
    %99 = vector.load %arg3[%c0_100, %c0_101, %c0_102, %c0_103, %c0_104] : memref<4x3x3x8x8xf32, #tpu.memory_space<vmem>>, vector<1x1x1x8x8xf32>
    %100 = vector.shape_cast %99 : vector<1x1x1x8x8xf32> to vector<8x8xf32>
    %cst_105 = arith.constant dense<0.000000e+00> : vector<8x288xf32>
    %101 = tpu.matmul %100, %98, %cst_105 {dimension_numbers = #tpu.dot_dimension_numbers<[1], [0], [0], [1], [0, 0, 1, 1], [], []>} : vector<8x8xf32>, vector<8x288xf32>, vector<8x288xf32> -> vector<8x288xf32>
    %102 = arith.addf %97, %101 : vector<8x288xf32>
    %c0_106 = arith.constant 0 : index
    %c110_107 = arith.constant 110 : index
    %103 = vector.load %arg8[%c0_106, %c110_107] : memref<8x512xf32, #tpu.memory_space<vmem>>, vector<8x288xf32>
    %c0_108 = arith.constant 0 : index
    %c0_109 = arith.constant 0 : index
    %c1_110 = arith.constant 1 : index
    %c0_111 = arith.constant 0 : index
    %c0_112 = arith.constant 0 : index
    %104 = vector.load %arg3[%c0_108, %c0_109, %c1_110, %c0_111, %c0_112] : memref<4x3x3x8x8xf32, #tpu.memory_space<vmem>>, vector<1x1x1x8x8xf32>
    %105 = vector.shape_cast %104 : vector<1x1x1x8x8xf32> to vector<8x8xf32>
    %cst_113 = arith.constant dense<0.000000e+00> : vector<8x288xf32>
    %106 = tpu.matmul %105, %103, %cst_113 {dimension_numbers = #tpu.dot_dimension_numbers<[1], [0], [0], [1], [0, 0, 1, 1], [], []>} : vector<8x8xf32>, vector<8x288xf32>, vector<8x288xf32> -> vector<8x288xf32>
    %107 = arith.addf %102, %106 : vector<8x288xf32>
    %c0_114 = arith.constant 0 : index
    %c111_115 = arith.constant 111 : index
    %108 = vector.load %arg8[%c0_114, %c111_115] : memref<8x512xf32, #tpu.memory_space<vmem>>, vector<8x288xf32>
    %c0_116 = arith.constant 0 : index
    %c0_117 = arith.constant 0 : index
    %c2_118 = arith.constant 2 : index
    %c0_119 = arith.constant 0 : index
    %c0_120 = arith.constant 0 : index
    %109 = vector.load %arg3[%c0_116, %c0_117, %c2_118, %c0_119, %c0_120] : memref<4x3x3x8x8xf32, #tpu.memory_space<vmem>>, vector<1x1x1x8x8xf32>
    %110 = vector.shape_cast %109 : vector<1x1x1x8x8xf32> to vector<8x8xf32>
    %cst_121 = arith.constant dense<0.000000e+00> : vector<8x288xf32>
    %111 = tpu.matmul %110, %108, %cst_121 {dimension_numbers = #tpu.dot_dimension_numbers<[1], [0], [0], [1], [0, 0, 1, 1], [], []>} : vector<8x8xf32>, vector<8x288xf32>, vector<8x288xf32> -> vector<8x288xf32>
    %112 = arith.addf %107, %111 : vector<8x288xf32>
    %c0_122 = arith.constant 0 : index
    %c127_123 = arith.constant 127 : index
    %113 = vector.load %arg8[%c0_122, %c127_123] : memref<8x512xf32, #tpu.memory_space<vmem>>, vector<8x288xf32>
    %c0_124 = arith.constant 0 : index
    %c1_125 = arith.constant 1 : index
    %c0_126 = arith.constant 0 : index
    %c0_127 = arith.constant 0 : index
    %c0_128 = arith.constant 0 : index
    %114 = vector.load %arg3[%c0_124, %c1_125, %c0_126, %c0_127, %c0_128] : memref<4x3x3x8x8xf32, #tpu.memory_space<vmem>>, vector<1x1x1x8x8xf32>
    %115 = vector.shape_cast %114 : vector<1x1x1x8x8xf32> to vector<8x8xf32>
    %cst_129 = arith.constant dense<0.000000e+00> : vector<8x288xf32>
    %116 = tpu.matmul %115, %113, %cst_129 {dimension_numbers = #tpu.dot_dimension_numbers<[1], [0], [0], [1], [0, 0, 1, 1], [], []>} : vector<8x8xf32>, vector<8x288xf32>, vector<8x288xf32> -> vector<8x288xf32>
    %117 = arith.addf %112, %116 : vector<8x288xf32>
    %c0_130 = arith.constant 0 : index
    %c128_131 = arith.constant 128 : index
    %118 = vector.load %arg8[%c0_130, %c128_131] : memref<8x512xf32, #tpu.memory_space<vmem>>, vector<8x288xf32>
    %c0_132 = arith.constant 0 : index
    %c1_133 = arith.constant 1 : index
    %c1_134 = arith.constant 1 : index
    %c0_135 = arith.constant 0 : index
    %c0_136 = arith.constant 0 : index
    %119 = vector.load %arg3[%c0_132, %c1_133, %c1_134, %c0_135, %c0_136] : memref<4x3x3x8x8xf32, #tpu.memory_space<vmem>>, vector<1x1x1x8x8xf32>
    %120 = vector.shape_cast %119 : vector<1x1x1x8x8xf32> to vector<8x8xf32>
    %cst_137 = arith.constant dense<0.000000e+00> : vector<8x288xf32>
    %121 = tpu.matmul %120, %118, %cst_137 {dimension_numbers = #tpu.dot_dimension_numbers<[1], [0], [0], [1], [0, 0, 1, 1], [], []>} : vector<8x8xf32>, vector<8x288xf32>, vector<8x288xf32> -> vector<8x288xf32>
    %122 = arith.addf %117, %121 : vector<8x288xf32>
    %c0_138 = arith.constant 0 : index
    %c129_139 = arith.constant 129 : index
    %123 = vector.load %arg8[%c0_138, %c129_139] : memref<8x512xf32, #tpu.memory_space<vmem>>, vector<8x288xf32>
    %c0_140 = arith.constant 0 : index
    %c1_141 = arith.constant 1 : index
    %c2_142 = arith.constant 2 : index
    %c0_143 = arith.constant 0 : index
    %c0_144 = arith.constant 0 : index
    %124 = vector.load %arg3[%c0_140, %c1_141, %c2_142, %c0_143, %c0_144] : memref<4x3x3x8x8xf32, #tpu.memory_space<vmem>>, vector<1x1x1x8x8xf32>
    %125 = vector.shape_cast %124 : vector<1x1x1x8x8xf32> to vector<8x8xf32>
    %cst_145 = arith.constant dense<0.000000e+00> : vector<8x288xf32>
    %126 = tpu.matmul %125, %123, %cst_145 {dimension_numbers = #tpu.dot_dimension_numbers<[1], [0], [0], [1], [0, 0, 1, 1], [], []>} : vector<8x8xf32>, vector<8x288xf32>, vector<8x288xf32> -> vector<8x288xf32>
    %127 = arith.addf %122, %126 : vector<8x288xf32>
    %c0_146 = arith.constant 0 : index
    %c145_147 = arith.constant 145 : index
    %128 = vector.load %arg8[%c0_146, %c145_147] : memref<8x512xf32, #tpu.memory_space<vmem>>, vector<8x288xf32>
    %c0_148 = arith.constant 0 : index
    %c2_149 = arith.constant 2 : index
    %c0_150 = arith.constant 0 : index
    %c0_151 = arith.constant 0 : index
    %c0_152 = arith.constant 0 : index
    %129 = vector.load %arg3[%c0_148, %c2_149, %c0_150, %c0_151, %c0_152] : memref<4x3x3x8x8xf32, #tpu.memory_space<vmem>>, vector<1x1x1x8x8xf32>
    %130 = vector.shape_cast %129 : vector<1x1x1x8x8xf32> to vector<8x8xf32>
    %cst_153 = arith.constant dense<0.000000e+00> : vector<8x288xf32>
    %131 = tpu.matmul %130, %128, %cst_153 {dimension_numbers = #tpu.dot_dimension_numbers<[1], [0], [0], [1], [0, 0, 1, 1], [], []>} : vector<8x8xf32>, vector<8x288xf32>, vector<8x288xf32> -> vector<8x288xf32>
    %132 = arith.addf %127, %131 : vector<8x288xf32>
    %c0_154 = arith.constant 0 : index
    %c146_155 = arith.constant 146 : index
    %133 = vector.load %arg8[%c0_154, %c146_155] : memref<8x512xf32, #tpu.memory_space<vmem>>, vector<8x288xf32>
    %c0_156 = arith.constant 0 : index
    %c2_157 = arith.constant 2 : index
    %c1_158 = arith.constant 1 : index
    %c0_159 = arith.constant 0 : index
    %c0_160 = arith.constant 0 : index
    %134 = vector.load %arg3[%c0_156, %c2_157, %c1_158, %c0_159, %c0_160] : memref<4x3x3x8x8xf32, #tpu.memory_space<vmem>>, vector<1x1x1x8x8xf32>
    %135 = vector.shape_cast %134 : vector<1x1x1x8x8xf32> to vector<8x8xf32>
    %cst_161 = arith.constant dense<0.000000e+00> : vector<8x288xf32>
    %136 = tpu.matmul %135, %133, %cst_161 {dimension_numbers = #tpu.dot_dimension_numbers<[1], [0], [0], [1], [0, 0, 1, 1], [], []>} : vector<8x8xf32>, vector<8x288xf32>, vector<8x288xf32> -> vector<8x288xf32>
    %137 = arith.addf %132, %136 : vector<8x288xf32>
    %c0_162 = arith.constant 0 : index
    %c147_163 = arith.constant 147 : index
    %138 = vector.load %arg8[%c0_162, %c147_163] : memref<8x512xf32, #tpu.memory_space<vmem>>, vector<8x288xf32>
    %c0_164 = arith.constant 0 : index
    %c2_165 = arith.constant 2 : index
    %c2_166 = arith.constant 2 : index
    %c0_167 = arith.constant 0 : index
    %c0_168 = arith.constant 0 : index
    %139 = vector.load %arg3[%c0_164, %c2_165, %c2_166, %c0_167, %c0_168] : memref<4x3x3x8x8xf32, #tpu.memory_space<vmem>>, vector<1x1x1x8x8xf32>
    %140 = vector.shape_cast %139 : vector<1x1x1x8x8xf32> to vector<8x8xf32>
    %cst_169 = arith.constant dense<0.000000e+00> : vector<8x288xf32>
    %141 = tpu.matmul %140, %138, %cst_169 {dimension_numbers = #tpu.dot_dimension_numbers<[1], [0], [0], [1], [0, 0, 1, 1], [], []>} : vector<8x8xf32>, vector<8x288xf32>, vector<8x288xf32> -> vector<8x288xf32>
    %142 = arith.addf %137, %141 : vector<8x288xf32>
    %c0_170 = arith.constant 0 : index
    %c1_171 = arith.constant 1 : index
    %143 = vector.load %arg4[%c0_170, %c1_171] : memref<8x5xf32, #tpu.memory_space<vmem>>, vector<8x1xf32>
    %144 = vector.broadcast %143 : vector<8x1xf32> to vector<8x288xf32>
    %145 = arith.addf %142, %144 : vector<8x288xf32>
    %cst_172 = arith.constant 0.000000e+00 : f32
    %146 = vector.broadcast %cst_172 : f32 to vector<8x288xf32>
    %147 = arith.maximumf %145, %146 : vector<8x288xf32>
    %cst_173 = arith.constant 0.000000e+00 : f32
    %148 = vector.shape_cast %31 : vector<1x288xi1> to vector<1x288xi1>
    %149 = vector.broadcast %148 : vector<1x288xi1> to vector<8x288xi1>
    %150 = vector.broadcast %cst_173 : f32 to vector<8x288xf32>
    %151 = arith.select %149, %147, %150 : vector<8x288xi1>, vector<8x288xf32>
    %c0_174 = arith.constant 0 : index
    %c128_175 = arith.constant 128 : index
    %152 = vector.load %arg9[%c0_174, %c128_175] : memref<8x512xf32, #tpu.memory_space<vmem>>, vector<8x288xf32>
    tpu.vector_store %arg9[%c0_174, %c128_175], %151 {strides = array<i32>} : memref<8x512xf32, #tpu.memory_space<vmem>>, vector<8x288xf32>,
    %cst_176 = arith.constant 0.000000e+00 : f32
    %153 = vector.broadcast %cst_176 : f32 to vector<8x288xf32>
    %c0_177 = arith.constant 0 : index
    %c109_178 = arith.constant 109 : index
    %154 = vector.load %arg9[%c0_177, %c109_178] : memref<8x512xf32, #tpu.memory_space<vmem>>, vector<8x288xf32>
    %c1_179 = arith.constant 1 : index
    %c0_180 = arith.constant 0 : index
    %c0_181 = arith.constant 0 : index
    %c0_182 = arith.constant 0 : index
    %c0_183 = arith.constant 0 : index
    %155 = vector.load %arg3[%c1_179, %c0_180, %c0_181, %c0_182, %c0_183] : memref<4x3x3x8x8xf32, #tpu.memory_space<vmem>>, vector<1x1x1x8x8xf32>
    %156 = vector.shape_cast %155 : vector<1x1x1x8x8xf32> to vector<8x8xf32>
    %cst_184 = arith.constant dense<0.000000e+00> : vector<8x288xf32>
    %157 = tpu.matmul %156, %154, %cst_184 {dimension_numbers = #tpu.dot_dimension_numbers<[1], [0], [0], [1], [0, 0, 1, 1], [], []>} : vector<8x8xf32>, vector<8x288xf32>, vector<8x288xf32> -> vector<8x288xf32>
    %158 = arith.addf %153, %157 : vector<8x288xf32>
    %c0_185 = arith.constant 0 : index
    %c110_186 = arith.constant 110 : index
    %159 = vector.load %arg9[%c0_185, %c110_186] : memref<8x512xf32, #tpu.memory_space<vmem>>, vector<8x288xf32>
    %c1_187 = arith.constant 1 : index
    %c0_188 = arith.constant 0 : index
    %c1_189 = arith.constant 1 : index
    %c0_190 = arith.constant 0 : index
    %c0_191 = arith.constant 0 : index
    %160 = vector.load %arg3[%c1_187, %c0_188, %c1_189, %c0_190, %c0_191] : memref<4x3x3x8x8xf32, #tpu.memory_space<vmem>>, vector<1x1x1x8x8xf32>
    %161 = vector.shape_cast %160 : vector<1x1x1x8x8xf32> to vector<8x8xf32>
    %cst_192 = arith.constant dense<0.000000e+00> : vector<8x288xf32>
    %162 = tpu.matmul %161, %159, %cst_192 {dimension_numbers = #tpu.dot_dimension_numbers<[1], [0], [0], [1], [0, 0, 1, 1], [], []>} : vector<8x8xf32>, vector<8x288xf32>, vector<8x288xf32> -> vector<8x288xf32>
    %163 = arith.addf %158, %162 : vector<8x288xf32>
    %c0_193 = arith.constant 0 : index
    %c111_194 = arith.constant 111 : index
    %164 = vector.load %arg9[%c0_193, %c111_194] : memref<8x512xf32, #tpu.memory_space<vmem>>, vector<8x288xf32>
    %c1_195 = arith.constant 1 : index
    %c0_196 = arith.constant 0 : index
    %c2_197 = arith.constant 2 : index
    %c0_198 = arith.constant 0 : index
    %c0_199 = arith.constant 0 : index
    %165 = vector.load %arg3[%c1_195, %c0_196, %c2_197, %c0_198, %c0_199] : memref<4x3x3x8x8xf32, #tpu.memory_space<vmem>>, vector<1x1x1x8x8xf32>
    %166 = vector.shape_cast %165 : vector<1x1x1x8x8xf32> to vector<8x8xf32>
    %cst_200 = arith.constant dense<0.000000e+00> : vector<8x288xf32>
    %167 = tpu.matmul %166, %164, %cst_200 {dimension_numbers = #tpu.dot_dimension_numbers<[1], [0], [0], [1], [0, 0, 1, 1], [], []>} : vector<8x8xf32>, vector<8x288xf32>, vector<8x288xf32> -> vector<8x288xf32>
    %168 = arith.addf %163, %167 : vector<8x288xf32>
    %c0_201 = arith.constant 0 : index
    %c127_202 = arith.constant 127 : index
    %169 = vector.load %arg9[%c0_201, %c127_202] : memref<8x512xf32, #tpu.memory_space<vmem>>, vector<8x288xf32>
    %c1_203 = arith.constant 1 : index
    %c1_204 = arith.constant 1 : index
    %c0_205 = arith.constant 0 : index
    %c0_206 = arith.constant 0 : index
    %c0_207 = arith.constant 0 : index
    %170 = vector.load %arg3[%c1_203, %c1_204, %c0_205, %c0_206, %c0_207] : memref<4x3x3x8x8xf32, #tpu.memory_space<vmem>>, vector<1x1x1x8x8xf32>
    %171 = vector.shape_cast %170 : vector<1x1x1x8x8xf32> to vector<8x8xf32>
    %cst_208 = arith.constant dense<0.000000e+00> : vector<8x288xf32>
    %172 = tpu.matmul %171, %169, %cst_208 {dimension_numbers = #tpu.dot_dimension_numbers<[1], [0], [0], [1], [0, 0, 1, 1], [], []>} : vector<8x8xf32>, vector<8x288xf32>, vector<8x288xf32> -> vector<8x288xf32>
    %173 = arith.addf %168, %172 : vector<8x288xf32>
    %c0_209 = arith.constant 0 : index
    %c128_210 = arith.constant 128 : index
    %174 = vector.load %arg9[%c0_209, %c128_210] : memref<8x512xf32, #tpu.memory_space<vmem>>, vector<8x288xf32>
    %c1_211 = arith.constant 1 : index
    %c1_212 = arith.constant 1 : index
    %c1_213 = arith.constant 1 : index
    %c0_214 = arith.constant 0 : index
    %c0_215 = arith.constant 0 : index
    %175 = vector.load %arg3[%c1_211, %c1_212, %c1_213, %c0_214, %c0_215] : memref<4x3x3x8x8xf32, #tpu.memory_space<vmem>>, vector<1x1x1x8x8xf32>
    %176 = vector.shape_cast %175 : vector<1x1x1x8x8xf32> to vector<8x8xf32>
    %cst_216 = arith.constant dense<0.000000e+00> : vector<8x288xf32>
    %177 = tpu.matmul %176, %174, %cst_216 {dimension_numbers = #tpu.dot_dimension_numbers<[1], [0], [0], [1], [0, 0, 1, 1], [], []>} : vector<8x8xf32>, vector<8x288xf32>, vector<8x288xf32> -> vector<8x288xf32>
    %178 = arith.addf %173, %177 : vector<8x288xf32>
    %c0_217 = arith.constant 0 : index
    %c129_218 = arith.constant 129 : index
    %179 = vector.load %arg9[%c0_217, %c129_218] : memref<8x512xf32, #tpu.memory_space<vmem>>, vector<8x288xf32>
    %c1_219 = arith.constant 1 : index
    %c1_220 = arith.constant 1 : index
    %c2_221 = arith.constant 2 : index
    %c0_222 = arith.constant 0 : index
    %c0_223 = arith.constant 0 : index
    %180 = vector.load %arg3[%c1_219, %c1_220, %c2_221, %c0_222, %c0_223] : memref<4x3x3x8x8xf32, #tpu.memory_space<vmem>>, vector<1x1x1x8x8xf32>
    %181 = vector.shape_cast %180 : vector<1x1x1x8x8xf32> to vector<8x8xf32>
    %cst_224 = arith.constant dense<0.000000e+00> : vector<8x288xf32>
    %182 = tpu.matmul %181, %179, %cst_224 {dimension_numbers = #tpu.dot_dimension_numbers<[1], [0], [0], [1], [0, 0, 1, 1], [], []>} : vector<8x8xf32>, vector<8x288xf32>, vector<8x288xf32> -> vector<8x288xf32>
    %183 = arith.addf %178, %182 : vector<8x288xf32>
    %c0_225 = arith.constant 0 : index
    %c145_226 = arith.constant 145 : index
    %184 = vector.load %arg9[%c0_225, %c145_226] : memref<8x512xf32, #tpu.memory_space<vmem>>, vector<8x288xf32>
    %c1_227 = arith.constant 1 : index
    %c2_228 = arith.constant 2 : index
    %c0_229 = arith.constant 0 : index
    %c0_230 = arith.constant 0 : index
    %c0_231 = arith.constant 0 : index
    %185 = vector.load %arg3[%c1_227, %c2_228, %c0_229, %c0_230, %c0_231] : memref<4x3x3x8x8xf32, #tpu.memory_space<vmem>>, vector<1x1x1x8x8xf32>
    %186 = vector.shape_cast %185 : vector<1x1x1x8x8xf32> to vector<8x8xf32>
    %cst_232 = arith.constant dense<0.000000e+00> : vector<8x288xf32>
    %187 = tpu.matmul %186, %184, %cst_232 {dimension_numbers = #tpu.dot_dimension_numbers<[1], [0], [0], [1], [0, 0, 1, 1], [], []>} : vector<8x8xf32>, vector<8x288xf32>, vector<8x288xf32> -> vector<8x288xf32>
    %188 = arith.addf %183, %187 : vector<8x288xf32>
    %c0_233 = arith.constant 0 : index
    %c146_234 = arith.constant 146 : index
    %189 = vector.load %arg9[%c0_233, %c146_234] : memref<8x512xf32, #tpu.memory_space<vmem>>, vector<8x288xf32>
    %c1_235 = arith.constant 1 : index
    %c2_236 = arith.constant 2 : index
    %c1_237 = arith.constant 1 : index
    %c0_238 = arith.constant 0 : index
    %c0_239 = arith.constant 0 : index
    %190 = vector.load %arg3[%c1_235, %c2_236, %c1_237, %c0_238, %c0_239] : memref<4x3x3x8x8xf32, #tpu.memory_space<vmem>>, vector<1x1x1x8x8xf32>
    %191 = vector.shape_cast %190 : vector<1x1x1x8x8xf32> to vector<8x8xf32>
    %cst_240 = arith.constant dense<0.000000e+00> : vector<8x288xf32>
    %192 = tpu.matmul %191, %189, %cst_240 {dimension_numbers = #tpu.dot_dimension_numbers<[1], [0], [0], [1], [0, 0, 1, 1], [], []>} : vector<8x8xf32>, vector<8x288xf32>, vector<8x288xf32> -> vector<8x288xf32>
    %193 = arith.addf %188, %192 : vector<8x288xf32>
    %c0_241 = arith.constant 0 : index
    %c147_242 = arith.constant 147 : index
    %194 = vector.load %arg9[%c0_241, %c147_242] : memref<8x512xf32, #tpu.memory_space<vmem>>, vector<8x288xf32>
    %c1_243 = arith.constant 1 : index
    %c2_244 = arith.constant 2 : index
    %c2_245 = arith.constant 2 : index
    %c0_246 = arith.constant 0 : index
    %c0_247 = arith.constant 0 : index
    %195 = vector.load %arg3[%c1_243, %c2_244, %c2_245, %c0_246, %c0_247] : memref<4x3x3x8x8xf32, #tpu.memory_space<vmem>>, vector<1x1x1x8x8xf32>
    %196 = vector.shape_cast %195 : vector<1x1x1x8x8xf32> to vector<8x8xf32>
    %cst_248 = arith.constant dense<0.000000e+00> : vector<8x288xf32>
    %197 = tpu.matmul %196, %194, %cst_248 {dimension_numbers = #tpu.dot_dimension_numbers<[1], [0], [0], [1], [0, 0, 1, 1], [], []>} : vector<8x8xf32>, vector<8x288xf32>, vector<8x288xf32> -> vector<8x288xf32>
    %198 = arith.addf %193, %197 : vector<8x288xf32>
    %c0_249 = arith.constant 0 : index
    %c2_250 = arith.constant 2 : index
    %199 = vector.load %arg4[%c0_249, %c2_250] : memref<8x5xf32, #tpu.memory_space<vmem>>, vector<8x1xf32>
    %200 = vector.broadcast %199 : vector<8x1xf32> to vector<8x288xf32>
    %201 = arith.addf %198, %200 : vector<8x288xf32>
    %cst_251 = arith.constant 0.000000e+00 : f32
    %202 = vector.broadcast %cst_251 : f32 to vector<8x288xf32>
    %203 = arith.maximumf %201, %202 : vector<8x288xf32>
    %cst_252 = arith.constant 0.000000e+00 : f32
    %204 = vector.shape_cast %31 : vector<1x288xi1> to vector<1x288xi1>
    %205 = vector.broadcast %204 : vector<1x288xi1> to vector<8x288xi1>
    %206 = vector.broadcast %cst_252 : f32 to vector<8x288xf32>
    %207 = arith.select %205, %203, %206 : vector<8x288xi1>, vector<8x288xf32>
    %c0_253 = arith.constant 0 : index
    %c128_254 = arith.constant 128 : index
    %208 = vector.load %arg10[%c0_253, %c128_254] : memref<8x512xf32, #tpu.memory_space<vmem>>, vector<8x288xf32>
    tpu.vector_store %arg10[%c0_253, %c128_254], %207 {strides = array<i32>} : memref<8x512xf32, #tpu.memory_space<vmem>>, vector<8x288xf32>,
    %cst_255 = arith.constant 0.000000e+00 : f32
    %209 = vector.broadcast %cst_255 : f32 to vector<8x288xf32>
    %c0_256 = arith.constant 0 : index
    %c109_257 = arith.constant 109 : index
    %210 = vector.load %arg10[%c0_256, %c109_257] : memref<8x512xf32, #tpu.memory_space<vmem>>, vector<8x288xf32>
    %c2_258 = arith.constant 2 : index
    %c0_259 = arith.constant 0 : index
    %c0_260 = arith.constant 0 : index
    %c0_261 = arith.constant 0 : index
    %c0_262 = arith.constant 0 : index
    %211 = vector.load %arg3[%c2_258, %c0_259, %c0_260, %c0_261, %c0_262] : memref<4x3x3x8x8xf32, #tpu.memory_space<vmem>>, vector<1x1x1x8x8xf32>
    %212 = vector.shape_cast %211 : vector<1x1x1x8x8xf32> to vector<8x8xf32>
    %cst_263 = arith.constant dense<0.000000e+00> : vector<8x288xf32>
    %213 = tpu.matmul %212, %210, %cst_263 {dimension_numbers = #tpu.dot_dimension_numbers<[1], [0], [0], [1], [0, 0, 1, 1], [], []>} : vector<8x8xf32>, vector<8x288xf32>, vector<8x288xf32> -> vector<8x288xf32>
    %214 = arith.addf %209, %213 : vector<8x288xf32>
    %c0_264 = arith.constant 0 : index
    %c110_265 = arith.constant 110 : index
    %215 = vector.load %arg10[%c0_264, %c110_265] : memref<8x512xf32, #tpu.memory_space<vmem>>, vector<8x288xf32>
    %c2_266 = arith.constant 2 : index
    %c0_267 = arith.constant 0 : index
    %c1_268 = arith.constant 1 : index
    %c0_269 = arith.constant 0 : index
    %c0_270 = arith.constant 0 : index
    %216 = vector.load %arg3[%c2_266, %c0_267, %c1_268, %c0_269, %c0_270] : memref<4x3x3x8x8xf32, #tpu.memory_space<vmem>>, vector<1x1x1x8x8xf32>
    %217 = vector.shape_cast %216 : vector<1x1x1x8x8xf32> to vector<8x8xf32>
    %cst_271 = arith.constant dense<0.000000e+00> : vector<8x288xf32>
    %218 = tpu.matmul %217, %215, %cst_271 {dimension_numbers = #tpu.dot_dimension_numbers<[1], [0], [0], [1], [0, 0, 1, 1], [], []>} : vector<8x8xf32>, vector<8x288xf32>, vector<8x288xf32> -> vector<8x288xf32>
    %219 = arith.addf %214, %218 : vector<8x288xf32>
    %c0_272 = arith.constant 0 : index
    %c111_273 = arith.constant 111 : index
    %220 = vector.load %arg10[%c0_272, %c111_273] : memref<8x512xf32, #tpu.memory_space<vmem>>, vector<8x288xf32>
    %c2_274 = arith.constant 2 : index
    %c0_275 = arith.constant 0 : index
    %c2_276 = arith.constant 2 : index
    %c0_277 = arith.constant 0 : index
    %c0_278 = arith.constant 0 : index
    %221 = vector.load %arg3[%c2_274, %c0_275, %c2_276, %c0_277, %c0_278] : memref<4x3x3x8x8xf32, #tpu.memory_space<vmem>>, vector<1x1x1x8x8xf32>
    %222 = vector.shape_cast %221 : vector<1x1x1x8x8xf32> to vector<8x8xf32>
    %cst_279 = arith.constant dense<0.000000e+00> : vector<8x288xf32>
    %223 = tpu.matmul %222, %220, %cst_279 {dimension_numbers = #tpu.dot_dimension_numbers<[1], [0], [0], [1], [0, 0, 1, 1], [], []>} : vector<8x8xf32>, vector<8x288xf32>, vector<8x288xf32> -> vector<8x288xf32>
    %224 = arith.addf %219, %223 : vector<8x288xf32>
    %c0_280 = arith.constant 0 : index
    %c127_281 = arith.constant 127 : index
    %225 = vector.load %arg10[%c0_280, %c127_281] : memref<8x512xf32, #tpu.memory_space<vmem>>, vector<8x288xf32>
    %c2_282 = arith.constant 2 : index
    %c1_283 = arith.constant 1 : index
    %c0_284 = arith.constant 0 : index
    %c0_285 = arith.constant 0 : index
    %c0_286 = arith.constant 0 : index
    %226 = vector.load %arg3[%c2_282, %c1_283, %c0_284, %c0_285, %c0_286] : memref<4x3x3x8x8xf32, #tpu.memory_space<vmem>>, vector<1x1x1x8x8xf32>
    %227 = vector.shape_cast %226 : vector<1x1x1x8x8xf32> to vector<8x8xf32>
    %cst_287 = arith.constant dense<0.000000e+00> : vector<8x288xf32>
    %228 = tpu.matmul %227, %225, %cst_287 {dimension_numbers = #tpu.dot_dimension_numbers<[1], [0], [0], [1], [0, 0, 1, 1], [], []>} : vector<8x8xf32>, vector<8x288xf32>, vector<8x288xf32> -> vector<8x288xf32>
    %229 = arith.addf %224, %228 : vector<8x288xf32>
    %c0_288 = arith.constant 0 : index
    %c128_289 = arith.constant 128 : index
    %230 = vector.load %arg10[%c0_288, %c128_289] : memref<8x512xf32, #tpu.memory_space<vmem>>, vector<8x288xf32>
    %c2_290 = arith.constant 2 : index
    %c1_291 = arith.constant 1 : index
    %c1_292 = arith.constant 1 : index
    %c0_293 = arith.constant 0 : index
    %c0_294 = arith.constant 0 : index
    %231 = vector.load %arg3[%c2_290, %c1_291, %c1_292, %c0_293, %c0_294] : memref<4x3x3x8x8xf32, #tpu.memory_space<vmem>>, vector<1x1x1x8x8xf32>
    %232 = vector.shape_cast %231 : vector<1x1x1x8x8xf32> to vector<8x8xf32>
    %cst_295 = arith.constant dense<0.000000e+00> : vector<8x288xf32>
    %233 = tpu.matmul %232, %230, %cst_295 {dimension_numbers = #tpu.dot_dimension_numbers<[1], [0], [0], [1], [0, 0, 1, 1], [], []>} : vector<8x8xf32>, vector<8x288xf32>, vector<8x288xf32> -> vector<8x288xf32>
    %234 = arith.addf %229, %233 : vector<8x288xf32>
    %c0_296 = arith.constant 0 : index
    %c129_297 = arith.constant 129 : index
    %235 = vector.load %arg10[%c0_296, %c129_297] : memref<8x512xf32, #tpu.memory_space<vmem>>, vector<8x288xf32>
    %c2_298 = arith.constant 2 : index
    %c1_299 = arith.constant 1 : index
    %c2_300 = arith.constant 2 : index
    %c0_301 = arith.constant 0 : index
    %c0_302 = arith.constant 0 : index
    %236 = vector.load %arg3[%c2_298, %c1_299, %c2_300, %c0_301, %c0_302] : memref<4x3x3x8x8xf32, #tpu.memory_space<vmem>>, vector<1x1x1x8x8xf32>
    %237 = vector.shape_cast %236 : vector<1x1x1x8x8xf32> to vector<8x8xf32>
    %cst_303 = arith.constant dense<0.000000e+00> : vector<8x288xf32>
    %238 = tpu.matmul %237, %235, %cst_303 {dimension_numbers = #tpu.dot_dimension_numbers<[1], [0], [0], [1], [0, 0, 1, 1], [], []>} : vector<8x8xf32>, vector<8x288xf32>, vector<8x288xf32> -> vector<8x288xf32>
    %239 = arith.addf %234, %238 : vector<8x288xf32>
    %c0_304 = arith.constant 0 : index
    %c145_305 = arith.constant 145 : index
    %240 = vector.load %arg10[%c0_304, %c145_305] : memref<8x512xf32, #tpu.memory_space<vmem>>, vector<8x288xf32>
    %c2_306 = arith.constant 2 : index
    %c2_307 = arith.constant 2 : index
    %c0_308 = arith.constant 0 : index
    %c0_309 = arith.constant 0 : index
    %c0_310 = arith.constant 0 : index
    %241 = vector.load %arg3[%c2_306, %c2_307, %c0_308, %c0_309, %c0_310] : memref<4x3x3x8x8xf32, #tpu.memory_space<vmem>>, vector<1x1x1x8x8xf32>
    %242 = vector.shape_cast %241 : vector<1x1x1x8x8xf32> to vector<8x8xf32>
    %cst_311 = arith.constant dense<0.000000e+00> : vector<8x288xf32>
    %243 = tpu.matmul %242, %240, %cst_311 {dimension_numbers = #tpu.dot_dimension_numbers<[1], [0], [0], [1], [0, 0, 1, 1], [], []>} : vector<8x8xf32>, vector<8x288xf32>, vector<8x288xf32> -> vector<8x288xf32>
    %244 = arith.addf %239, %243 : vector<8x288xf32>
    %c0_312 = arith.constant 0 : index
    %c146_313 = arith.constant 146 : index
    %245 = vector.load %arg10[%c0_312, %c146_313] : memref<8x512xf32, #tpu.memory_space<vmem>>, vector<8x288xf32>
    %c2_314 = arith.constant 2 : index
    %c2_315 = arith.constant 2 : index
    %c1_316 = arith.constant 1 : index
    %c0_317 = arith.constant 0 : index
    %c0_318 = arith.constant 0 : index
    %246 = vector.load %arg3[%c2_314, %c2_315, %c1_316, %c0_317, %c0_318] : memref<4x3x3x8x8xf32, #tpu.memory_space<vmem>>, vector<1x1x1x8x8xf32>
    %247 = vector.shape_cast %246 : vector<1x1x1x8x8xf32> to vector<8x8xf32>
    %cst_319 = arith.constant dense<0.000000e+00> : vector<8x288xf32>
    %248 = tpu.matmul %247, %245, %cst_319 {dimension_numbers = #tpu.dot_dimension_numbers<[1], [0], [0], [1], [0, 0, 1, 1], [], []>} : vector<8x8xf32>, vector<8x288xf32>, vector<8x288xf32> -> vector<8x288xf32>
    %249 = arith.addf %244, %248 : vector<8x288xf32>
    %c0_320 = arith.constant 0 : index
    %c147_321 = arith.constant 147 : index
    %250 = vector.load %arg10[%c0_320, %c147_321] : memref<8x512xf32, #tpu.memory_space<vmem>>, vector<8x288xf32>
    %c2_322 = arith.constant 2 : index
    %c2_323 = arith.constant 2 : index
    %c2_324 = arith.constant 2 : index
    %c0_325 = arith.constant 0 : index
    %c0_326 = arith.constant 0 : index
    %251 = vector.load %arg3[%c2_322, %c2_323, %c2_324, %c0_325, %c0_326] : memref<4x3x3x8x8xf32, #tpu.memory_space<vmem>>, vector<1x1x1x8x8xf32>
    %252 = vector.shape_cast %251 : vector<1x1x1x8x8xf32> to vector<8x8xf32>
    %cst_327 = arith.constant dense<0.000000e+00> : vector<8x288xf32>
    %253 = tpu.matmul %252, %250, %cst_327 {dimension_numbers = #tpu.dot_dimension_numbers<[1], [0], [0], [1], [0, 0, 1, 1], [], []>} : vector<8x8xf32>, vector<8x288xf32>, vector<8x288xf32> -> vector<8x288xf32>
    %254 = arith.addf %249, %253 : vector<8x288xf32>
    %c0_328 = arith.constant 0 : index
    %c3 = arith.constant 3 : index
    %255 = vector.load %arg4[%c0_328, %c3] : memref<8x5xf32, #tpu.memory_space<vmem>>, vector<8x1xf32>
    %256 = vector.broadcast %255 : vector<8x1xf32> to vector<8x288xf32>
    %257 = arith.addf %254, %256 : vector<8x288xf32>
    %cst_329 = arith.constant 0.000000e+00 : f32
    %258 = vector.broadcast %cst_329 : f32 to vector<8x288xf32>
    %259 = arith.maximumf %257, %258 : vector<8x288xf32>
    %cst_330 = arith.constant 0.000000e+00 : f32
    %260 = vector.shape_cast %31 : vector<1x288xi1> to vector<1x288xi1>
    %261 = vector.broadcast %260 : vector<1x288xi1> to vector<8x288xi1>
    %262 = vector.broadcast %cst_330 : f32 to vector<8x288xf32>
    %263 = arith.select %261, %259, %262 : vector<8x288xi1>, vector<8x288xf32>
    %c0_331 = arith.constant 0 : index
    %c128_332 = arith.constant 128 : index
    %264 = vector.load %arg11[%c0_331, %c128_332] : memref<8x512xf32, #tpu.memory_space<vmem>>, vector<8x288xf32>
    tpu.vector_store %arg11[%c0_331, %c128_332], %263 {strides = array<i32>} : memref<8x512xf32, #tpu.memory_space<vmem>>, vector<8x288xf32>,
    %cst_333 = arith.constant 0.000000e+00 : f32
    %265 = vector.broadcast %cst_333 : f32 to vector<8x288xf32>
    %c0_334 = arith.constant 0 : index
    %c109_335 = arith.constant 109 : index
    %266 = vector.load %arg11[%c0_334, %c109_335] : memref<8x512xf32, #tpu.memory_space<vmem>>, vector<8x288xf32>
    %c3_336 = arith.constant 3 : index
    %c0_337 = arith.constant 0 : index
    %c0_338 = arith.constant 0 : index
    %c0_339 = arith.constant 0 : index
    %c0_340 = arith.constant 0 : index
    %267 = vector.load %arg3[%c3_336, %c0_337, %c0_338, %c0_339, %c0_340] : memref<4x3x3x8x8xf32, #tpu.memory_space<vmem>>, vector<1x1x1x8x8xf32>
    %268 = vector.shape_cast %267 : vector<1x1x1x8x8xf32> to vector<8x8xf32>
    %cst_341 = arith.constant dense<0.000000e+00> : vector<8x288xf32>
    %269 = tpu.matmul %268, %266, %cst_341 {dimension_numbers = #tpu.dot_dimension_numbers<[1], [0], [0], [1], [0, 0, 1, 1], [], []>} : vector<8x8xf32>, vector<8x288xf32>, vector<8x288xf32> -> vector<8x288xf32>
    %270 = arith.addf %265, %269 : vector<8x288xf32>
    %c0_342 = arith.constant 0 : index
    %c110_343 = arith.constant 110 : index
    %271 = vector.load %arg11[%c0_342, %c110_343] : memref<8x512xf32, #tpu.memory_space<vmem>>, vector<8x288xf32>
    %c3_344 = arith.constant 3 : index
    %c0_345 = arith.constant 0 : index
    %c1_346 = arith.constant 1 : index
    %c0_347 = arith.constant 0 : index
    %c0_348 = arith.constant 0 : index
    %272 = vector.load %arg3[%c3_344, %c0_345, %c1_346, %c0_347, %c0_348] : memref<4x3x3x8x8xf32, #tpu.memory_space<vmem>>, vector<1x1x1x8x8xf32>
    %273 = vector.shape_cast %272 : vector<1x1x1x8x8xf32> to vector<8x8xf32>
    %cst_349 = arith.constant dense<0.000000e+00> : vector<8x288xf32>
    %274 = tpu.matmul %273, %271, %cst_349 {dimension_numbers = #tpu.dot_dimension_numbers<[1], [0], [0], [1], [0, 0, 1, 1], [], []>} : vector<8x8xf32>, vector<8x288xf32>, vector<8x288xf32> -> vector<8x288xf32>
    %275 = arith.addf %270, %274 : vector<8x288xf32>
    %c0_350 = arith.constant 0 : index
    %c111_351 = arith.constant 111 : index
    %276 = vector.load %arg11[%c0_350, %c111_351] : memref<8x512xf32, #tpu.memory_space<vmem>>, vector<8x288xf32>
    %c3_352 = arith.constant 3 : index
    %c0_353 = arith.constant 0 : index
    %c2_354 = arith.constant 2 : index
    %c0_355 = arith.constant 0 : index
    %c0_356 = arith.constant 0 : index
    %277 = vector.load %arg3[%c3_352, %c0_353, %c2_354, %c0_355, %c0_356] : memref<4x3x3x8x8xf32, #tpu.memory_space<vmem>>, vector<1x1x1x8x8xf32>
    %278 = vector.shape_cast %277 : vector<1x1x1x8x8xf32> to vector<8x8xf32>
    %cst_357 = arith.constant dense<0.000000e+00> : vector<8x288xf32>
    %279 = tpu.matmul %278, %276, %cst_357 {dimension_numbers = #tpu.dot_dimension_numbers<[1], [0], [0], [1], [0, 0, 1, 1], [], []>} : vector<8x8xf32>, vector<8x288xf32>, vector<8x288xf32> -> vector<8x288xf32>
    %280 = arith.addf %275, %279 : vector<8x288xf32>
    %c0_358 = arith.constant 0 : index
    %c127_359 = arith.constant 127 : index
    %281 = vector.load %arg11[%c0_358, %c127_359] : memref<8x512xf32, #tpu.memory_space<vmem>>, vector<8x288xf32>
    %c3_360 = arith.constant 3 : index
    %c1_361 = arith.constant 1 : index
    %c0_362 = arith.constant 0 : index
    %c0_363 = arith.constant 0 : index
    %c0_364 = arith.constant 0 : index
    %282 = vector.load %arg3[%c3_360, %c1_361, %c0_362, %c0_363, %c0_364] : memref<4x3x3x8x8xf32, #tpu.memory_space<vmem>>, vector<1x1x1x8x8xf32>
    %283 = vector.shape_cast %282 : vector<1x1x1x8x8xf32> to vector<8x8xf32>
    %cst_365 = arith.constant dense<0.000000e+00> : vector<8x288xf32>
    %284 = tpu.matmul %283, %281, %cst_365 {dimension_numbers = #tpu.dot_dimension_numbers<[1], [0], [0], [1], [0, 0, 1, 1], [], []>} : vector<8x8xf32>, vector<8x288xf32>, vector<8x288xf32> -> vector<8x288xf32>
    %285 = arith.addf %280, %284 : vector<8x288xf32>
    %c0_366 = arith.constant 0 : index
    %c128_367 = arith.constant 128 : index
    %286 = vector.load %arg11[%c0_366, %c128_367] : memref<8x512xf32, #tpu.memory_space<vmem>>, vector<8x288xf32>
    %c3_368 = arith.constant 3 : index
    %c1_369 = arith.constant 1 : index
    %c1_370 = arith.constant 1 : index
    %c0_371 = arith.constant 0 : index
    %c0_372 = arith.constant 0 : index
    %287 = vector.load %arg3[%c3_368, %c1_369, %c1_370, %c0_371, %c0_372] : memref<4x3x3x8x8xf32, #tpu.memory_space<vmem>>, vector<1x1x1x8x8xf32>
    %288 = vector.shape_cast %287 : vector<1x1x1x8x8xf32> to vector<8x8xf32>
    %cst_373 = arith.constant dense<0.000000e+00> : vector<8x288xf32>
    %289 = tpu.matmul %288, %286, %cst_373 {dimension_numbers = #tpu.dot_dimension_numbers<[1], [0], [0], [1], [0, 0, 1, 1], [], []>} : vector<8x8xf32>, vector<8x288xf32>, vector<8x288xf32> -> vector<8x288xf32>
    %290 = arith.addf %285, %289 : vector<8x288xf32>
    %c0_374 = arith.constant 0 : index
    %c129_375 = arith.constant 129 : index
    %291 = vector.load %arg11[%c0_374, %c129_375] : memref<8x512xf32, #tpu.memory_space<vmem>>, vector<8x288xf32>
    %c3_376 = arith.constant 3 : index
    %c1_377 = arith.constant 1 : index
    %c2_378 = arith.constant 2 : index
    %c0_379 = arith.constant 0 : index
    %c0_380 = arith.constant 0 : index
    %292 = vector.load %arg3[%c3_376, %c1_377, %c2_378, %c0_379, %c0_380] : memref<4x3x3x8x8xf32, #tpu.memory_space<vmem>>, vector<1x1x1x8x8xf32>
    %293 = vector.shape_cast %292 : vector<1x1x1x8x8xf32> to vector<8x8xf32>
    %cst_381 = arith.constant dense<0.000000e+00> : vector<8x288xf32>
    %294 = tpu.matmul %293, %291, %cst_381 {dimension_numbers = #tpu.dot_dimension_numbers<[1], [0], [0], [1], [0, 0, 1, 1], [], []>} : vector<8x8xf32>, vector<8x288xf32>, vector<8x288xf32> -> vector<8x288xf32>
    %295 = arith.addf %290, %294 : vector<8x288xf32>
    %c0_382 = arith.constant 0 : index
    %c145_383 = arith.constant 145 : index
    %296 = vector.load %arg11[%c0_382, %c145_383] : memref<8x512xf32, #tpu.memory_space<vmem>>, vector<8x288xf32>
    %c3_384 = arith.constant 3 : index
    %c2_385 = arith.constant 2 : index
    %c0_386 = arith.constant 0 : index
    %c0_387 = arith.constant 0 : index
    %c0_388 = arith.constant 0 : index
    %297 = vector.load %arg3[%c3_384, %c2_385, %c0_386, %c0_387, %c0_388] : memref<4x3x3x8x8xf32, #tpu.memory_space<vmem>>, vector<1x1x1x8x8xf32>
    %298 = vector.shape_cast %297 : vector<1x1x1x8x8xf32> to vector<8x8xf32>
    %cst_389 = arith.constant dense<0.000000e+00> : vector<8x288xf32>
    %299 = tpu.matmul %298, %296, %cst_389 {dimension_numbers = #tpu.dot_dimension_numbers<[1], [0], [0], [1], [0, 0, 1, 1], [], []>} : vector<8x8xf32>, vector<8x288xf32>, vector<8x288xf32> -> vector<8x288xf32>
    %300 = arith.addf %295, %299 : vector<8x288xf32>
    %c0_390 = arith.constant 0 : index
    %c146_391 = arith.constant 146 : index
    %301 = vector.load %arg11[%c0_390, %c146_391] : memref<8x512xf32, #tpu.memory_space<vmem>>, vector<8x288xf32>
    %c3_392 = arith.constant 3 : index
    %c2_393 = arith.constant 2 : index
    %c1_394 = arith.constant 1 : index
    %c0_395 = arith.constant 0 : index
    %c0_396 = arith.constant 0 : index
    %302 = vector.load %arg3[%c3_392, %c2_393, %c1_394, %c0_395, %c0_396] : memref<4x3x3x8x8xf32, #tpu.memory_space<vmem>>, vector<1x1x1x8x8xf32>
    %303 = vector.shape_cast %302 : vector<1x1x1x8x8xf32> to vector<8x8xf32>
    %cst_397 = arith.constant dense<0.000000e+00> : vector<8x288xf32>
    %304 = tpu.matmul %303, %301, %cst_397 {dimension_numbers = #tpu.dot_dimension_numbers<[1], [0], [0], [1], [0, 0, 1, 1], [], []>} : vector<8x8xf32>, vector<8x288xf32>, vector<8x288xf32> -> vector<8x288xf32>
    %305 = arith.addf %300, %304 : vector<8x288xf32>
    %c0_398 = arith.constant 0 : index
    %c147_399 = arith.constant 147 : index
    %306 = vector.load %arg11[%c0_398, %c147_399] : memref<8x512xf32, #tpu.memory_space<vmem>>, vector<8x288xf32>
    %c3_400 = arith.constant 3 : index
    %c2_401 = arith.constant 2 : index
    %c2_402 = arith.constant 2 : index
    %c0_403 = arith.constant 0 : index
    %c0_404 = arith.constant 0 : index
    %307 = vector.load %arg3[%c3_400, %c2_401, %c2_402, %c0_403, %c0_404] : memref<4x3x3x8x8xf32, #tpu.memory_space<vmem>>, vector<1x1x1x8x8xf32>
    %308 = vector.shape_cast %307 : vector<1x1x1x8x8xf32> to vector<8x8xf32>
    %cst_405 = arith.constant dense<0.000000e+00> : vector<8x288xf32>
    %309 = tpu.matmul %308, %306, %cst_405 {dimension_numbers = #tpu.dot_dimension_numbers<[1], [0], [0], [1], [0, 0, 1, 1], [], []>} : vector<8x8xf32>, vector<8x288xf32>, vector<8x288xf32> -> vector<8x288xf32>
    %310 = arith.addf %305, %309 : vector<8x288xf32>
    %c0_406 = arith.constant 0 : index
    %c4 = arith.constant 4 : index
    %311 = vector.load %arg4[%c0_406, %c4] : memref<8x5xf32, #tpu.memory_space<vmem>>, vector<8x1xf32>
    %312 = vector.broadcast %311 : vector<8x1xf32> to vector<8x288xf32>
    %313 = arith.addf %310, %312 : vector<8x288xf32>
    %cst_407 = arith.constant 0.000000e+00 : f32
    %314 = vector.broadcast %cst_407 : f32 to vector<8x288xf32>
    %315 = arith.maximumf %313, %314 : vector<8x288xf32>
    %cst_408 = arith.constant 0.000000e+00 : f32
    %316 = vector.shape_cast %31 : vector<1x288xi1> to vector<1x288xi1>
    %317 = vector.broadcast %316 : vector<1x288xi1> to vector<8x288xi1>
    %318 = vector.broadcast %cst_408 : f32 to vector<8x288xf32>
    %319 = arith.select %317, %315, %318 : vector<8x288xi1>, vector<8x288xf32>
    %c0_409 = arith.constant 0 : index
    %c128_410 = arith.constant 128 : index
    %320 = vector.load %arg12[%c0_409, %c128_410] : memref<8x512xf32, #tpu.memory_space<vmem>>, vector<8x288xf32>
    tpu.vector_store %arg12[%c0_409, %c128_410], %319 {strides = array<i32>} : memref<8x512xf32, #tpu.memory_space<vmem>>, vector<8x288xf32>,
    %cst_411 = arith.constant 0.000000e+00 : f32
    %321 = vector.broadcast %cst_411 : f32 to vector<16x288xf32>
    %c0_412 = arith.constant 0 : index
    %c0_413 = arith.constant 0 : index
    %c128_414 = arith.constant 128 : index
    %322 = vector.load %arg1[%c0_412, %c0_413, %c128_414] : memref<1x4x512xf32, #tpu.memory_space<vmem>>, vector<1x4x288xf32>
    %323 = vector.shape_cast %322 : vector<1x4x288xf32> to vector<4x288xf32>
    %c0_415 = arith.constant 0 : index
    %c0_416 = arith.constant 0 : index
    %324 = vector.load %arg5[%c0_415, %c0_416] : memref<16x44xf32, #tpu.memory_space<vmem>>, vector<16x4xf32>
    %cst_417 = arith.constant dense<0.000000e+00> : vector<16x288xf32>
    %325 = tpu.matmul %324, %323, %cst_417 {dimension_numbers = #tpu.dot_dimension_numbers<[1], [0], [0], [1], [0, 0, 1, 1], [], []>} : vector<16x4xf32>, vector<4x288xf32>, vector<16x288xf32> -> vector<16x288xf32>
    %326 = arith.addf %321, %325 : vector<16x288xf32>
    %c0_418 = arith.constant 0 : index
    %c128_419 = arith.constant 128 : index
    %327 = vector.load %arg8[%c0_418, %c128_419] : memref<8x512xf32, #tpu.memory_space<vmem>>, vector<8x288xf32>
    %c0_420 = arith.constant 0 : index
    %c4_421 = arith.constant 4 : index
    %328 = vector.load %arg5[%c0_420, %c4_421] : memref<16x44xf32, #tpu.memory_space<vmem>>, vector<16x8xf32>
    %cst_422 = arith.constant dense<0.000000e+00> : vector<16x288xf32>
    %329 = tpu.matmul %328, %327, %cst_422 {dimension_numbers = #tpu.dot_dimension_numbers<[1], [0], [0], [1], [0, 0, 1, 1], [], []>} : vector<16x8xf32>, vector<8x288xf32>, vector<16x288xf32> -> vector<16x288xf32>
    %330 = arith.addf %326, %329 : vector<16x288xf32>
    %c0_423 = arith.constant 0 : index
    %c128_424 = arith.constant 128 : index
    %331 = vector.load %arg9[%c0_423, %c128_424] : memref<8x512xf32, #tpu.memory_space<vmem>>, vector<8x288xf32>
    %c0_425 = arith.constant 0 : index
    %c12 = arith.constant 12 : index
    %332 = vector.load %arg5[%c0_425, %c12] : memref<16x44xf32, #tpu.memory_space<vmem>>, vector<16x8xf32>
    %cst_426 = arith.constant dense<0.000000e+00> : vector<16x288xf32>
    %333 = tpu.matmul %332, %331, %cst_426 {dimension_numbers = #tpu.dot_dimension_numbers<[1], [0], [0], [1], [0, 0, 1, 1], [], []>} : vector<16x8xf32>, vector<8x288xf32>, vector<16x288xf32> -> vector<16x288xf32>
    %334 = arith.addf %330, %333 : vector<16x288xf32>
    %c0_427 = arith.constant 0 : index
    %c128_428 = arith.constant 128 : index
    %335 = vector.load %arg10[%c0_427, %c128_428] : memref<8x512xf32, #tpu.memory_space<vmem>>, vector<8x288xf32>
    %c0_429 = arith.constant 0 : index
    %c20 = arith.constant 20 : index
    %336 = vector.load %arg5[%c0_429, %c20] : memref<16x44xf32, #tpu.memory_space<vmem>>, vector<16x8xf32>
    %cst_430 = arith.constant dense<0.000000e+00> : vector<16x288xf32>
    %337 = tpu.matmul %336, %335, %cst_430 {dimension_numbers = #tpu.dot_dimension_numbers<[1], [0], [0], [1], [0, 0, 1, 1], [], []>} : vector<16x8xf32>, vector<8x288xf32>, vector<16x288xf32> -> vector<16x288xf32>
    %338 = arith.addf %334, %337 : vector<16x288xf32>
    %c0_431 = arith.constant 0 : index
    %c128_432 = arith.constant 128 : index
    %339 = vector.load %arg11[%c0_431, %c128_432] : memref<8x512xf32, #tpu.memory_space<vmem>>, vector<8x288xf32>
    %c0_433 = arith.constant 0 : index
    %c28 = arith.constant 28 : index
    %340 = vector.load %arg5[%c0_433, %c28] : memref<16x44xf32, #tpu.memory_space<vmem>>, vector<16x8xf32>
    %cst_434 = arith.constant dense<0.000000e+00> : vector<16x288xf32>
    %341 = tpu.matmul %340, %339, %cst_434 {dimension_numbers = #tpu.dot_dimension_numbers<[1], [0], [0], [1], [0, 0, 1, 1], [], []>} : vector<16x8xf32>, vector<8x288xf32>, vector<16x288xf32> -> vector<16x288xf32>
    %342 = arith.addf %338, %341 : vector<16x288xf32>
    %c0_435 = arith.constant 0 : index
    %c128_436 = arith.constant 128 : index
    %343 = vector.load %arg12[%c0_435, %c128_436] : memref<8x512xf32, #tpu.memory_space<vmem>>, vector<8x288xf32>
    %c0_437 = arith.constant 0 : index
    %c36 = arith.constant 36 : index
    %344 = vector.load %arg5[%c0_437, %c36] : memref<16x44xf32, #tpu.memory_space<vmem>>, vector<16x8xf32>
    %cst_438 = arith.constant dense<0.000000e+00> : vector<16x288xf32>
    %345 = tpu.matmul %344, %343, %cst_438 {dimension_numbers = #tpu.dot_dimension_numbers<[1], [0], [0], [1], [0, 0, 1, 1], [], []>} : vector<16x8xf32>, vector<8x288xf32>, vector<16x288xf32> -> vector<16x288xf32>
    %346 = arith.addf %342, %345 : vector<16x288xf32>
    %c0_439 = arith.constant 0 : index
    %c0_440 = arith.constant 0 : index
    %347 = vector.load %arg6[%c0_439, %c0_440] : memref<16x1xf32, #tpu.memory_space<vmem>>, vector<16x1xf32>
    %348 = vector.broadcast %347 : vector<16x1xf32> to vector<16x288xf32>
    %349 = arith.addf %346, %348 : vector<16x288xf32>
    %cst_441 = arith.constant 0.000000e+00 : f32
    %350 = vector.broadcast %cst_441 : f32 to vector<16x288xf32>
    %351 = arith.maximumf %349, %350 : vector<16x288xf32>
    %c0_442 = arith.constant 0 : index
    %c0_443 = arith.constant 0 : index
    %c0_444 = arith.constant 0 : index
    %352 = vector.load %arg7[%c0_442, %c0_443, %c0_444] : memref<1x16x288xf32, #tpu.memory_space<vmem>>, vector<1x16x288xf32>
    %353 = vector.shape_cast %352 : vector<1x16x288xf32> to vector<16x288xf32>
    %354 = vector.shape_cast %351 : vector<16x288xf32> to vector<1x16x288xf32>
    tpu.vector_store %arg7[%c0_442, %c0_443, %c0_444], %354 {strides = array<i32>} : memref<1x16x288xf32, #tpu.memory_space<vmem>>, vector<1x16x288xf32>,
    return
  }
  func.func @transform_0(%arg0: i32) -> (i32, i32, i32) {
    %c0_i32 = arith.constant 0 : i32
    %c0_i32_0 = arith.constant 0 : i32
    %c0_i32_1 = arith.constant 0 : i32
    return %arg0, %c0_i32, %c0_i32_0 : i32, i32, i32
  }
  func.func @transform_1(%arg0: i32) -> (i32, i32, i32, i32) {
    %c0_i32 = arith.constant 0 : i32
    %c0_i32_0 = arith.constant 0 : i32
    %c0_i32_1 = arith.constant 0 : i32
    %c0_i32_2 = arith.constant 0 : i32
    %c0_i32_3 = arith.constant 0 : i32
    return %c0_i32, %c0_i32_0, %c0_i32_1, %c0_i32_2 : i32, i32, i32, i32
  }
  func.func @transform_2(%arg0: i32) -> (i32, i32, i32, i32, i32) {
    %c0_i32 = arith.constant 0 : i32
    %c0_i32_0 = arith.constant 0 : i32
    %c0_i32_1 = arith.constant 0 : i32
    %c0_i32_2 = arith.constant 0 : i32
    %c0_i32_3 = arith.constant 0 : i32
    %c0_i32_4 = arith.constant 0 : i32
    return %c0_i32, %c0_i32_0, %c0_i32_1, %c0_i32_2, %c0_i32_3 : i32, i32, i32, i32, i32
  }
  func.func @transform_3(%arg0: i32) -> (i32, i32) {
    %c0_i32 = arith.constant 0 : i32
    %c0_i32_0 = arith.constant 0 : i32
    %c0_i32_1 = arith.constant 0 : i32
    return %c0_i32, %c0_i32_0 : i32, i32
  }
  func.func @transform_4(%arg0: i32) -> (i32, i32) {
    %c0_i32 = arith.constant 0 : i32
    %c0_i32_0 = arith.constant 0 : i32
    %c0_i32_1 = arith.constant 0 : i32
    return %c0_i32, %c0_i32_0 : i32, i32
  }
  func.func @transform_5(%arg0: i32) -> (i32, i32) {
    %c0_i32 = arith.constant 0 : i32
    %c0_i32_0 = arith.constant 0 : i32
    %c0_i32_1 = arith.constant 0 : i32
    return %c0_i32, %c0_i32_0 : i32, i32
  }
  func.func @transform_6(%arg0: i32) -> (i32, i32, i32) {
    %c0_i32 = arith.constant 0 : i32
    %c0_i32_0 = arith.constant 0 : i32
    %c0_i32_1 = arith.constant 0 : i32
    return %arg0, %c0_i32, %c0_i32_0 : i32, i32, i32
  }
}

</mosaic_0001>

<bundles_post_ra>
// kernel: osa_forward_nchw.1
= control target key start
LH: loop header
LB: loop body
LE: loop exit
PB: predicated region body
PF: predicated region fallthrough
CT: control target
= control target key end

     0   :  { %s9458_s21 = smov 0   ;;  %s10488_s0 = inlined_call_operand.vmem [shape: f32[2,4,512], index: 0, kind: input, shape index: {}]   ;;  %s10489_s1 = inlined_call_operand.vmem [shape: f32[3,3,8,4], index: 1, kind: input, shape index: {}]   ;;  %s10490_s2 = inlined_call_operand.vmem [shape: f32[4,3,3,8,8], index: 2, kind: input, shape index: {}]   ;;  %s10491_s3 = inlined_call_operand.vmem [shape: f32[8,5], index: 3, kind: input, shape index: {}]   ;;  %s10492_s4 = inlined_call_operand.vmem [shape: f32[16,44], index: 4, kind: input, shape index: {}]   ;;  %s10493_s5 = inlined_call_operand.vmem [shape: f32[16,1], index: 5, kind: input, shape index: {}]   ;;  %s10494_s6 = inlined_call_operand.vmem [shape: f32[2,16,288], index: 6, kind: output, shape index: {}]  }
   0x1 LB: > { %s8774_s22 = sadd.s32 4294967295, %s9401_s21   ;;  %p8778_p0 = scmp.ge.s32.totalorder %s9401_s21, 1  ;;  %s9401_s21 = sphi %s9458_s21, %s16_s21  }
   0x2   : > { %p212_p1 = scmp.lt.s32.totalorder %s9401_s21, 3 }
   0x4   : > { %p213_p2 = pnand %p8778_p0, %p212_p1 }
   0x5   : > { %p242_p3 = scmp.lt.s32.totalorder (!%p213_p2), %s8774_s22, 1  ;;  %s9404_s27 = smov (!%p213_p2), 18  }
   0x6   : > { %216 = sbr.rel (%p213_p2) target bundleno = 2096 (0x830), region = 44  ;;  %s9405_s28 = smov (!%p213_p2), 19  }
   0x7   : > { %s9406_s29 = smov (!%p213_p2), 17   ;;  %s9407_s30 = smov (!%p213_p2), 1  }
   0x8   : > { %s9409_s7 = smov (!%p213_p2), 127   ;;  %s9410_s8 = smov (!%p213_p2), 111  }
   0x9   : > { %s9411_s9 = smov (!%p213_p2), 110   ;;  %s9412_s10 = smov (!%p213_p2), 109  }
   0xa   : > { %s9422_s24 = smov (!%p213_p2), 92  }
   0xb   : > { %s10496_s22 = smov (!%p242_p3, %s8774_s22), 1  ;;  %v9403_v0 = vmov 0.0   ;;  %vm9408_vm0 = vmmov 0   ;;  %v9530_v11 = vld [vmem:[%s10491_s3] sm:$0xff]  ;;  %v9413_v12 = vmov 0   ;;  %vm306_vm1 = vcmask 146432  }
   0xc   : > { %s8971_s23 = sshll.u32 %s10496_s22, 4  ;;  %385 = vmatprep.mubr.f32.mxu0 %v9403_v0  ;;  %9080 = vmatprep.subr.mxu1 %v9403_v0  ;;  %vm314_vm2 = vcmask 1043456   ;;  %vm470_vm3 = vcmask 154624   ;;  %v8782_v21 = vld [vmem:[%s10489_s1 + $0x8] sm:$0xff]  ;;  %vm310_vm4 = vcmask 31744   ;;  %vm640_vm5 = vcmask 138240  }
   0xd   : > { %s9472_s26 = scalar_lea.vmem %s10488_s0, %s8971_s23  ;;  %9082 = vmatprep.mubr.msk.f32.mxu1 %vm9408_vm0, %v9403_v0  ;;  %9370 = vset.pattern.permute.xlu0 %v9413_v12  ;;  %v291_v27 = vld [vmem:[%s10489_s1] sm:$0xff]  ;;  %v8793_v31 = vld [vmem:[%s10489_s1 + $0x10] sm:$0xff]  ;;  %vm813_vm6 = vcmask 7168   ;;  %v9576_v36 = vld [vmem:[%s10489_s1 + $0x18] sm:$0xff]  ;;  %vm1143_vm7 = vcmask 1039360   ;;  %vm1312_vm8 = vcmask 908288  }
   0xe   : > { %v290_v1 = vld [vmem:[%s9472_s26 + $0x8] sm:$0xff]  ;;  %v289_v2 = vld [vmem:[%s9472_s26] sm:$0xff]  ;;  %9376 = vset.pattern.permute.xlu1 %v9413_v12  ;;  %v8817_v53 = vld [vmem:[%s10489_s1 + $0x30] sm:$0xff]  ;;  %vm1481_vm9 = vcmask 900096   ;;  %vm1650_vm10 = vcmask 891904   ;;  %vm252_vm11 = vcmask 1048424  }
   0xf   : > { %302 = vrot.lane.b32.xlu0 %v290_v1, %s9404_s27  ;;  %298 = vrot.lane.b32.xlu1 %v289_v2, %s9404_s27  ;;  %v296_v3 = vcombine.high %v289_v2, %v289_v2  ;;  %v9489_v4 = vld [vmem:[%s9472_s26 + $0x4] sm:$0xff]  ;;  %v631_v5 = vcombine.high %v290_v1, %v290_v1  ;;  %v1131_v7 = vld [vmem:[%s9472_s26 + $0xc] sm:$0xf]  ;;  %253 = vst.msk [vmem:[#allocation2] sm:$0xff] %vm252_vm11, %v9403_v0  ;;  %256 = vst.msk [vmem:[#allocation3] sm:$0xff] %vm252_vm11, %v9403_v0  ;;  %vm254_vm12 = vcmask 400640  }
  0x10   : > { %v9497_v6 = vcombine.high %v9489_v4, %v9489_v4  ;;  %v1300_v8 = vld [vmem:[%s9472_s26 + $0xc] sm:$0xf]  ;;  %v9591_v40 = vld [vmem:[%s10489_s1 + $0x20] sm:$0xff]  ;;  %v8823_v61 = vld [vmem:[%s10489_s1 + $0x38] sm:$0xff]  ;;  %258 = vst.msk [vmem:[#allocation4] sm:$0xff] %vm252_vm11, %v9403_v0  ;;  %s9335_s25 = smul.u32 48, %s10496_s22 }
  0x11   : > { %v1469_v9 = vld [vmem:[%s9472_s26 + $0xc] sm:$0xf]  ;;  %260 = vst.msk [vmem:[#allocation5] sm:$0xff] %vm252_vm11, %v9403_v0  ;;  %vm1829_vm11 = vcmask 261120  }
  0x12   : > { %v1638_v10 = vld [vmem:[%s9472_s26 + $0xc] sm:$0xf]  ;;  %255 = vst.msk [vmem:[#allocation2 + $0x18] sm:$0xff] %vm254_vm12, %v9403_v0  ;;  %257 = vst.msk [vmem:[#allocation3 + $0x18] sm:$0xff] %vm254_vm12, %v9403_v0  ;;  %s251_s13 = scalar_lea.vmem %s10494_s6, %s9335_s25 }
  0x13   : > { %466 = vrot.lane.b32.xlu0 %v290_v1, %s9405_s28  ;;  %462 = vrot.lane.b32.xlu1 %v289_v2, %s9405_s28  ;;  %v9609_v45 = vld [vmem:[%s10489_s1 + $0x28] sm:$0xff]  ;;  %259 = vst.msk [vmem:[#allocation4 + $0x18] sm:$0xff] %vm254_vm12, %v9403_v0  ;;  %261 = vst.msk [vmem:[#allocation5 + $0x18] sm:$0xff] %vm254_vm12, %v9403_v0 }
  0x14   : > { %263 = vst.msk [vmem:[#allocation6 + $0x18] sm:$0xff] %vm254_vm12, %v9403_v0  ;;  %vm1856_vm12 = vcmask 64512  }
  0x17   : > { %464 = vrot.lane.b32.xlu1 %v296_v3, %s9405_s28  ;;  %300 = vrot.lane.b32.xlu0 %v296_v3, %s9404_s27 }
  0x1b   : > { %636 = vrot.lane.b32.xlu1 %v290_v1, %s9406_s29  ;;  %634 = vrot.lane.b32.xlu0 %v296_v3, %s9406_s29 }
  0x1f   : > { %807 = vrot.lane.b32.xlu1 %v296_v3, %s9407_s30  ;;  %632 = vrot.lane.b32.xlu0 %v289_v2, %s9406_s29 }
  0x23   : > { %805 = vrot.lane.b32.xlu1 %v289_v2, %s9407_s30  ;;  %809 = vrot.lane.b32.xlu0 %v290_v1, %s9407_s30  ;;  %v971_v2 = vld [vmem:[%s9472_s26 + $0xc] sm:$0xf] }
  0x27   : > { %1139 = vrot.lane.b32.xlu1 %v9497_v6, %s9409_s7  ;;  %304 = vrot.lane.b32.xlu0 %v631_v5, %s9404_s27 }
  0x2b   : > { %1137 = vrot.lane.b32.xlu1 %v9489_v4, %s9409_s7  ;;  %1141 = vrot.lane.b32.xlu0 %v1131_v7, %s9409_s7  ;;  %v8829_v7 = vld [vmem:[%s10489_s1 + $0x40] sm:$0xff] }
  0x2f   : > { %1308 = vrot.lane.b32.xlu1 %v9497_v6, %s9410_s8  ;;  %468 = vrot.lane.b32.xlu0 %v631_v5, %s9405_s28 }
  0x33   : > { %1306 = vrot.lane.b32.xlu1 %v9489_v4, %s9410_s8  ;;  %1310 = vrot.lane.b32.xlu0 %v1300_v8, %s9410_s8  ;;  %v1831_v8 = vld [vmem:[#allocation2] sm:$0xff] }
  0x37   : > { %1477 = vrot.lane.b32.xlu1 %v9497_v6, %s9411_s9  ;;  %638 = vrot.lane.b32.xlu0 %v631_v5, %s9406_s29 }
  0x3b   : > { %1475 = vrot.lane.b32.xlu1 %v9489_v4, %s9411_s9  ;;  %1479 = vrot.lane.b32.xlu0 %v1469_v9, %s9411_s9 }
  0x3f   : > { %1646 = vrot.lane.b32.xlu1 %v9497_v6, %s9412_s10  ;;  %811 = vrot.lane.b32.xlu0 %v631_v5, %s9407_s30 }
  0x43   : > { %1644 = vrot.lane.b32.xlu1 %v9489_v4, %s9412_s10  ;;  %1648 = vrot.lane.b32.xlu0 %v1638_v10, %s9412_s10 }
  0x47   : > { %1809 = vperm.xlu0 %9370, %v9530_v11   ;;  %2001 = vrot.lane.b32.xlu1 %v1831_v8, %s9405_s28 }
  0x4b   : > { %1842 = vrot.lane.b32.xlu0 %v1831_v8, %s9404_s27  ;;  %2324 = vrot.lane.b32.xlu1 %v1831_v8, %s9407_s30 }
  0x4f   : > { %2161 = vrot.lane.b32.xlu0 %v1831_v8, %s9406_s29 }
  0x81   : > { %v303_v13 = vpop.permute.xlu0 %302  ;;  %v299_v14 = vpop.permute.xlu1 %298 }
  0x85   : > { %v9535_v15 = vpop.permute.xlu0 %466  ;;  %v463_v16 = vpop.permute.xlu1 %462 }
  0x89   : > { %v465_v17 = vpop.permute.xlu1 %464  ;;  %v301_v18 = vpop.permute.xlu0 %300 }
  0x8a   : > { %v308_v19 = vsel %vm306_vm1, %v301_v18, %v303_v13  ;;  %v307_v20 = vsel %vm306_vm1, %v299_v14, %v301_v18  ;;  %v471_v22 = vsel %vm470_vm3, %v463_v16, %v465_v17  ;;  %v472_v23 = vsel %vm470_vm3, %v465_v17, %v9535_v15 }
  0x8b   : > { %8783 = vmatprep.subr.msk.mxu0 %vm314_vm2, %v308_v19  ;;  %v264_v17 = vlaneseq }
  0x8c   : > { %8784 = vmatpush1.msk.msra.mxu0 %vm314_vm2, %v307_v20 }
  0x8d   : > { %v9547_v24 = vpop.permute.xlu1 %636  ;;  %8785 = vmatmul.mubr.msk.f32.vlgmr.msra.gmra.mxu0 %vm310_vm4, %v8782_v21  ;;  %8788 = vmatprep.subr.msk.mxu0 %vm314_vm2, %v472_v23  ;;  %v635_v25 = vpop.permute.xlu0 %634  ;;  %v265_v20 = vand.u32 127, %v264_v17 }
  0x8e   : > { %8789 = vmatpush1.msk.msra.mxu0 %vm314_vm2, %v471_v22  ;;  %v642_v26 = vsel %vm640_vm5, %v635_v25, %v9547_v24  ;;  %547 = vmatprep.mubr.f32.mxu0 %v9403_v0 }
  0x8f   : > { %8794 = vmatprep.subr.msk.mxu0 %vm314_vm2, %v642_v26  ;;  %v268_v26 = vcvt.s32.f32 %v265_v20 }
  0x91   : > { %v808_v28 = vpop.permute.xlu1 %807  ;;  %8790 = vmatmul.mubr.msk.f32.vlgmr.msra.gmra.mxu0 %vm310_vm4, %v291_v27  ;;  %v633_v29 = vpop.permute.xlu0 %632 }
  0x92   : > { %v641_v30 = vsel %vm640_vm5, %v633_v29, %v635_v25  ;;  %717 = vmatprep.mubr.f32.mxu0 %v9403_v0 }
  0x93   : > { %8795 = vmatpush1.msk.msra.mxu0 %vm314_vm2, %v641_v30 }
  0x95   : > { %v806_v32 = vpop.permute.xlu1 %805  ;;  %8796 = vmatmul.mubr.msk.f32.vlgmr.msra.gmra.mxu0 %vm310_vm4, %v8793_v31  ;;  %v9567_v33 = vpop.permute.xlu0 %809 }
  0x96   : > { %v814_v34 = vsel %vm813_vm6, %v806_v32, %v808_v28  ;;  %v815_v35 = vsel %vm813_vm6, %v808_v28, %v9567_v33  ;;  %890 = vmatprep.mubr.f32.mxu0 %v9403_v0  ;;  %v271_v32 = vmul.f32 0.055555556, %v268_v26 }
  0x97   : > { %8800 = vmatprep.subr.msk.mxu0 %vm314_vm2, %v815_v35 }
  0x98   : > { %8801 = vmatpush1.msk.msra.mxu0 %vm314_vm2, %v814_v34 }
  0x99   : > { %v1140_v37 = vpop.permute.xlu1 %1139  ;;  %8802 = vmatmul.mubr.msk.f32.vlgmr.msra.gmra.mxu0 %vm310_vm4, %v9576_v36  ;;  %v305_v38 = vpop.permute.xlu0 %304  ;;  %8806 = vmatprep.subr.msk.mxu0 %vm314_vm2, %v9497_v6 }
  0x9a   : > { %v309_v39 = vsel %vm306_vm1, %v303_v13, %v305_v38  ;;  %8807 = vmatpush1.msk.msra.mxu0 %vm314_vm2, %v9489_v4  ;;  %1050 = vmatprep.mubr.f32.mxu0 %v9403_v0  ;;  %v274_v38 = vadd.f32 0.0001, %v271_v32 }
  0x9b   : > { %9081 = vmatpush3.msk.msra.mxu1 %vm314_vm2, %v309_v39 }
  0x9c   : > { %9085 = vmatprep.subr.mxu1 %v9403_v0  ;;  %9083 = vmatmul.mubr.msk.f32.vlgmr.msra.gmra.mxu1 %vm310_vm4, %v8782_v21 }
  0x9d   : > { %v1138_v41 = vpop.permute.xlu1 %1137  ;;  %8808 = vmatmul.mubr.msk.f32.vlgmr.msra.gmra.mxu0 %vm310_vm4, %v9591_v40  ;;  %v9598_v42 = vpop.permute.xlu0 %1141  ;;  %9087 = vmatprep.mubr.msk.f32.mxu1 %vm9408_vm0, %v9403_v0 }
  0x9e   : > { %v1144_v43 = vsel %vm1143_vm7, %v1138_v41, %v1140_v37  ;;  %v1145_v44 = vsel %vm1143_vm7, %v1140_v37, %v9598_v42  ;;  %1219 = vmatprep.mubr.f32.mxu0 %v9403_v0 }
  0x9f   : > { %8812 = vmatprep.subr.msk.mxu0 %vm314_vm2, %v1145_v44 }
  0xa0   : > { %8813 = vmatpush1.msk.msra.mxu0 %vm314_vm2, %v1144_v43  ;;  %v267_v43 = vadd.s32 256, %v265_v20 }
  0xa1   : > { %v1309_v46 = vpop.permute.xlu1 %1308  ;;  %8814 = vmatmul.mubr.msk.f32.vlgmr.msra.gmra.mxu0 %vm310_vm4, %v9609_v45  ;;  %v469_v47 = vpop.permute.xlu0 %468 }
  0xa2   : > { %v473_v48 = vsel %vm470_vm3, %v9535_v15, %v469_v47  ;;  %1388 = vmatprep.mubr.f32.mxu0 %v9403_v0 }
  0xa3   : > { %9086 = vmatpush3.msk.msra.mxu1 %vm314_vm2, %v473_v48 }
  0xa4   : > { %9088 = vmatmul.mubr.msk.f32.vlgmr.msra.gmra.mxu1 %vm310_vm4, %v291_v27  ;;  %9090 = vmatprep.subr.mxu1 %v9403_v0 }
  0xa5   : > { %v1307_v49 = vpop.permute.xlu1 %1306  ;;  %v1311_v50 = vpop.permute.xlu0 %1310  ;;  %9092 = vmatprep.mubr.msk.f32.mxu1 %vm9408_vm0, %v9403_v0 }
  0xa6   : > { %v1313_v51 = vsel %vm1312_vm8, %v1307_v49, %v1309_v46  ;;  %v1314_v52 = vsel %vm1312_vm8, %v1309_v46, %v1311_v50 }
  0xa7   : > { %8818 = vmatprep.subr.msk.mxu0 %vm314_vm2, %v1314_v52 }
  0xa8   : > { %8819 = vmatpush1.msk.msra.mxu0 %vm314_vm2, %v1313_v51 }
  0xa9   : > { %v1478_v54 = vpop.permute.xlu1 %1477  ;;  %8820 = vmatmul.mubr.msk.f32.vlgmr.msra.gmra.mxu0 %vm310_vm4, %v8817_v53  ;;  %v639_v55 = vpop.permute.xlu0 %638 }
  0xaa   : > { %v643_v56 = vsel %vm640_vm5, %v9547_v24, %v639_v55  ;;  %1557 = vmatprep.mubr.f32.mxu0 %v9403_v0  ;;  %v266_v24 = vadd.s32 128, %v265_v20 }
  0xab   : > { %9091 = vmatpush3.msk.msra.mxu1 %vm314_vm2, %v643_v56 }
  0xac   : > { %9093 = vmatmul.mubr.msk.f32.vlgmr.msra.gmra.mxu1 %vm310_vm4, %v8793_v31  ;;  %9095 = vmatprep.subr.mxu1 %v9403_v0  ;;  %v269_v28 = vcvt.s32.f32 %v266_v24 }
  0xad   : > { %v1476_v57 = vpop.permute.xlu1 %1475  ;;  %v1480_v58 = vpop.permute.xlu0 %1479  ;;  %9097 = vmatprep.mubr.msk.f32.mxu1 %vm9408_vm0, %v9403_v0 }
  0xae   : > { %v1482_v59 = vsel %vm1481_vm9, %v1476_v57, %v1478_v54  ;;  %v1483_v60 = vsel %vm1481_vm9, %v1478_v54, %v1480_v58  ;;  %v272_v35 = vmul.f32 0.055555556, %v269_v28 }
  0xaf   : > { %8824 = vmatprep.subr.msk.mxu0 %vm314_vm2, %v1483_v60 }
  0xb0   : > { %8825 = vmatpush1.msk.msra.mxu0 %vm314_vm2, %v1482_v59 }
  0xb1   : > { %v1647_v62 = vpop.permute.xlu1 %1646  ;;  %8826 = vmatmul.mubr.msk.f32.vlgmr.msra.gmra.mxu0 %vm310_vm4, %v8823_v61  ;;  %v812_v63 = vpop.permute.xlu0 %811 }
  0xb2   : > { %v816_v1 = vsel %vm813_vm6, %v9567_v33, %v812_v63  ;;  %1726 = vmatprep.mubr.f32.mxu0 %v9403_v0 }
  0xb3   : > { %9096 = vmatpush3.msk.msra.mxu1 %vm314_vm2, %v816_v1 }
  0xb4   : > { %9098 = vmatmul.mubr.msk.f32.vlgmr.msra.gmra.mxu1 %vm310_vm4, %v9576_v36  ;;  %9100 = vmatprep.subr.mxu1 %v9403_v0 }
  0xb5   : > { %v1645_v3 = vpop.permute.xlu1 %1644  ;;  %v1649_v4 = vpop.permute.xlu0 %1648  ;;  %9101 = vmatpush3.msk.msra.mxu1 %vm314_vm2, %v971_v2  ;;  %9102 = vmatprep.mubr.msk.f32.mxu1 %vm9408_vm0, %v9403_v0 }
  0xb6   : > { %v1651_v5 = vsel %vm1650_vm10, %v1645_v3, %v1647_v62  ;;  %9105 = vmatprep.subr.mxu1 %v9403_v0  ;;  %v1652_v6 = vsel %vm1650_vm10, %v1647_v62, %v1649_v4 }
  0xb7   : > { %8830 = vmatprep.subr.msk.mxu0 %vm314_vm2, %v1652_v6 }
  0xb8   : > { %9103 = vmatmul.mubr.msk.f32.vlgmr.msra.gmra.mxu1 %vm310_vm4, %v9591_v40  ;;  %8831 = vmatpush1.msk.msra.mxu0 %vm314_vm2, %v1651_v5  ;;  %v275_v40 = vadd.f32 0.0001, %v272_v35 }
  0xb9   : > { %9106 = vmatpush3.msk.msra.mxu1 %vm314_vm2, %v9598_v42  ;;  %8832 = vmatmul.mubr.msk.f32.vlgmr.msra.gmra.mxu0 %vm310_vm4, %v8829_v7 }
  0xba   : > { %9107 = vmatprep.mubr.msk.f32.mxu1 %vm9408_vm0, %v9403_v0  ;;  %9110 = vmatprep.subr.mxu1 %v9403_v0  ;;  %v9338_v48 = vtrunc.f32 %v275_v40 }
  0xbb   : > { %1924 = vmatprep.mubr.f32.mxu0 %v9403_v0 }
  0xbc   : > { %9108 = vmatmul.mubr.msk.f32.vlgmr.msra.gmra.mxu1 %vm310_vm4, %v9609_v45  ;;  %v9336_v45 = vtrunc.f32 %v274_v38  ;;  %v9339_v55 = vcvt.f32.s32 %v9338_v48 }
  0xbd   : > { %9111 = vmatpush3.msk.msra.mxu1 %vm314_vm2, %v1311_v50  ;;  %9112 = vmatprep.mubr.msk.f32.mxu1 %vm9408_vm0, %v9403_v0  ;;  %v270_v50 = vcvt.s32.f32 %v267_v43 }
  0xbe   : > { %9115 = vmatprep.subr.mxu1 %v9403_v0  ;;  %v9337_v52 = vcvt.f32.s32 %v9336_v45  ;;  %v281_v63 = vmul.u32 18, %v9339_v55 }
  0xc0   : > { %9113 = vmatmul.mubr.msk.f32.vlgmr.msra.gmra.mxu1 %vm310_vm4, %v8817_v53  ;;  %v280_v59 = vmul.u32 18, %v9337_v52 }
  0xc1   : > { %9116 = vmatpush3.msk.msra.mxu1 %vm314_vm2, %v1480_v58  ;;  %9117 = vmatprep.mubr.msk.f32.mxu1 %vm9408_vm0, %v9403_v0  ;;  %v273_v58 = vmul.f32 0.055555556, %v270_v50 }
  0xc2   : > { %9120 = vmatprep.subr.mxu1 %v9403_v0  ;;  %v9707_v6 = vsub.s32 %v265_v20, %v280_v59 }
  0xc4   : > { %9118 = vmatmul.mubr.msk.f32.vlgmr.msra.gmra.mxu1 %vm310_vm4, %v8823_v61  ;;  %vm286_vm13 = vcmp.lt.s32.totalorder %v9707_v6, 16 }
  0xc5   : > { %9121 = vmatpush3.msk.msra.mxu1 %vm314_vm2, %v1649_v4  ;;  %9122 = vmatprep.mubr.msk.f32.mxu1 %vm9408_vm0, %v9403_v0  ;;  %v276_v4 = vadd.f32 0.0001, %v273_v58 }
  0xc6   : > { %9125 = vmatprep.subr.mxu1 %v9403_v0 }
  0xc8   : > { %9123 = vmatmul.mubr.msk.f32.vlgmr.msra.gmra.mxu1 %vm310_vm4, %v8829_v7  ;;  %v1810_v7 = vpop.permute.xlu0 %1809 }
  0xc9   : > { %9127 = vmatprep.mubr.msk.f32.mxu1 %vm9408_vm0, %v9403_v0 }
  0xcc   : > { %v1843_v52 = vpop.permute.xlu0 %1842 }
 0x14d   : > { %v387_v9 = vpop.f32.mrf.mxu0 }
 0x14f   : > { %v389_v10 = vpop.f32.mrf.mxu0 }
 0x151   : > { %v549_v13 = vpop.f32.mrf.mxu0 }
 0x152   : > { %v550_v27 = vadd.f32 %v549_v13, %v387_v9 }
 0x153   : > { %v551_v14 = vpop.f32.mrf.mxu0 }
 0x154   : > { %v552_v29 = vadd.f32 %v551_v14, %v389_v10 }
 0x155   : > { %v719_v15 = vpop.f32.mrf.mxu0 }
 0x156   : > { %v794_v33 = vadd.f32 %v719_v15, %v550_v27  ;;  %v9709_v15 = vsub.s32 %v266_v24, %v281_v63 }
 0x157   : > { %v721_v16 = vpop.f32.mrf.mxu0 }
 0x158   : > { %v795_v36 = vadd.f32 %v721_v16, %v552_v29  ;;  %vm287_vm14 = vcmp.lt.s32.totalorder %v9709_v15, 16 }
 0x159   : > { %v892_v18 = vpop.f32.mrf.mxu0 }
 0x15a   : > { %v967_v39 = vadd.f32 %v892_v18, %v794_v33 }
 0x15b   : > { %v894_v19 = vpop.f32.mrf.mxu0 }
 0x15c   : > { %v458_v21 = vpop.f32.mrf.mxu1  ;;  %v968_v41 = vadd.f32 %v894_v19, %v795_v36  ;;  %v9340_v19 = vtrunc.f32 %v276_v4 }
 0x15d   : > { %v1052_v22 = vpop.f32.mrf.mxu0 }
 0x15e   : > { %v9084_v23 = vpop.f32.mrf.mxu1  ;;  %v1127_v46 = vadd.f32 %v1052_v22, %v967_v39  ;;  %v9341_v28 = vcvt.f32.s32 %v9340_v19 }
 0x15f   : > { %v1054_v25 = vpop.f32.mrf.mxu0 }
 0x160   : > { %v1128_v49 = vadd.f32 %v1054_v25, %v968_v41 }
 0x161   : > { %v1221_v31 = vpop.f32.mrf.mxu0 }
 0x162   : > { %v1296_v53 = vadd.f32 %v1221_v31, %v1127_v46 }
 0x163   : > { %v1223_v37 = vpop.f32.mrf.mxu0 }
 0x164   : > { %v620_v30 = vpop.f32.mrf.mxu1  ;;  %v1297_v56 = vadd.f32 %v1223_v37, %v1128_v49 }
 0x165   : > { %v621_v13 = vadd.f32 %v620_v30, %v458_v21 }
 0x166   : > { %v9089_v34 = vpop.f32.mrf.mxu1 }
 0x167   : > { %v282_v34 = vmul.u32 18, %v9341_v28  ;;  %v8846_v28 = vld [vmem:[%s10490_s2 + $0x20] sm:$0xff] }
 0x169   : > { %v1390_v44 = vpop.f32.mrf.mxu0  ;;  %v9729_v38 = vsub.s32 %v267_v43, %v282_v34  ;;  %v9414_v43 = vmov 1   ;;  %v8852_v34 = vld [vmem:[%s10490_s2 + $0x30] sm:$0xff] }
 0x16a   : > { %v1465_v60 = vadd.f32 %v1390_v44, %v1296_v53  ;;  %9371 = vset.pattern.permute.xlu0 %v9414_v43 }
 0x16b   : > { %v1392_v51 = vpop.f32.mrf.mxu0  ;;  %vm288_vm15 = vcmp.lt.s32.totalorder %v9729_v38, 16 }
 0x16c   : > { %v790_v42 = vpop.f32.mrf.mxu1  ;;  %v1466_v1 = vadd.f32 %v1392_v51, %v1297_v56  ;;  %v8835_v56 = vld [vmem:[%s10490_s2 + $0x8] sm:$0xff] }
 0x16d   : > { %v796_v22 = vadd.f32 %v790_v42, %v621_v13  ;;  %v8840_v13 = vld [vmem:[%s10490_s2 + $0x10] sm:$0xff] }
 0x16e   : > { %v9094_v47 = vpop.f32.mrf.mxu1 }
 0x16f   : > { %v2002_v47 = vpop.permute.xlu1 %2001 }
 0x171   : > { %v1559_v54 = vpop.f32.mrf.mxu0 }
 0x172   : > { %v1634_v2 = vadd.f32 %v1559_v54, %v1465_v60 }
 0x173   : > { %v1561_v62 = vpop.f32.mrf.mxu0  ;;  %v2325_v48 = vpop.permute.xlu1 %2324 }
 0x174   : > { %v963_v57 = vpop.f32.mrf.mxu1  ;;  %v1635_v8 = vadd.f32 %v1561_v62, %v1466_v1  ;;  %v1835_v1 = vld [vmem:[%s10490_s2] sm:$0xff] }
 0x175   : > { %v969_v26 = vadd.f32 %v963_v57, %v796_v22  ;;  %v8843_v22 = vld [vmem:[%s10490_s2 + $0x18] sm:$0xff] }
 0x176   : > { %v9099_v61 = vpop.f32.mrf.mxu1 }
 0x178   : > { %v1123_v3 = vpop.f32.mrf.mxu1 }
 0x179   : > { %v1728_v5 = vpop.f32.mrf.mxu0  ;;  %v1129_v29 = vadd.f32 %v1123_v3, %v969_v26 }
 0x17a   : > { %v1803_v9 = vadd.f32 %v1728_v5, %v1634_v2  ;;  %v9104_v10 = vpop.f32.mrf.mxu1 }
 0x17b   : > { %v1730_v14 = vpop.f32.mrf.mxu0 }
 0x17c   : > { %v1804_v16 = vadd.f32 %v1730_v14, %v1635_v8  ;;  %v9711_v17 = vadd.f32 %v1810_v7, %v1803_v9  ;;  %v1292_v18 = vpop.f32.mrf.mxu1 }
 0x17d   : > { %v1298_v32 = vadd.f32 %v1292_v18, %v1129_v29  ;;  %v8849_v29 = vld [vmem:[%s10490_s2 + $0x28] sm:$0xff] }
 0x17e   : > { %v9714_v23 = vadd.f32 %v1810_v7, %v1804_v16  ;;  %v1815_v20 = vmax.f32 %v9711_v17, 0.0  ;;  %v9109_v25 = vpop.f32.mrf.mxu1 }
 0x180   : > { %v1816_v21 = vmax.f32 %v9714_v23, 0.0  ;;  %v1824_v24 = vsel %vm286_vm13, %v1815_v20, 0.0  ;;  %v1461_v27 = vpop.f32.mrf.mxu1 }
 0x181   : > { %1827 = vst [vmem:[#allocation2 + $0x8] sm:$0xff] %v1824_v24  ;;  %1844 = vrot.lane.b32.xlu1 %v1824_v24, %s9404_s27  ;;  %v1467_v35 = vadd.f32 %v1461_v27, %v1298_v32 }
 0x182   : > { %v1825_v30 = vsel %vm287_vm14, %v1816_v21, 0.0  ;;  %v9114_v31 = vpop.f32.mrf.mxu1 }
 0x183   : > { %1828 = vst [vmem:[#allocation2 + $0x10] sm:$0xff] %v1825_v30 }
 0x184   : > { %v1630_v33 = vpop.f32.mrf.mxu1 }
 0x185   : > { %2003 = vrot.lane.b32.xlu1 %v1824_v24, %s9405_s28  ;;  %v1636_v37 = vadd.f32 %v1630_v33, %v1467_v35 }
 0x186   : > { %v9119_v36 = vpop.f32.mrf.mxu1 }
 0x188   : > { %v1799_v39 = vpop.f32.mrf.mxu1 }
 0x189   : > { %v1805_v40 = vadd.f32 %v1799_v39, %v1636_v37  ;;  %2326 = vrot.lane.b32.xlu1 %v1824_v24, %s9407_s30  ;;  %v8855_v39 = vld [vmem:[%s10490_s2 + $0x38] sm:$0xff] }
 0x18a   : > { %v9124_v41 = vpop.f32.mrf.mxu1 }
 0x18b   : > { %v1814_v42 = vadd.f32 %v1810_v7, %v1805_v40 }
 0x18d   : > { %v1817_v44 = vmax.f32 %v1814_v42, 0.0  ;;  %1846 = vrot.lane.b32.xlu1 %v1825_v30, %s9404_s27 }
 0x18f   : > { %v1826_v45 = vsel %vm288_vm15, %v1817_v44, 0.0  ;;  %v8858_v44 = vld [vmem:[%s10490_s2 + $0x40] sm:$0xff] }
 0x190   : > { %1830 = vst.msk [vmem:[#allocation2 + $0x18] sm:$0xff] %vm1829_vm11, %v1826_v45 }
 0x197   : > { %v9737_v46 = vld [vmem:[#allocation2 + $0x18] sm:$0xff] }
 0x198   : > { %1848 = vrot.lane.b32.xlu0 %v9737_v46, %s9404_s27  ;;  %2007 = vrot.lane.b32.xlu1 %v9737_v46, %s9405_s28 }
 0x19c   : > { %2163 = vrot.lane.b32.xlu0 %v1824_v24, %s9406_s29  ;;  %2165 = vrot.lane.b32.xlu1 %v1825_v30, %s9406_s29 }
 0x1a0   : > { %2005 = vrot.lane.b32.xlu0 %v1825_v30, %s9405_s28  ;;  %2640 = vrot.lane.b32.xlu1 %v9737_v46, %s9409_s7 }
 0x1a4   : > { %2636 = vrot.lane.b32.xlu0 %v1824_v24, %s9409_s7  ;;  %2167 = vrot.lane.b32.xlu1 %v9737_v46, %s9406_s29 }
 0x1a8   : > { %2796 = vrot.lane.b32.xlu0 %v1824_v24, %s9410_s8  ;;  %2800 = vrot.lane.b32.xlu1 %v9737_v46, %s9410_s8 }
 0x1ac   : > { %2328 = vrot.lane.b32.xlu0 %v1825_v30, %s9407_s30  ;;  %2330 = vrot.lane.b32.xlu1 %v9737_v46, %s9407_s30 }
 0x1b0   : > { %2956 = vrot.lane.b32.xlu0 %v1824_v24, %s9411_s9  ;;  %2960 = vrot.lane.b32.xlu1 %v9737_v46, %s9411_s9 }
 0x1b4   : > { %2638 = vrot.lane.b32.xlu0 %v1825_v30, %s9409_s7  ;;  %3118 = vrot.lane.b32.xlu1 %v1825_v30, %s9412_s10 }
 0x1b8   : > { %2798 = vrot.lane.b32.xlu0 %v1825_v30, %s9410_s8  ;;  %3116 = vrot.lane.b32.xlu1 %v1824_v24, %s9412_s10 }
 0x1bc   : > { %2958 = vrot.lane.b32.xlu0 %v1825_v30, %s9411_s9 }
 0x1c0   : > { %3120 = vrot.lane.b32.xlu0 %v9737_v46, %s9412_s10 }
 0x1c4   : > { %3277 = vperm.xlu0 %9371, %v9530_v11   ;;  %v2162_v11 = vpop.permute.xlu0 %2161 }
 0x1f3   : > { %v1845_v49 = vpop.permute.xlu1 %1844 }
 0x1f4   : > { %v1850_v55 = vsel %vm306_vm1, %v1843_v52, %v1845_v49 }
 0x1f7   : > { %v2004_v50 = vpop.permute.xlu1 %2003 }
 0x1f8   : > { %v2009_v4 = vsel %vm470_vm3, %v2002_v47, %v2004_v50 }
 0x1fb   : > { %v2327_v51 = vpop.permute.xlu1 %2326 }
 0x1fc   : > { %v2332_v24 = vsel %vm813_vm6, %v2325_v48, %v2327_v51 }
 0x1ff   : > { %v1847_v53 = vpop.permute.xlu1 %1846 }
 0x200   : > { %v1851_v54 = vsel %vm306_vm1, %v1845_v49, %v1847_v53 }
 0x201   : > { %1890 = vmatprep.subr.mxu0 %v1851_v54 }
 0x202   : > { %1891 = vmatpush1.msra.mxu0 %v1850_v55 }
 0x203   : > { %8836 = vmatmul.mubr.msk.f32.vlgmr.msra.gmra.mxu0 %vm1856_vm12, %v8835_v56 }
 0x204   : > { %2082 = vmatprep.mubr.f32.mxu0 %v9403_v0 }
 0x20a   : > { %v1849_v57 = vpop.permute.xlu0 %1848  ;;  %v2008_v58 = vpop.permute.xlu1 %2007 }
 0x20b   : > { %v1852_v59 = vsel %vm306_vm1, %v1847_v53, %v1849_v57 }
 0x20c   : > { %9126 = vmatpush3.msra.mxu1 %v1852_v59 }
 0x20d   : > { %9128 = vmatmul.mubr.msk.f32.vlgmr.msra.gmra.mxu1 %vm1856_vm12, %v8835_v56  ;;  %9130 = vmatprep.subr.mxu1 %v9403_v0 }
 0x20e   : > { %v2164_v60 = vpop.permute.xlu0 %2163  ;;  %v2166_v61 = vpop.permute.xlu1 %2165  ;;  %9132 = vmatprep.mubr.msk.f32.mxu1 %vm9408_vm0, %v9403_v0 }
 0x20f   : > { %v2170_v5 = vsel %vm640_vm5, %v2164_v60, %v2166_v61  ;;  %v2169_v9 = vsel %vm640_vm5, %v2162_v11, %v2164_v60 }
 0x212   : > { %v2006_v62 = vpop.permute.xlu0 %2005  ;;  %v2641_v63 = vpop.permute.xlu1 %2640 }
 0x213   : > { %v2010_v2 = vsel %vm470_vm3, %v2004_v50, %v2006_v62  ;;  %v2011_v3 = vsel %vm470_vm3, %v2006_v62, %v2008_v58 }
 0x214   : > { %2048 = vmatprep.subr.mxu0 %v2010_v2  ;;  %9131 = vmatpush3.msra.mxu1 %v2011_v3 }
 0x215   : > { %2049 = vmatpush1.msra.mxu0 %v2009_v4  ;;  %9133 = vmatmul.mubr.msk.f32.vlgmr.msra.gmra.mxu1 %vm1856_vm12, %v1835_v1 }
 0x216   : > { %8838 = vmatmul.mubr.msk.f32.vlgmr.msra.gmra.mxu0 %vm1856_vm12, %v1835_v1  ;;  %2208 = vmatprep.subr.mxu0 %v2170_v5  ;;  %v2637_v7 = vpop.permute.xlu0 %2636  ;;  %v2168_v8 = vpop.permute.xlu1 %2167 }
 0x217   : > { %v2171_v10 = vsel %vm640_vm5, %v2166_v61, %v2168_v8  ;;  %2209 = vmatpush1.msra.mxu0 %v2169_v9  ;;  %9135 = vmatprep.subr.mxu1 %v9403_v0 }
 0x218   : > { %2242 = vmatprep.mubr.f32.mxu0 %v9403_v0  ;;  %9136 = vmatpush3.msra.mxu1 %v2171_v10 }
 0x219   : > { %9137 = vmatprep.mubr.msk.f32.mxu1 %vm9408_vm0, %v9403_v0  ;;  %9140 = vmatprep.subr.mxu1 %v9403_v0 }
 0x21a   : > { %8841 = vmatmul.mubr.msk.f32.vlgmr.msra.gmra.mxu0 %vm1856_vm12, %v8840_v13  ;;  %9138 = vmatmul.mubr.msk.f32.vlgmr.msra.gmra.mxu1 %vm1856_vm12, %v8840_v13  ;;  %v2797_v14 = vpop.permute.xlu0 %2796  ;;  %v2801_v16 = vpop.permute.xlu1 %2800 }
 0x21b   : > { %2405 = vmatprep.mubr.f32.mxu0 %v9403_v0  ;;  %9142 = vmatprep.mubr.msk.f32.mxu1 %vm9408_vm0, %v9403_v0 }
 0x21e   : > { %v2329_v18 = vpop.permute.xlu0 %2328  ;;  %v2331_v19 = vpop.permute.xlu1 %2330 }
 0x21f   : > { %v2334_v25 = vsel %vm813_vm6, %v2329_v18, %v2331_v19  ;;  %v2333_v26 = vsel %vm813_vm6, %v2327_v51, %v2329_v18 }
 0x220   : > { %2371 = vmatprep.subr.mxu0 %v2333_v26  ;;  %9141 = vmatpush3.msra.mxu1 %v2334_v25 }
 0x221   : > { %2372 = vmatpush1.msra.mxu0 %v2332_v24  ;;  %9143 = vmatmul.mubr.msk.f32.vlgmr.msra.gmra.mxu1 %vm1856_vm12, %v8843_v22 }
 0x222   : > { %8844 = vmatmul.mubr.msk.f32.vlgmr.msra.gmra.mxu0 %vm1856_vm12, %v8843_v22  ;;  %9381 = vmatprep.subr.msk.mxu0 %vm287_vm14, %v1816_v21  ;;  %v2957_v27 = vpop.permute.xlu0 %2956  ;;  %v2961_v23 = vpop.permute.xlu1 %2960 }
 0x223   : > { %9145 = vmatprep.subr.mxu1 %v9403_v0  ;;  %9382 = vmatpush1.msk.msra.mxu0 %vm286_vm13, %v1815_v20 }
 0x224   : > { %9146 = vmatpush3.msra.mxu1 %v9737_v46  ;;  %2554 = vmatprep.mubr.f32.mxu0 %v9403_v0  ;;  %v3292_v46 = vld [vmem:[#allocation3] sm:$0xff] }
 0x225   : > { %9147 = vmatprep.mubr.msk.f32.mxu1 %vm9408_vm0, %v9403_v0  ;;  %9150 = vmatprep.subr.mxu1 %v9403_v0 }
 0x226   : > { %8847 = vmatmul.mubr.msk.f32.vlgmr.msra.gmra.mxu0 %vm1856_vm12, %v8846_v28  ;;  %9148 = vmatmul.mubr.msk.f32.vlgmr.msra.gmra.mxu1 %vm1856_vm12, %v8846_v28  ;;  %v2639_v17 = vpop.permute.xlu0 %2638  ;;  %v3119_v31 = vpop.permute.xlu1 %3118 }
 0x227   : > { %9151 = vmatpush3.msra.mxu1 %v2641_v63  ;;  %v2643_v20 = vsel %vm1143_vm7, %v2639_v17, %v2641_v63  ;;  %v2642_v21 = vsel %vm1143_vm7, %v2637_v7, %v2639_v17  ;;  %2714 = vmatprep.mubr.f32.mxu0 %v9403_v0 }
 0x228   : > { %2680 = vmatprep.subr.mxu0 %v2643_v20  ;;  %9152 = vmatprep.mubr.msk.f32.mxu1 %vm9408_vm0, %v9403_v0 }
 0x229   : > { %2681 = vmatpush1.msra.mxu0 %v2642_v21  ;;  %9155 = vmatprep.subr.mxu1 %v9403_v0 }
 0x22a   : > { %8850 = vmatmul.mubr.msk.f32.vlgmr.msra.gmra.mxu0 %vm1856_vm12, %v8849_v29  ;;  %9153 = vmatmul.mubr.msk.f32.vlgmr.msra.gmra.mxu1 %vm1856_vm12, %v8849_v29  ;;  %v2799_v30 = vpop.permute.xlu0 %2798  ;;  %v3117_v40 = vpop.permute.xlu1 %3116 }
 0x22b   : > { %9156 = vmatpush3.msra.mxu1 %v2801_v16  ;;  %v2803_v32 = vsel %vm1312_vm8, %v2799_v30, %v2801_v16  ;;  %v2802_v33 = vsel %vm1312_vm8, %v2797_v14, %v2799_v30  ;;  %2874 = vmatprep.mubr.f32.mxu0 %v9403_v0  ;;  %v3122_v45 = vsel %vm1650_vm10, %v3117_v40, %v3119_v31 }
 0x22c   : > { %2840 = vmatprep.subr.mxu0 %v2803_v32  ;;  %9157 = vmatprep.mubr.msk.f32.mxu1 %vm9408_vm0, %v9403_v0 }
 0x22d   : > { %2841 = vmatpush1.msra.mxu0 %v2802_v33  ;;  %9160 = vmatprep.subr.mxu1 %v9403_v0 }
 0x22e   : > { %8853 = vmatmul.mubr.msk.f32.vlgmr.msra.gmra.mxu0 %vm1856_vm12, %v8852_v34  ;;  %9158 = vmatmul.mubr.msk.f32.vlgmr.msra.gmra.mxu1 %vm1856_vm12, %v8852_v34  ;;  %v2959_v35 = vpop.permute.xlu0 %2958 }
 0x22f   : > { %9161 = vmatpush3.msra.mxu1 %v2961_v23  ;;  %v2963_v36 = vsel %vm1481_vm9, %v2959_v35, %v2961_v23  ;;  %v2962_v37 = vsel %vm1481_vm9, %v2957_v27, %v2959_v35  ;;  %3034 = vmatprep.mubr.f32.mxu0 %v9403_v0 }
 0x230   : > { %3000 = vmatprep.subr.mxu0 %v2963_v36  ;;  %9162 = vmatprep.mubr.msk.f32.mxu1 %vm9408_vm0, %v9403_v0 }
 0x231   : > { %3001 = vmatpush1.msra.mxu0 %v2962_v37  ;;  %9165 = vmatprep.subr.mxu1 %v9403_v0 }
 0x232   : > { %8856 = vmatmul.mubr.msk.f32.vlgmr.msra.gmra.mxu0 %vm1856_vm12, %v8855_v39  ;;  %9163 = vmatmul.mubr.msk.f32.vlgmr.msra.gmra.mxu1 %vm1856_vm12, %v8855_v39  ;;  %v3121_v41 = vpop.permute.xlu0 %3120 }
 0x233   : > { %9166 = vmatpush3.msra.mxu1 %v3121_v41  ;;  %v3123_v42 = vsel %vm1650_vm10, %v3119_v31, %v3121_v41  ;;  %3194 = vmatprep.mubr.f32.mxu0 %v9403_v0 }
 0x234   : > { %3160 = vmatprep.subr.mxu0 %v3123_v42  ;;  %9167 = vmatprep.mubr.msk.f32.mxu1 %vm9408_vm0, %v9403_v0 }
 0x235   : > { %3161 = vmatpush1.msra.mxu0 %v3122_v45  ;;  %9170 = vmatprep.subr.mxu1 %v9403_v0 }
 0x236   : > { %8859 = vmatmul.mubr.msk.f32.vlgmr.msra.gmra.mxu0 %vm1856_vm12, %v8858_v44  ;;  %9168 = vmatmul.mubr.msk.f32.vlgmr.msra.gmra.mxu1 %vm1856_vm12, %v8858_v44 }
 0x237   : > { %9172 = vmatprep.mubr.msk.f32.mxu1 %vm9408_vm0, %v9403_v0  ;;  %3385 = vmatprep.mubr.f32.mxu0 %v9403_v0 }
 0x238   : > { %3304 = vrot.lane.b32.xlu0 %v3292_v46, %s9404_s27  ;;  %3462 = vrot.lane.b32.xlu1 %v3292_v46, %s9405_s28 }
 0x23c   : > { %3622 = vrot.lane.b32.xlu0 %v3292_v46, %s9406_s29 }
 0x23f   : > { %v3278_v39 = vpop.permute.xlu0 %3277 }
 0x240   : > { %3785 = vrot.lane.b32.xlu0 %v3292_v46, %s9407_s30 }
 0x2c3   : > { %v1926_v47 = vpop.f32.mrf.mxu0 }
 0x2c5   : > { %v1928_v49 = vpop.f32.mrf.mxu0 }
 0x2cd   : > { %v1997_v43 = vpop.f32.mrf.mxu1 }
 0x2cf   : > { %v9129_v48 = vpop.f32.mrf.mxu1 }
 0x2d5   : > { %v2155_v50 = vpop.f32.mrf.mxu1 }
 0x2d6   : > { %v2084_v51 = vpop.f32.mrf.mxu0  ;;  %v2156_v5 = vadd.f32 %v2155_v50, %v1997_v43 }
 0x2d7   : > { %v9134_v52 = vpop.f32.mrf.mxu1  ;;  %v2085_v57 = vadd.f32 %v2084_v51, %v1926_v47 }
 0x2d8   : > { %v2086_v53 = vpop.f32.mrf.mxu0 }
 0x2d9   : > { %v2087_v62 = vadd.f32 %v2086_v53, %v1928_v49 }
 0x2da   : > { %v2244_v54 = vpop.f32.mrf.mxu0  ;;  %v2315_v55 = vpop.f32.mrf.mxu1 }
 0x2db   : > { %v2319_v63 = vadd.f32 %v2244_v54, %v2085_v57  ;;  %v2321_v13 = vadd.f32 %v2315_v55, %v2156_v5  ;;  %v9932_v57 = vld [vmem:[%s10491_s3] sm:$0xff] }
 0x2dc   : > { %v9139_v56 = vpop.f32.mrf.mxu1  ;;  %v2246_v11 = vpop.f32.mrf.mxu0 }
 0x2dd   : > { %v2320_v7 = vadd.f32 %v2246_v11, %v2087_v62  ;;  %v3463_v62 = vpop.permute.xlu1 %3462 }
 0x2e1   : > { %v2478_v58 = vpop.f32.mrf.mxu1 }
 0x2e2   : > { %v2407_v59 = vpop.f32.mrf.mxu0  ;;  %v2484_v18 = vadd.f32 %v2478_v58, %v2321_v13  ;;  %v9415_v58 = vmov 2  }
 0x2e3   : > { %v9144_v60 = vpop.f32.mrf.mxu1  ;;  %v2482_v8 = vadd.f32 %v2407_v59, %v2319_v63  ;;  %9372 = vset.pattern.permute.xlu0 %v9415_v58  ;;  %v3305_v59 = vpop.permute.xlu0 %3304  ;;  %v4753_v58 = vld [vmem:[#allocation4] sm:$0xff] }
 0x2e4   : > { %v2409_v61 = vpop.f32.mrf.mxu0 }
 0x2e5   : > { %v2483_v19 = vadd.f32 %v2409_v61, %v2320_v7 }
 0x2e6   : > { %v2556_v1 = vpop.f32.mrf.mxu0  ;;  %v2627_v2 = vpop.f32.mrf.mxu1 }
 0x2e7   : > { %v2631_v22 = vadd.f32 %v2556_v1, %v2482_v8  ;;  %v2633_v24 = vadd.f32 %v2627_v2, %v2484_v18  ;;  %v3623_v60 = vpop.permute.xlu0 %3622 }
 0x2e8   : > { %v2558_v3 = vpop.f32.mrf.mxu0  ;;  %v9149_v4 = vpop.f32.mrf.mxu1 }
 0x2e9   : > { %v2632_v23 = vadd.f32 %v2558_v3, %v2483_v19 }
 0x2ea   : > { %v2716_v9 = vpop.f32.mrf.mxu0  ;;  %v2787_v10 = vpop.f32.mrf.mxu1 }
 0x2eb   : > { %v2791_v17 = vadd.f32 %v2716_v9, %v2631_v22  ;;  %v2793_v20 = vadd.f32 %v2787_v10, %v2633_v24  ;;  %v3786_v61 = vpop.permute.xlu0 %3785  ;;  %v8862_v10 = vld [vmem:[%s10490_s2 + $0x50] sm:$0xff] }
 0x2ec   : > { %v2718_v14 = vpop.f32.mrf.mxu0  ;;  %v9154_v16 = vpop.f32.mrf.mxu1 }
 0x2ed   : > { %v2792_v30 = vadd.f32 %v2718_v14, %v2632_v23  ;;  %v8867_v23 = vld [vmem:[%s10490_s2 + $0x58] sm:$0xff] }
 0x2ee   : > { %v2876_v25 = vpop.f32.mrf.mxu0  ;;  %v2947_v26 = vpop.f32.mrf.mxu1 }
 0x2ef   : > { %v2951_v31 = vadd.f32 %v2876_v25, %v2791_v17  ;;  %v2953_v32 = vadd.f32 %v2947_v26, %v2793_v20  ;;  %v8861_v26 = vld [vmem:[%s10490_s2 + $0x48] sm:$0xff] }
 0x2f0   : > { %v2878_v27 = vpop.f32.mrf.mxu0  ;;  %v9159_v28 = vpop.f32.mrf.mxu1 }
 0x2f1   : > { %v2952_v35 = vadd.f32 %v2878_v27, %v2792_v30 }
 0x2f2   : > { %v3036_v21 = vpop.f32.mrf.mxu0  ;;  %v3107_v29 = vpop.f32.mrf.mxu1 }
 0x2f3   : > { %v3111_v36 = vadd.f32 %v3036_v21, %v2951_v31  ;;  %v3113_v37 = vadd.f32 %v3107_v29, %v2953_v32 }
 0x2f4   : > { %v3038_v33 = vpop.f32.mrf.mxu0  ;;  %v9164_v34 = vpop.f32.mrf.mxu1 }
 0x2f5   : > { %v3112_v42 = vadd.f32 %v3038_v33, %v2952_v35  ;;  %v8870_v33 = vld [vmem:[%s10490_s2 + $0x60] sm:$0xff] }
 0x2f6   : > { %v3196_v40 = vpop.f32.mrf.mxu0  ;;  %v3267_v41 = vpop.f32.mrf.mxu1 }
 0x2f7   : > { %v3271_v44 = vadd.f32 %v3196_v40, %v3111_v36  ;;  %v3273_v45 = vadd.f32 %v3267_v41, %v3113_v37  ;;  %v8873_v36 = vld [vmem:[%s10490_s2 + $0x68] sm:$0xff] }
 0x2f8   : > { %v3198_v46 = vpop.f32.mrf.mxu0  ;;  %v9169_v43 = vpop.f32.mrf.mxu1 }
 0x2f9   : > { %v3272_v47 = vadd.f32 %v3198_v46, %v3112_v42  ;;  %v9882_v48 = vadd.f32 %v3278_v39, %v3271_v44  ;;  %v3282_v49 = vadd.f32 %v3278_v39, %v3273_v45  ;;  %v8876_v44 = vld [vmem:[%s10490_s2 + $0x70] sm:$0xff]  ;;  %v8879_v43 = vld [vmem:[%s10490_s2 + $0x78] sm:$0xff] }
 0x2fb   : > { %v9884_v50 = vadd.f32 %v3278_v39, %v3272_v47  ;;  %v3283_v51 = vmax.f32 %v9882_v48, 0.0  ;;  %v3285_v52 = vmax.f32 %v3282_v49, 0.0 }
 0x2fd   : > { %v3284_v53 = vmax.f32 %v9884_v50, 0.0  ;;  %v3286_v54 = vsel %vm286_vm13, %v3283_v51, 0.0  ;;  %v3288_v55 = vsel %vm288_vm15, %v3285_v52, 0.0  ;;  %v8882_v50 = vld [vmem:[%s10490_s2 + $0x80] sm:$0xff] }
 0x2fe   : > { %3289 = vst [vmem:[#allocation3 + $0x8] sm:$0xff] %v3286_v54  ;;  %3291 = vst.msk [vmem:[#allocation3 + $0x18] sm:$0xff] %vm1829_vm11, %v3288_v55  ;;  %3624 = vrot.lane.b32.xlu0 %v3286_v54, %s9406_s29  ;;  %v8885_v55 = vld [vmem:[%s10490_s2 + $0x88] sm:$0xff] }
 0x2ff   : > { %v3287_v56 = vsel %vm287_vm14, %v3284_v53, 0.0 }
 0x300   : > { %3290 = vst [vmem:[#allocation3 + $0x10] sm:$0xff] %v3287_v56 }
 0x302   : > { %3466 = vrot.lane.b32.xlu0 %v3287_v56, %s9405_s28 }
 0x305   : > { %v9901_v11 = vld [vmem:[#allocation3 + $0x18] sm:$0xff] }
 0x306   : > { %3310 = vrot.lane.b32.xlu1 %v9901_v11, %s9404_s27  ;;  %3628 = vrot.lane.b32.xlu0 %v9901_v11, %s9406_s29 }
 0x30a   : > { %3306 = vrot.lane.b32.xlu1 %v3286_v54, %s9404_s27  ;;  %3791 = vrot.lane.b32.xlu0 %v9901_v11, %s9407_s30 }
 0x30e   : > { %3464 = vrot.lane.b32.xlu1 %v3286_v54, %s9405_s28  ;;  %3789 = vrot.lane.b32.xlu0 %v3287_v56, %s9407_s30 }
 0x312   : > { %3787 = vrot.lane.b32.xlu1 %v3286_v54, %s9407_s30  ;;  %4417 = vrot.lane.b32.xlu0 %v3286_v54, %s9411_s9 }
 0x316   : > { %3308 = vrot.lane.b32.xlu1 %v3287_v56, %s9404_s27  ;;  %4099 = vrot.lane.b32.xlu0 %v3287_v56, %s9409_s7 }
 0x31a   : > { %3468 = vrot.lane.b32.xlu1 %v9901_v11, %s9405_s28  ;;  %4259 = vrot.lane.b32.xlu0 %v3287_v56, %s9410_s8 }
 0x31e   : > { %3626 = vrot.lane.b32.xlu1 %v3287_v56, %s9406_s29  ;;  %4419 = vrot.lane.b32.xlu0 %v3287_v56, %s9411_s9 }
 0x322   : > { %4101 = vrot.lane.b32.xlu1 %v9901_v11, %s9409_s7  ;;  %4581 = vrot.lane.b32.xlu0 %v9901_v11, %s9412_s10 }
 0x326   : > { %4097 = vrot.lane.b32.xlu1 %v3286_v54, %s9409_s7  ;;  %4738 = vperm.xlu0 %9372, %v9932_v57  }
 0x32a   : > { %4261 = vrot.lane.b32.xlu1 %v9901_v11, %s9410_s8  ;;  %4765 = vrot.lane.b32.xlu0 %v4753_v58, %s9404_s27 }
 0x32e   : > { %4257 = vrot.lane.b32.xlu1 %v3286_v54, %s9410_s8  ;;  %5083 = vrot.lane.b32.xlu0 %v4753_v58, %s9406_s29 }
 0x332   : > { %4421 = vrot.lane.b32.xlu1 %v9901_v11, %s9411_s9  ;;  %5246 = vrot.lane.b32.xlu0 %v4753_v58, %s9407_s30 }
 0x336   : > { %4579 = vrot.lane.b32.xlu1 %v3287_v56, %s9412_s10 }
 0x33a   : > { %4577 = vrot.lane.b32.xlu1 %v3286_v54, %s9412_s10 }
 0x33e   : > { %4923 = vrot.lane.b32.xlu1 %v4753_v58, %s9405_s28 }
 0x370   : > { %v3625_v63 = vpop.permute.xlu0 %3624 }
 0x371   : > { %v3630_v21 = vsel %vm640_vm5, %v3623_v60, %v3625_v63 }
 0x374   : > { %v3467_v2 = vpop.permute.xlu0 %3466 }
 0x378   : > { %v3311_v1 = vpop.permute.xlu1 %3310  ;;  %v3629_v4 = vpop.permute.xlu0 %3628 }
 0x37c   : > { %v3307_v3 = vpop.permute.xlu1 %3306  ;;  %v3792_v8 = vpop.permute.xlu0 %3791 }
 0x37d   : > { %v3312_v18 = vsel %vm306_vm1, %v3305_v59, %v3307_v3 }
 0x380   : > { %v3465_v5 = vpop.permute.xlu1 %3464  ;;  %v3790_v16 = vpop.permute.xlu0 %3789 }
 0x381   : > { %v3471_v19 = vsel %vm470_vm3, %v3465_v5, %v3467_v2  ;;  %v3470_v22 = vsel %vm470_vm3, %v3463_v62, %v3465_v5  ;;  %v3795_v29 = vsel %vm813_vm6, %v3790_v16, %v3792_v8 }
 0x384   : > { %v3788_v7 = vpop.permute.xlu1 %3787  ;;  %v9958_v27 = vpop.permute.xlu0 %4417 }
 0x385   : > { %v3794_v31 = vsel %vm813_vm6, %v3788_v7, %v3790_v16  ;;  %v3793_v32 = vsel %vm813_vm6, %v3786_v61, %v3788_v7 }
 0x388   : > { %v3309_v9 = vpop.permute.xlu1 %3308  ;;  %v4100_v34 = vpop.permute.xlu0 %4099 }
 0x389   : > { %v3314_v13 = vsel %vm306_vm1, %v3309_v9, %v3311_v1  ;;  %v3313_v14 = vsel %vm306_vm1, %v3307_v3, %v3309_v9 }
 0x38a   : > { %3351 = vmatprep.subr.mxu0 %v3313_v14  ;;  %9171 = vmatpush3.msra.mxu1 %v3314_v13 }
 0x38b   : > { %3352 = vmatpush1.msra.mxu0 %v3312_v18  ;;  %9173 = vmatmul.mubr.msk.f32.vlgmr.msra.gmra.mxu1 %vm1856_vm12, %v8862_v10 }
 0x38c   : > { %v3469_v25 = vpop.permute.xlu1 %3468  ;;  %8863 = vmatmul.mubr.msk.f32.vlgmr.msra.gmra.mxu0 %vm1856_vm12, %v8862_v10  ;;  %3509 = vmatprep.subr.mxu0 %v3471_v19  ;;  %v4260_v39 = vpop.permute.xlu0 %4259 }
 0x38d   : > { %v3472_v24 = vsel %vm470_vm3, %v3467_v2, %v3469_v25  ;;  %3510 = vmatpush1.msra.mxu0 %v3470_v22  ;;  %9175 = vmatprep.subr.mxu1 %v9403_v0 }
 0x38e   : > { %9176 = vmatpush3.msra.mxu1 %v3472_v24  ;;  %9177 = vmatprep.mubr.msk.f32.mxu1 %vm9408_vm0, %v9403_v0 }
 0x38f   : > { %3543 = vmatprep.mubr.f32.mxu0 %v9403_v0  ;;  %9178 = vmatmul.mubr.msk.f32.vlgmr.msra.gmra.mxu1 %vm1856_vm12, %v8861_v26 }
 0x390   : > { %v3627_v28 = vpop.permute.xlu1 %3626  ;;  %8865 = vmatmul.mubr.msk.f32.vlgmr.msra.gmra.mxu0 %vm1856_vm12, %v8861_v26  ;;  %9180 = vmatprep.subr.mxu1 %v9403_v0  ;;  %v4420_v47 = vpop.permute.xlu0 %4419 }
 0x391   : > { %v3632_v17 = vsel %vm640_vm5, %v3627_v28, %v3629_v4  ;;  %v3631_v20 = vsel %vm640_vm5, %v3625_v63, %v3627_v28  ;;  %9182 = vmatprep.mubr.msk.f32.mxu1 %vm9408_vm0, %v9403_v0  ;;  %3703 = vmatprep.mubr.f32.mxu0 %v9403_v0 }
 0x392   : > { %3669 = vmatprep.subr.mxu0 %v3631_v20  ;;  %9181 = vmatpush3.msra.mxu1 %v3632_v17 }
 0x393   : > { %3670 = vmatpush1.msra.mxu0 %v3630_v21  ;;  %9183 = vmatmul.mubr.msk.f32.vlgmr.msra.gmra.mxu1 %vm1856_vm12, %v8867_v23 }
 0x394   : > { %9185 = vmatprep.subr.mxu1 %v9403_v0  ;;  %v4102_v30 = vpop.permute.xlu1 %4101  ;;  %8868 = vmatmul.mubr.msk.f32.vlgmr.msra.gmra.mxu0 %vm1856_vm12, %v8867_v23  ;;  %v4582_v52 = vpop.permute.xlu0 %4581 }
 0x395   : > { %3832 = vmatprep.subr.mxu0 %v3794_v31  ;;  %9186 = vmatpush3.msra.mxu1 %v3795_v29  ;;  %v4104_v37 = vsel %vm1143_vm7, %v4100_v34, %v4102_v30 }
 0x396   : > { %3833 = vmatpush1.msra.mxu0 %v3793_v32  ;;  %9187 = vmatprep.mubr.msk.f32.mxu1 %vm9408_vm0, %v9403_v0 }
 0x397   : > { %9383 = vmatprep.subr.msk.mxu0 %vm287_vm14, %v3284_v53  ;;  %9190 = vmatprep.subr.mxu1 %v9403_v0 }
 0x398   : > { %3866 = vmatprep.mubr.f32.mxu0 %v9403_v0  ;;  %9188 = vmatmul.mubr.msk.f32.vlgmr.msra.gmra.mxu1 %vm1856_vm12, %v8870_v33  ;;  %v4098_v35 = vpop.permute.xlu1 %4097 }
 0x399   : > { %9191 = vmatpush3.msra.mxu1 %v9901_v11  ;;  %8871 = vmatmul.mubr.msk.f32.vlgmr.msra.gmra.mxu0 %vm1856_vm12, %v8870_v33  ;;  %v4103_v41 = vsel %vm1143_vm7, %v4098_v35, %v4100_v34 }
 0x39a   : > { %9384 = vmatpush1.msk.msra.mxu0 %vm286_vm13, %v3283_v51  ;;  %9192 = vmatprep.mubr.msk.f32.mxu1 %vm9408_vm0, %v9403_v0  ;;  %v4423_v51 = vsel %vm1481_vm9, %v9958_v27, %v4420_v47 }
 0x39b   : > { %4141 = vmatprep.subr.mxu0 %v4104_v37  ;;  %9195 = vmatprep.subr.mxu1 %v9403_v0 }
 0x39c   : > { %4015 = vmatprep.mubr.f32.mxu0 %v9403_v0  ;;  %9193 = vmatmul.mubr.msk.f32.vlgmr.msra.gmra.mxu1 %vm1856_vm12, %v8873_v36  ;;  %v4262_v40 = vpop.permute.xlu1 %4261 }
 0x39d   : > { %9196 = vmatpush3.msra.mxu1 %v4102_v30  ;;  %8874 = vmatmul.mubr.msk.f32.vlgmr.msra.gmra.mxu0 %vm1856_vm12, %v8873_v36  ;;  %v4264_v42 = vsel %vm1312_vm8, %v4260_v39, %v4262_v40 }
 0x39e   : > { %4142 = vmatpush1.msra.mxu0 %v4103_v41  ;;  %9197 = vmatprep.mubr.msk.f32.mxu1 %vm9408_vm0, %v9403_v0 }
 0x39f   : > { %4301 = vmatprep.subr.mxu0 %v4264_v42  ;;  %9200 = vmatprep.subr.mxu1 %v9403_v0 }
 0x3a0   : > { %4175 = vmatprep.mubr.f32.mxu0 %v9403_v0  ;;  %9198 = vmatmul.mubr.msk.f32.vlgmr.msra.gmra.mxu1 %vm1856_vm12, %v8876_v44  ;;  %v4258_v45 = vpop.permute.xlu1 %4257 }
 0x3a1   : > { %9201 = vmatpush3.msra.mxu1 %v4262_v40  ;;  %v4263_v46 = vsel %vm1312_vm8, %v4258_v45, %v4260_v39  ;;  %8877 = vmatmul.mubr.msk.f32.vlgmr.msra.gmra.mxu0 %vm1856_vm12, %v8876_v44 }
 0x3a2   : > { %4302 = vmatpush1.msra.mxu0 %v4263_v46  ;;  %9202 = vmatprep.mubr.msk.f32.mxu1 %vm9408_vm0, %v9403_v0 }
 0x3a3   : > { %4335 = vmatprep.mubr.f32.mxu0 %v9403_v0  ;;  %9205 = vmatprep.subr.mxu1 %v9403_v0 }
 0x3a4   : > { %9203 = vmatmul.mubr.msk.f32.vlgmr.msra.gmra.mxu1 %vm1856_vm12, %v8879_v43  ;;  %v4422_v48 = vpop.permute.xlu1 %4421 }
 0x3a5   : > { %8880 = vmatmul.mubr.msk.f32.vlgmr.msra.gmra.mxu0 %vm1856_vm12, %v8879_v43  ;;  %9206 = vmatpush3.msra.mxu1 %v4422_v48  ;;  %v4424_v49 = vsel %vm1481_vm9, %v4420_v47, %v4422_v48 }
 0x3a6   : > { %4461 = vmatprep.subr.mxu0 %v4424_v49  ;;  %9207 = vmatprep.mubr.msk.f32.mxu1 %vm9408_vm0, %v9403_v0 }
 0x3a7   : > { %9210 = vmatprep.subr.mxu1 %v9403_v0  ;;  %4462 = vmatpush1.msra.mxu0 %v4423_v51  ;;  %v4739_v51 = vpop.permute.xlu0 %4738 }
 0x3a8   : > { %4495 = vmatprep.mubr.f32.mxu0 %v9403_v0  ;;  %9208 = vmatmul.mubr.msk.f32.vlgmr.msra.gmra.mxu1 %vm1856_vm12, %v8882_v50  ;;  %v4580_v53 = vpop.permute.xlu1 %4579 }
 0x3a9   : > { %9211 = vmatpush3.msra.mxu1 %v4582_v52  ;;  %8883 = vmatmul.mubr.msk.f32.vlgmr.msra.gmra.mxu0 %vm1856_vm12, %v8882_v50  ;;  %v4584_v54 = vsel %vm1650_vm10, %v4580_v53, %v4582_v52 }
 0x3aa   : > { %4621 = vmatprep.subr.mxu0 %v4584_v54  ;;  %9212 = vmatprep.mubr.msk.f32.mxu1 %vm9408_vm0, %v9403_v0 }
 0x3ab   : > { %4655 = vmatprep.mubr.f32.mxu0 %v9403_v0  ;;  %9215 = vmatprep.subr.mxu1 %v9403_v0 }
 0x3ac   : > { %9213 = vmatmul.mubr.msk.f32.vlgmr.msra.gmra.mxu1 %vm1856_vm12, %v8885_v55  ;;  %v4578_v56 = vpop.permute.xlu1 %4577 }
 0x3ad   : > { %v4583_v11 = vsel %vm1650_vm10, %v4578_v56, %v4580_v53  ;;  %9217 = vmatprep.mubr.msk.f32.mxu1 %vm9408_vm0, %v9403_v0 }
 0x3ae   : > { %4622 = vmatpush1.msra.mxu0 %v4583_v11 }
 0x3af   : > { %8886 = vmatmul.mubr.msk.f32.vlgmr.msra.gmra.mxu0 %vm1856_vm12, %v8885_v55 }
 0x3b0   : > { %4846 = vmatprep.mubr.f32.mxu0 %v9403_v0 }
 0x44b   : > { %v3458_v59 = vpop.f32.mrf.mxu1 }
 0x44c   : > { %v3387_v60 = vpop.f32.mrf.mxu0 }
 0x44d   : > { %v9174_v61 = vpop.f32.mrf.mxu1 }
 0x44e   : > { %v3389_v62 = vpop.f32.mrf.mxu0 }
 0x44f   : > { %v3616_v63 = vpop.f32.mrf.mxu1 }
 0x450   : > { %v3545_v1 = vpop.f32.mrf.mxu0  ;;  %v3617_v28 = vadd.f32 %v3616_v63, %v3458_v59 }
 0x451   : > { %v9179_v2 = vpop.f32.mrf.mxu1  ;;  %v3546_v8 = vadd.f32 %v3545_v1, %v3387_v60 }
 0x452   : > { %v3547_v3 = vpop.f32.mrf.mxu0 }
 0x453   : > { %v3776_v4 = vpop.f32.mrf.mxu1  ;;  %v3548_v14 = vadd.f32 %v3547_v3, %v3389_v62 }
 0x454   : > { %v3705_v5 = vpop.f32.mrf.mxu0  ;;  %v3782_v20 = vadd.f32 %v3776_v4, %v3617_v28 }
 0x455   : > { %v9184_v7 = vpop.f32.mrf.mxu1  ;;  %v3780_v16 = vadd.f32 %v3705_v5, %v3546_v8 }
 0x456   : > { %v3707_v9 = vpop.f32.mrf.mxu0 }
 0x457   : > { %v3781_v26 = vadd.f32 %v3707_v9, %v3548_v14 }
 0x458   : > { %v3939_v10 = vpop.f32.mrf.mxu1 }
 0x459   : > { %v3868_v13 = vpop.f32.mrf.mxu0  ;;  %v3945_v32 = vadd.f32 %v3939_v10, %v3782_v20  ;;  %v9416_v10 = vmov 3   ;;  %v8889_v20 = vld [vmem:[%s10490_s2 + $0x98] sm:$0xff] }
 0x45a   : > { %v9189_v18 = vpop.f32.mrf.mxu1  ;;  %v3943_v24 = vadd.f32 %v3868_v13, %v3780_v16  ;;  %9373 = vset.pattern.permute.xlu0 %v9416_v10  ;;  %v4766_v13 = vpop.permute.xlu0 %4765  ;;  %v8912_v10 = vld [vmem:[%s10490_s2 + $0xd0] sm:$0xff] }
 0x45b   : > { %v3870_v19 = vpop.f32.mrf.mxu0  ;;  %v4924_v18 = vpop.permute.xlu1 %4923 }
 0x45c   : > { %v4088_v22 = vpop.f32.mrf.mxu1  ;;  %v3944_v29 = vadd.f32 %v3870_v19, %v3781_v26 }
 0x45d   : > { %v4017_v25 = vpop.f32.mrf.mxu0  ;;  %v4094_v35 = vadd.f32 %v4088_v22, %v3945_v32 }
 0x45e   : > { %v9194_v27 = vpop.f32.mrf.mxu1  ;;  %v4092_v30 = vadd.f32 %v4017_v25, %v3943_v24  ;;  %v5084_v14 = vpop.permute.xlu0 %5083 }
 0x45f   : > { %v4019_v23 = vpop.f32.mrf.mxu0 }
 0x460   : > { %v4248_v17 = vpop.f32.mrf.mxu1  ;;  %v4093_v37 = vadd.f32 %v4019_v23, %v3944_v29 }
 0x461   : > { %v4177_v21 = vpop.f32.mrf.mxu0  ;;  %v4254_v41 = vadd.f32 %v4248_v17, %v4094_v35  ;;  %v8888_v35 = vld [vmem:[%s10490_s2 + $0x90] sm:$0xff] }
 0x462   : > { %v9199_v31 = vpop.f32.mrf.mxu1  ;;  %v4252_v39 = vadd.f32 %v4177_v21, %v4092_v30  ;;  %v5247_v16 = vpop.permute.xlu0 %5246 }
 0x463   : > { %v4179_v33 = vpop.f32.mrf.mxu0 }
 0x464   : > { %v4408_v34 = vpop.f32.mrf.mxu1  ;;  %v4253_v43 = vadd.f32 %v4179_v33, %v4093_v37 }
 0x465   : > { %v4337_v36 = vpop.f32.mrf.mxu0  ;;  %v4414_v45 = vadd.f32 %v4408_v34, %v4254_v41 }
 0x466   : > { %v9204_v40 = vpop.f32.mrf.mxu1  ;;  %v4412_v47 = vadd.f32 %v4337_v36, %v4252_v39 }
 0x467   : > { %v4339_v42 = vpop.f32.mrf.mxu0  ;;  %v8894_v40 = vld [vmem:[%s10490_s2 + $0xa0] sm:$0xff] }
 0x468   : > { %v4568_v44 = vpop.f32.mrf.mxu1  ;;  %v4413_v54 = vadd.f32 %v4339_v42, %v4253_v43 }
 0x469   : > { %v4497_v46 = vpop.f32.mrf.mxu0  ;;  %v4574_v49 = vadd.f32 %v4568_v44, %v4414_v45 }
 0x46a   : > { %v9209_v48 = vpop.f32.mrf.mxu1  ;;  %v4572_v55 = vadd.f32 %v4497_v46, %v4412_v47  ;;  %v8897_v46 = vld [vmem:[%s10490_s2 + $0xa8] sm:$0xff] }
 0x46b   : > { %v4499_v52 = vpop.f32.mrf.mxu0 }
 0x46c   : > { %v4728_v50 = vpop.f32.mrf.mxu1  ;;  %v4573_v59 = vadd.f32 %v4499_v52, %v4413_v54 }
 0x46d   : > { %v4734_v53 = vadd.f32 %v4728_v50, %v4574_v49 }
 0x46e   : > { %v9214_v56 = vpop.f32.mrf.mxu1 }
 0x46f   : > { %v4743_v11 = vadd.f32 %v4739_v51, %v4734_v53  ;;  %v4657_v58 = vpop.f32.mrf.mxu0  ;;  %v8903_v56 = vld [vmem:[%s10490_s2 + $0xb8] sm:$0xff] }
 0x470   : > { %v4732_v60 = vadd.f32 %v4657_v58, %v4572_v55 }
 0x471   : > { %v4746_v61 = vmax.f32 %v4743_v11, 0.0  ;;  %v4659_v62 = vpop.f32.mrf.mxu0 }
 0x472   : > { %v4741_v63 = vadd.f32 %v4739_v51, %v4732_v60  ;;  %v4733_v1 = vadd.f32 %v4659_v62, %v4573_v59  ;;  %v8906_v60 = vld [vmem:[%s10490_s2 + $0xc0] sm:$0xff] }
 0x473   : > { %v4749_v2 = vsel %vm288_vm15, %v4746_v61, 0.0 }
 0x474   : > { %4752 = vst.msk [vmem:[#allocation4 + $0x18] sm:$0xff] %vm1829_vm11, %v4749_v2  ;;  %v10059_v3 = vmax.f32 %v4741_v63, 0.0  ;;  %v4742_v4 = vadd.f32 %v4739_v51, %v4733_v1  ;;  %v8900_v51 = vld [vmem:[%s10490_s2 + $0xb0] sm:$0xff]  ;;  %v8909_v1 = vld [vmem:[%s10490_s2 + $0xc8] sm:$0xff] }
 0x476   : > { %v4747_v5 = vsel %vm286_vm13, %v10059_v3, 0.0  ;;  %v10064_v7 = vmax.f32 %v4742_v4, 0.0 }
 0x477   : > { %5085 = vrot.lane.b32.xlu0 %v4747_v5, %s9406_s29 }
 0x478   : > { %v4748_v8 = vsel %vm287_vm14, %v10064_v7, 0.0 }
 0x47b   : > { %v10070_v9 = vld [vmem:[#allocation4 + $0x18] sm:$0xff]  ;;  %5248 = vrot.lane.b32.xlu0 %v4747_v5, %s9407_s30 }
 0x47c   : > { %4771 = vrot.lane.b32.xlu1 %v10070_v9, %s9404_s27 }
 0x47f   : > { %4927 = vrot.lane.b32.xlu0 %v4748_v8, %s9405_s28 }
 0x480   : > { %4929 = vrot.lane.b32.xlu1 %v10070_v9, %s9405_s28 }
 0x483   : > { %5089 = vrot.lane.b32.xlu0 %v10070_v9, %s9406_s29 }
 0x484   : > { %4767 = vrot.lane.b32.xlu1 %v4747_v5, %s9404_s27 }
 0x487   : > { %5562 = vrot.lane.b32.xlu0 %v10070_v9, %s9409_s7 }
 0x488   : > { %4925 = vrot.lane.b32.xlu1 %v4747_v5, %s9405_s28 }
 0x48b   : > { %5252 = vrot.lane.b32.xlu0 %v10070_v9, %s9407_s30 }
 0x48c   : > { %4769 = vrot.lane.b32.xlu1 %v4748_v8, %s9404_s27 }
 0x48f   : > { %5722 = vrot.lane.b32.xlu0 %v10070_v9, %s9410_s8 }
 0x490   : > { %5558 = vrot.lane.b32.xlu1 %v4747_v5, %s9409_s7 }
 0x493   : > { %5878 = vrot.lane.b32.xlu0 %v4747_v5, %s9411_s9 }
 0x494   : > { %5087 = vrot.lane.b32.xlu1 %v4748_v8, %s9406_s29 }
 0x497   : > { %5880 = vrot.lane.b32.xlu0 %v4748_v8, %s9411_s9 }
 0x498   : > { %5250 = vrot.lane.b32.xlu1 %v4748_v8, %s9407_s30 }
 0x49b   : > { %6042 = vrot.lane.b32.xlu0 %v10070_v9, %s9412_s10 }
 0x49c   : > { %5718 = vrot.lane.b32.xlu1 %v4747_v5, %s9410_s8 }
 0x49f   : > { %6199 = vperm.xlu0 %9373, %v9932_v57  }
 0x4a0   : > { %5560 = vrot.lane.b32.xlu1 %v4748_v8, %s9409_s7 }
 0x4a4   : > { %5720 = vrot.lane.b32.xlu1 %v4748_v8, %s9410_s8 }
 0x4a8   : > { %5882 = vrot.lane.b32.xlu1 %v10070_v9, %s9411_s9 }
 0x4ac   : > { %6040 = vrot.lane.b32.xlu1 %v4748_v8, %s9412_s10 }
 0x4b0   : > { %6038 = vrot.lane.b32.xlu1 %v4747_v5, %s9412_s10 }
 0x4e9   : > { %v5086_v19 = vpop.permute.xlu0 %5085 }
 0x4ea   : > { %v5091_v44 = vsel %vm640_vm5, %v5084_v14, %v5086_v19 }
 0x4ed   : > { %v5249_v25 = vpop.permute.xlu0 %5248 }
 0x4ee   : > { %v4772_v22 = vpop.permute.xlu1 %4771  ;;  %v5254_v48 = vsel %vm813_vm6, %v5247_v16, %v5249_v25  ;;  %v10212_v16 = vld [vmem:[#allocation5] sm:$0xff] }
 0x4ef   : > { %6226 = vrot.lane.b32.xlu0 %v10212_v16, %s9404_s27  ;;  %6384 = vrot.lane.b32.xlu1 %v10212_v16, %s9405_s28 }
 0x4f1   : > { %v4928_v24 = vpop.permute.xlu0 %4927 }
 0x4f2   : > { %v4930_v26 = vpop.permute.xlu1 %4929 }
 0x4f3   : > { %v4933_v32 = vsel %vm470_vm3, %v4928_v24, %v4930_v26  ;;  %6544 = vrot.lane.b32.xlu1 %v10212_v16, %s9406_s29 }
 0x4f5   : > { %v5090_v23 = vpop.permute.xlu0 %5089 }
 0x4f6   : > { %v4768_v27 = vpop.permute.xlu1 %4767 }
 0x4f7   : > { %v4773_v30 = vsel %vm306_vm1, %v4766_v13, %v4768_v27 }
 0x4f9   : > { %v5563_v31 = vpop.permute.xlu0 %5562 }
 0x4fa   : > { %v4926_v28 = vpop.permute.xlu1 %4925 }
 0x4fb   : > { %v4932_v34 = vsel %vm470_vm3, %v4926_v28, %v4928_v24  ;;  %v4931_v36 = vsel %vm470_vm3, %v4924_v18, %v4926_v28  ;;  %v9417_v18 = vmov 4  }
 0x4fc   : > { %9374 = vset.pattern.permute.xlu0 %v9417_v18 }
 0x4fd   : > { %v5253_v39 = vpop.permute.xlu0 %5252 }
 0x4fe   : > { %v4770_v17 = vpop.permute.xlu1 %4769 }
 0x4ff   : > { %v4775_v21 = vsel %vm306_vm1, %v4770_v17, %v4772_v22  ;;  %v4774_v29 = vsel %vm306_vm1, %v4768_v27, %v4770_v17 }
 0x500   : > { %4812 = vmatprep.subr.mxu0 %v4774_v29  ;;  %9216 = vmatpush3.msra.mxu1 %v4775_v21 }
 0x501   : > { %4813 = vmatpush1.msra.mxu0 %v4773_v30  ;;  %9218 = vmatmul.mubr.msk.f32.vlgmr.msra.gmra.mxu1 %vm1856_vm12, %v8889_v20  ;;  %v5723_v49 = vpop.permute.xlu0 %5722 }
 0x502   : > { %9220 = vmatprep.subr.mxu1 %v9403_v0  ;;  %v5559_v33 = vpop.permute.xlu1 %5558  ;;  %8890 = vmatmul.mubr.msk.f32.vlgmr.msra.gmra.mxu0 %vm1856_vm12, %v8889_v20 }
 0x503   : > { %4970 = vmatprep.subr.mxu0 %v4932_v34  ;;  %9221 = vmatpush3.msra.mxu1 %v4933_v32 }
 0x504   : > { %4971 = vmatpush1.msra.mxu0 %v4931_v36  ;;  %9222 = vmatprep.mubr.msk.f32.mxu1 %vm9408_vm0, %v9403_v0 }
 0x505   : > { %5004 = vmatprep.mubr.f32.mxu0 %v9403_v0  ;;  %9223 = vmatmul.mubr.msk.f32.vlgmr.msra.gmra.mxu1 %vm1856_vm12, %v8888_v35  ;;  %v5879_v52 = vpop.permute.xlu0 %5878 }
 0x506   : > { %v5088_v37 = vpop.permute.xlu1 %5087  ;;  %8892 = vmatmul.mubr.msk.f32.vlgmr.msra.gmra.mxu0 %vm1856_vm12, %v8888_v35  ;;  %9225 = vmatprep.subr.mxu1 %v9403_v0 }
 0x507   : > { %v5093_v41 = vsel %vm640_vm5, %v5088_v37, %v5090_v23  ;;  %v5092_v42 = vsel %vm640_vm5, %v5086_v19, %v5088_v37  ;;  %9227 = vmatprep.mubr.msk.f32.mxu1 %vm9408_vm0, %v9403_v0  ;;  %5164 = vmatprep.mubr.f32.mxu0 %v9403_v0 }
 0x508   : > { %5130 = vmatprep.subr.mxu0 %v5092_v42  ;;  %9226 = vmatpush3.msra.mxu1 %v5093_v41 }
 0x509   : > { %5131 = vmatpush1.msra.mxu0 %v5091_v44  ;;  %9228 = vmatmul.mubr.msk.f32.vlgmr.msra.gmra.mxu1 %vm1856_vm12, %v8894_v40  ;;  %v5881_v61 = vpop.permute.xlu0 %5880 }
 0x50a   : > { %v5251_v45 = vpop.permute.xlu1 %5250  ;;  %8895 = vmatmul.mubr.msk.f32.vlgmr.msra.gmra.mxu0 %vm1856_vm12, %v8894_v40  ;;  %9230 = vmatprep.subr.mxu1 %v9403_v0  ;;  %v5884_v2 = vsel %vm1481_vm9, %v5879_v52, %v5881_v61 }
 0x50b   : > { %v5256_v43 = vsel %vm813_vm6, %v5251_v45, %v5253_v39  ;;  %v5255_v47 = vsel %vm813_vm6, %v5249_v25, %v5251_v45  ;;  %9232 = vmatprep.mubr.msk.f32.mxu1 %vm9408_vm0, %v9403_v0  ;;  %5327 = vmatprep.mubr.f32.mxu0 %v9403_v0 }
 0x50c   : > { %5293 = vmatprep.subr.mxu0 %v5255_v47  ;;  %9231 = vmatpush3.msra.mxu1 %v5256_v43 }
 0x50d   : > { %5294 = vmatpush1.msra.mxu0 %v5254_v48  ;;  %9233 = vmatmul.mubr.msk.f32.vlgmr.msra.gmra.mxu1 %vm1856_vm12, %v8897_v46  ;;  %v6043_v4 = vpop.permute.xlu0 %6042 }
 0x50e   : > { %9235 = vmatprep.subr.mxu1 %v9403_v0  ;;  %v5719_v50 = vpop.permute.xlu1 %5718  ;;  %8898 = vmatmul.mubr.msk.f32.vlgmr.msra.gmra.mxu0 %vm1856_vm12, %v8897_v46 }
 0x50f   : > { %9385 = vmatprep.subr.msk.mxu0 %vm287_vm14, %v10064_v7  ;;  %9236 = vmatpush3.msra.mxu1 %v10070_v9 }
 0x510   : > { %9386 = vmatpush1.msk.msra.mxu0 %vm286_vm13, %v10059_v3  ;;  %9237 = vmatprep.mubr.msk.f32.mxu1 %vm9408_vm0, %v9403_v0 }
 0x511   : > { %9240 = vmatprep.subr.mxu1 %v9403_v0  ;;  %5476 = vmatprep.mubr.f32.mxu0 %v9403_v0 }
 0x512   : > { %9238 = vmatmul.mubr.msk.f32.vlgmr.msra.gmra.mxu1 %vm1856_vm12, %v8900_v51  ;;  %v5561_v53 = vpop.permute.xlu1 %5560  ;;  %8901 = vmatmul.mubr.msk.f32.vlgmr.msra.gmra.mxu0 %vm1856_vm12, %v8900_v51 }
 0x513   : > { %9241 = vmatpush3.msra.mxu1 %v5563_v31  ;;  %v5564_v54 = vsel %vm1143_vm7, %v5559_v33, %v5561_v53  ;;  %v5565_v55 = vsel %vm1143_vm7, %v5561_v53, %v5563_v31  ;;  %9242 = vmatprep.mubr.msk.f32.mxu1 %vm9408_vm0, %v9403_v0 }
 0x514   : > { %5602 = vmatprep.subr.mxu0 %v5565_v55  ;;  %9245 = vmatprep.subr.mxu1 %v9403_v0 }
 0x515   : > { %5603 = vmatpush1.msra.mxu0 %v5564_v54  ;;  %5636 = vmatprep.mubr.f32.mxu0 %v9403_v0 }
 0x516   : > { %9243 = vmatmul.mubr.msk.f32.vlgmr.msra.gmra.mxu1 %vm1856_vm12, %v8903_v56  ;;  %v5721_v11 = vpop.permute.xlu1 %5720  ;;  %8904 = vmatmul.mubr.msk.f32.vlgmr.msra.gmra.mxu0 %vm1856_vm12, %v8903_v56 }
 0x517   : > { %9246 = vmatpush3.msra.mxu1 %v5723_v49  ;;  %v5724_v58 = vsel %vm1312_vm8, %v5719_v50, %v5721_v11  ;;  %v5725_v59 = vsel %vm1312_vm8, %v5721_v11, %v5723_v49  ;;  %9247 = vmatprep.mubr.msk.f32.mxu1 %vm9408_vm0, %v9403_v0 }
 0x518   : > { %5762 = vmatprep.subr.mxu0 %v5725_v59  ;;  %5796 = vmatprep.mubr.f32.mxu0 %v9403_v0 }
 0x519   : > { %5763 = vmatpush1.msra.mxu0 %v5724_v58  ;;  %9250 = vmatprep.subr.mxu1 %v9403_v0 }
 0x51a   : > { %9248 = vmatmul.mubr.msk.f32.vlgmr.msra.gmra.mxu1 %vm1856_vm12, %v8906_v60  ;;  %v5883_v62 = vpop.permute.xlu1 %5882  ;;  %8907 = vmatmul.mubr.msk.f32.vlgmr.msra.gmra.mxu0 %vm1856_vm12, %v8906_v60 }
 0x51b   : > { %9251 = vmatpush3.msra.mxu1 %v5883_v62  ;;  %v5885_v63 = vsel %vm1481_vm9, %v5881_v61, %v5883_v62  ;;  %9252 = vmatprep.mubr.msk.f32.mxu1 %vm9408_vm0, %v9403_v0 }
 0x51c   : > { %5922 = vmatprep.subr.mxu0 %v5885_v63  ;;  %9255 = vmatprep.subr.mxu1 %v9403_v0 }
 0x51d   : > { %5923 = vmatpush1.msra.mxu0 %v5884_v2  ;;  %5956 = vmatprep.mubr.f32.mxu0 %v9403_v0 }
 0x51e   : > { %9253 = vmatmul.mubr.msk.f32.vlgmr.msra.gmra.mxu1 %vm1856_vm12, %v8909_v1  ;;  %v6041_v5 = vpop.permute.xlu1 %6040  ;;  %8910 = vmatmul.mubr.msk.f32.vlgmr.msra.gmra.mxu0 %vm1856_vm12, %v8909_v1 }
 0x51f   : > { %9256 = vmatpush3.msra.mxu1 %v6043_v4  ;;  %v6045_v8 = vsel %vm1650_vm10, %v6041_v5, %v6043_v4  ;;  %9257 = vmatprep.mubr.msk.f32.mxu1 %vm9408_vm0, %v9403_v0 }
 0x520   : > { %6082 = vmatprep.subr.mxu0 %v6045_v8  ;;  %6116 = vmatprep.mubr.f32.mxu0 %v9403_v0 }
 0x521   : > { %9260 = vmatprep.subr.mxu1 %v9403_v0 }
 0x522   : > { %9258 = vmatmul.mubr.msk.f32.vlgmr.msra.gmra.mxu1 %vm1856_vm12, %v8912_v10  ;;  %v6039_v13 = vpop.permute.xlu1 %6038 }
 0x523   : > { %v6044_v14 = vsel %vm1650_vm10, %v6039_v13, %v6041_v5  ;;  %9262 = vmatprep.mubr.msk.f32.mxu1 %vm9408_vm0, %v9403_v0 }
 0x524   : > { %6083 = vmatpush1.msra.mxu0 %v6044_v14 }
 0x525   : > { %8913 = vmatmul.mubr.msk.f32.vlgmr.msra.gmra.mxu0 %vm1856_vm12, %v8912_v10  ;;  %v6200_v10 = vpop.permute.xlu0 %6199 }
 0x526   : > { %6307 = vmatprep.mubr.f32.mxu0 %v9403_v0 }
 0x5c1   : > { %v4919_v19 = vpop.f32.mrf.mxu1 }
 0x5c2   : > { %v4848_v22 = vpop.f32.mrf.mxu0 }
 0x5c3   : > { %v9219_v25 = vpop.f32.mrf.mxu1 }
 0x5c4   : > { %v4850_v26 = vpop.f32.mrf.mxu0 }
 0x5c5   : > { %v5077_v24 = vpop.f32.mrf.mxu1 }
 0x5c6   : > { %v5006_v27 = vpop.f32.mrf.mxu0  ;;  %v5078_v39 = vadd.f32 %v5077_v24, %v4919_v19 }
 0x5c7   : > { %v9224_v28 = vpop.f32.mrf.mxu1  ;;  %v5007_v40 = vadd.f32 %v5006_v27, %v4848_v22 }
 0x5c8   : > { %v5008_v23 = vpop.f32.mrf.mxu0 }
 0x5c9   : > { %v5237_v17 = vpop.f32.mrf.mxu1  ;;  %v5009_v47 = vadd.f32 %v5008_v23, %v4850_v26 }
 0x5ca   : > { %v5166_v20 = vpop.f32.mrf.mxu0  ;;  %v5243_v44 = vadd.f32 %v5237_v17, %v5078_v39 }
 0x5cb   : > { %v9229_v21 = vpop.f32.mrf.mxu1  ;;  %v5241_v48 = vadd.f32 %v5166_v20, %v5007_v40 }
 0x5cc   : > { %v5168_v29 = vpop.f32.mrf.mxu0 }
 0x5cd   : > { %v5400_v30 = vpop.f32.mrf.mxu1  ;;  %v5242_v52 = vadd.f32 %v5168_v29, %v5009_v47 }
 0x5ce   : > { %v5329_v31 = vpop.f32.mrf.mxu0  ;;  %v5406_v43 = vadd.f32 %v5400_v30, %v5243_v44 }
 0x5cf   : > { %v9234_v32 = vpop.f32.mrf.mxu1  ;;  %v5404_v53 = vadd.f32 %v5329_v31, %v5241_v48 }
 0x5d0   : > { %v5331_v33 = vpop.f32.mrf.mxu0 }
 0x5d1   : > { %v5405_v11 = vadd.f32 %v5331_v33, %v5242_v52 }
 0x5d2   : > { %v5549_v34 = vpop.f32.mrf.mxu1  ;;  %v5478_v35 = vpop.f32.mrf.mxu0 }
 0x5d3   : > { %v5555_v51 = vadd.f32 %v5549_v34, %v5406_v43  ;;  %v5553_v58 = vadd.f32 %v5478_v35, %v5404_v53  ;;  %v10277_v35 = vld [vmem:[%s10492_s4] sm:$0xff] }
 0x5d4   : > { %v9239_v36 = vpop.f32.mrf.mxu1  ;;  %v5480_v37 = vpop.f32.mrf.mxu0 }
 0x5d5   : > { %v5554_v62 = vadd.f32 %v5480_v37, %v5405_v11  ;;  %v6227_v37 = vpop.permute.xlu0 %6226 }
 0x5d6   : > { %v5709_v41 = vpop.f32.mrf.mxu1  ;;  %v5638_v42 = vpop.f32.mrf.mxu0 }
 0x5d7   : > { %v5715_v56 = vadd.f32 %v5709_v41, %v5555_v51  ;;  %v5713_v63 = vadd.f32 %v5638_v42, %v5553_v58 }
 0x5d8   : > { %v9244_v45 = vpop.f32.mrf.mxu1  ;;  %v5640_v46 = vpop.f32.mrf.mxu0 }
 0x5d9   : > { %v5714_v4 = vadd.f32 %v5640_v46, %v5554_v62  ;;  %v8916_v45 = vld [vmem:[%s10490_s2 + $0xe0] sm:$0xff] }
 0x5da   : > { %v5869_v49 = vpop.f32.mrf.mxu1  ;;  %v5798_v50 = vpop.f32.mrf.mxu0 }
 0x5db   : > { %v5875_v60 = vadd.f32 %v5869_v49, %v5715_v56  ;;  %v5873_v5 = vadd.f32 %v5798_v50, %v5713_v63 }
 0x5dc   : > { %v9249_v54 = vpop.f32.mrf.mxu1  ;;  %v5800_v55 = vpop.f32.mrf.mxu0 }
 0x5dd   : > { %v5874_v18 = vadd.f32 %v5800_v55, %v5714_v4  ;;  %v8915_v55 = vld [vmem:[%s10490_s2 + $0xd8] sm:$0xff] }
 0x5de   : > { %v6029_v59 = vpop.f32.mrf.mxu1  ;;  %v5958_v61 = vpop.f32.mrf.mxu0 }
 0x5df   : > { %v6035_v2 = vadd.f32 %v6029_v59, %v5875_v60  ;;  %v6033_v19 = vadd.f32 %v5958_v61, %v5873_v5  ;;  %v8921_v61 = vld [vmem:[%s10490_s2 + $0xe8] sm:$0xff]  ;;  %v8924_v5 = vld [vmem:[%s10490_s2 + $0xf0] sm:$0xff] }
 0x5e0   : > { %v9254_v1 = vpop.f32.mrf.mxu1  ;;  %v5960_v13 = vpop.f32.mrf.mxu0 }
 0x5e1   : > { %v6034_v24 = vadd.f32 %v5960_v13, %v5874_v18 }
 0x5e2   : > { %v6189_v8 = vpop.f32.mrf.mxu1 }
 0x5e3   : > { %v6195_v14 = vadd.f32 %v6189_v8, %v6035_v2 }
 0x5e4   : > { %v9259_v22 = vpop.f32.mrf.mxu1 }
 0x5e5   : > { %v6204_v25 = vadd.f32 %v6200_v10, %v6195_v14  ;;  %v6118_v26 = vpop.f32.mrf.mxu0  ;;  %v8927_v14 = vld [vmem:[%s10490_s2 + $0xf8] sm:$0xff] }
 0x5e6   : > { %v6193_v27 = vadd.f32 %v6118_v26, %v6033_v19  ;;  %v8930_v26 = vld [vmem:[%s10490_s2 + $0x100] sm:$0xff] }
 0x5e7   : > { %v6207_v28 = vmax.f32 %v6204_v25, 0.0  ;;  %v6120_v23 = vpop.f32.mrf.mxu0 }
 0x5e8   : > { %v6202_v17 = vadd.f32 %v6200_v10, %v6193_v27  ;;  %v6194_v20 = vadd.f32 %v6120_v23, %v6034_v24  ;;  %v8933_v23 = vld [vmem:[%s10490_s2 + $0x108] sm:$0xff] }
 0x5e9   : > { %v6210_v21 = vsel %vm288_vm15, %v6207_v28, 0.0 }
 0x5ea   : > { %6213 = vst.msk [vmem:[#allocation5 + $0x18] sm:$0xff] %vm1829_vm11, %v6210_v21  ;;  %v10223_v29 = vmax.f32 %v6202_v17, 0.0  ;;  %v6203_v30 = vadd.f32 %v6200_v10, %v6194_v20 }
 0x5ec   : > { %v6208_v31 = vsel %vm286_vm13, %v10223_v29, 0.0  ;;  %v10228_v32 = vmax.f32 %v6203_v30, 0.0 }
 0x5ed   : > { %6228 = vrot.lane.b32.xlu1 %v6208_v31, %s9404_s27 }
 0x5ee   : > { %v6209_v33 = vsel %vm287_vm14, %v10228_v32, 0.0 }
 0x5f1   : > { %v10234_v34 = vld [vmem:[#allocation5 + $0x18] sm:$0xff]  ;;  %6386 = vrot.lane.b32.xlu1 %v6208_v31, %s9405_s28 }
 0x5f2   : > { %6232 = vrot.lane.b32.xlu0 %v10234_v34, %s9404_s27 }
 0x5f5   : > { %6546 = vrot.lane.b32.xlu1 %v6208_v31, %s9406_s29 }
 0x5f6   : > { %6390 = vrot.lane.b32.xlu0 %v10234_v34, %s9405_s28 }
 0x5f9   : > { %6230 = vrot.lane.b32.xlu1 %v6209_v33, %s9404_s27 }
 0x5fa   : > { %6550 = vrot.lane.b32.xlu0 %v10234_v34, %s9406_s29 }
 0x5fd   : > { %6709 = vrot.lane.b32.xlu1 %v6208_v31, %s9407_s30 }
 0x5fe   : > { %7019 = vrot.lane.b32.xlu0 %v6208_v31, %s9409_s7 }
 0x601   : > { %6707 = vrot.lane.b32.xlu1 %v10212_v16, %s9407_s30  ;;  %v10272_v16 = vld [vmem:[%s10492_s4 + $0x8] sm:$0xff] }
 0x602   : > { %6388 = vrot.lane.b32.xlu0 %v6209_v33, %s9405_s28 }
 0x605   : > { %6713 = vrot.lane.b32.xlu1 %v10234_v34, %s9407_s30 }
 0x606   : > { %6548 = vrot.lane.b32.xlu0 %v6209_v33, %s9406_s29 }
 0x609   : > { %7023 = vrot.lane.b32.xlu1 %v10234_v34, %s9409_s7 }
 0x60a   : > { %6711 = vrot.lane.b32.xlu0 %v6209_v33, %s9407_s30 }
 0x60d   : > { %7179 = vrot.lane.b32.xlu1 %v6208_v31, %s9410_s8 }
 0x60e   : > { %7183 = vrot.lane.b32.xlu0 %v10234_v34, %s9410_s8 }
 0x611   : > { %7181 = vrot.lane.b32.xlu1 %v6209_v33, %s9410_s8  ;;  %s9419_s8 = smov 116  }
 0x612   : > { %7021 = vrot.lane.b32.xlu0 %v6209_v33, %s9409_s7  ;;  %s9418_s7 = smov 124  }
 0x615   : > { %7343 = vrot.lane.b32.xlu1 %v10234_v34, %s9411_s9 }
 0x616   : > { %7339 = vrot.lane.b32.xlu0 %v6208_v31, %s9411_s9 }
 0x619   : > { %7501 = vrot.lane.b32.xlu1 %v6209_v33, %s9412_s10 }
 0x61a   : > { %7341 = vrot.lane.b32.xlu0 %v6209_v33, %s9411_s9  ;;  %s9420_s9 = smov 108   ;;  %v8936_v33 = vld [vmem:[%s10490_s2 + $0x110] sm:$0xff] }
 0x61d   : > { %7499 = vrot.lane.b32.xlu1 %v6208_v31, %s9412_s10 }
 0x61e   : > { %7503 = vrot.lane.b32.xlu0 %v10234_v34, %s9412_s10  ;;  %s9421_s10 = smov 100  }
 0x621   : > { %7686 = vrot.lane.b32.xlu1 %v10272_v16, %s9418_s7 }
 0x622   : > { %7684 = vrot.lane.b32.xlu0 %v10277_v35, %s9418_s7 }
 0x625   : > { %8016 = vrot.lane.b32.xlu1 %v10277_v35, %s9419_s8 }
 0x626   : > { %7660 = vperm.xlu0 %9374, %v9932_v57   ;;  %v6385_v57 = vpop.permute.xlu1 %6384 }
 0x629   : > { %8018 = vrot.lane.b32.xlu1 %v10272_v16, %s9419_s8 }
 0x62a   : > { %8185 = vrot.lane.b32.xlu0 %v10277_v35, %s9420_s9  ;;  %v6545_v36 = vpop.permute.xlu1 %6544 }
 0x62b   : > { %9375 = vset.pattern.permute.xlu0 %v9413_v12 }
 0x62d   : > { %8187 = vrot.lane.b32.xlu1 %v10272_v16, %s9420_s9 }
 0x62e   : > { %8354 = vrot.lane.b32.xlu0 %v10277_v35, %s9421_s10 }
 0x631   : > { %8356 = vrot.lane.b32.xlu1 %v10272_v16, %s9421_s10 }
 0x632   : > { %8523 = vrot.lane.b32.xlu0 %v10277_v35, %s9422_s24 }
 0x635   : > { %8525 = vrot.lane.b32.xlu1 %v10272_v16, %s9422_s24 }
 0x65f   : > { %v6229_v39 = vpop.permute.xlu1 %6228 }
 0x660   : > { %v6234_v48 = vsel %vm306_vm1, %v6227_v37, %v6229_v39 }
 0x663   : > { %v6387_v40 = vpop.permute.xlu1 %6386 }
 0x664   : > { %v6233_v41 = vpop.permute.xlu0 %6232  ;;  %v6392_v56 = vsel %vm470_vm3, %v6385_v57, %v6387_v40 }
 0x667   : > { %v6547_v42 = vpop.permute.xlu1 %6546 }
 0x668   : > { %v6391_v12 = vpop.permute.xlu0 %6390  ;;  %v6552_v62 = vsel %vm640_vm5, %v6545_v36, %v6547_v42 }
 0x66b   : > { %v6231_v44 = vpop.permute.xlu1 %6230 }
 0x66c   : > { %v6551_v46 = vpop.permute.xlu0 %6550  ;;  %v6236_v43 = vsel %vm306_vm1, %v6231_v44, %v6233_v41  ;;  %v6235_v47 = vsel %vm306_vm1, %v6229_v39, %v6231_v44  ;;  %v7675_v39 = vld [vmem:[%s9472_s26 + $0x4] sm:$0xff] }
 0x66d   : > { %6273 = vmatprep.subr.mxu0 %v6235_v47  ;;  %9261 = vmatpush3.msra.mxu1 %v6236_v43  ;;  %v7679_v43 = vld [vmem:[#allocation2 + $0x8] sm:$0xff] }
 0x66e   : > { %6274 = vmatpush1.msra.mxu0 %v6234_v48  ;;  %9263 = vmatmul.mubr.msk.f32.vlgmr.msra.gmra.mxu1 %vm1856_vm12, %v8916_v45  ;;  %v7676_v47 = vld [vmem:[%s9472_s26 + $0xc] sm:$0xf]  ;;  %v8011_v48 = vld [vmem:[#allocation3 + $0x18] sm:$0xff] }
 0x66f   : > { %9265 = vmatprep.subr.mxu1 %v9403_v0  ;;  %v6710_v49 = vpop.permute.xlu1 %6709  ;;  %8917 = vmatmul.mubr.msk.f32.vlgmr.msra.gmra.mxu0 %vm1856_vm12, %v8916_v45  ;;  %v7680_v45 = vld [vmem:[#allocation2 + $0x10] sm:$0xff] }
 0x670   : > { %v7020_v50 = vpop.permute.xlu0 %7019  ;;  %9267 = vmatprep.mubr.msk.f32.mxu1 %vm9408_vm0, %v9403_v0  ;;  %6465 = vmatprep.mubr.f32.mxu0 %v9403_v0 }
 0x673   : > { %v6708_v51 = vpop.permute.xlu1 %6707 }
 0x674   : > { %v6389_v52 = vpop.permute.xlu0 %6388  ;;  %v6715_v8 = vsel %vm813_vm6, %v6708_v51, %v6710_v49 }
 0x675   : > { %v6394_v53 = vsel %vm470_vm3, %v6389_v52, %v6391_v12  ;;  %v6393_v54 = vsel %vm470_vm3, %v6387_v40, %v6389_v52  ;;  %v7681_v40 = vld [vmem:[#allocation2 + $0x18] sm:$0xff]  ;;  %v7846_v12 = vcombine.high %v7675_v39, %v7675_v39 }
 0x676   : > { %6431 = vmatprep.subr.mxu0 %v6393_v54  ;;  %9266 = vmatpush3.msra.mxu1 %v6394_v53  ;;  %v8009_v53 = vld [vmem:[#allocation3 + $0x8] sm:$0xff] }
 0x677   : > { %6432 = vmatpush1.msra.mxu0 %v6392_v56  ;;  %9270 = vmatprep.subr.mxu1 %v9403_v0  ;;  %v6714_v11 = vpop.permute.xlu1 %6713 }
 0x678   : > { %v6549_v58 = vpop.permute.xlu0 %6548  ;;  %9268 = vmatmul.mubr.msk.f32.vlgmr.msra.gmra.mxu1 %vm1856_vm12, %v8915_v55  ;;  %8919 = vmatmul.mubr.msk.f32.vlgmr.msra.gmra.mxu0 %vm1856_vm12, %v8915_v55 }
 0x679   : > { %v6554_v59 = vsel %vm640_vm5, %v6549_v58, %v6551_v46  ;;  %v6553_v60 = vsel %vm640_vm5, %v6547_v42, %v6549_v58  ;;  %9272 = vmatprep.mubr.msk.f32.mxu1 %vm9408_vm0, %v9403_v0  ;;  %6625 = vmatprep.mubr.f32.mxu0 %v9403_v0  ;;  %v8939_v42 = vld [vmem:[%s10490_s2 + $0x118] sm:$0xff] }
 0x67a   : > { %6591 = vmatprep.subr.mxu0 %v6553_v60  ;;  %9271 = vmatpush3.msra.mxu1 %v6554_v59 }
 0x67b   : > { %6592 = vmatpush1.msra.mxu0 %v6552_v62  ;;  %9275 = vmatprep.subr.mxu1 %v9403_v0  ;;  %v7024_v63 = vpop.permute.xlu1 %7023 }
 0x67c   : > { %v6712_v1 = vpop.permute.xlu0 %6711  ;;  %9273 = vmatmul.mubr.msk.f32.vlgmr.msra.gmra.mxu1 %vm1856_vm12, %v8921_v61  ;;  %8922 = vmatmul.mubr.msk.f32.vlgmr.msra.gmra.mxu0 %vm1856_vm12, %v8921_v61 }
 0x67d   : > { %v6716_v2 = vsel %vm813_vm6, %v6710_v49, %v6712_v1  ;;  %v6717_v4 = vsel %vm813_vm6, %v6712_v1, %v6714_v11  ;;  %9277 = vmatprep.mubr.msk.f32.mxu1 %vm9408_vm0, %v9403_v0  ;;  %6788 = vmatprep.mubr.f32.mxu0 %v9403_v0  ;;  %v8010_v49 = vld [vmem:[#allocation3 + $0x10] sm:$0xff] }
 0x67e   : > { %6754 = vmatprep.subr.mxu0 %v6716_v2  ;;  %9276 = vmatpush3.msra.mxu1 %v6717_v4 }
 0x67f   : > { %6755 = vmatpush1.msra.mxu0 %v6715_v8  ;;  %9280 = vmatprep.subr.mxu1 %v9403_v0  ;;  %v7180_v10 = vpop.permute.xlu1 %7179 }
 0x680   : > { %v7184_v13 = vpop.permute.xlu0 %7183  ;;  %9387 = vmatprep.subr.msk.mxu0 %vm287_vm14, %v10228_v32  ;;  %9278 = vmatmul.mubr.msk.f32.vlgmr.msra.gmra.mxu1 %vm1856_vm12, %v8924_v5 }
 0x681   : > { %8925 = vmatmul.mubr.msk.f32.vlgmr.msra.gmra.mxu0 %vm1856_vm12, %v8924_v5  ;;  %9281 = vmatpush3.msra.mxu1 %v10234_v34 }
 0x682   : > { %9388 = vmatpush1.msk.msra.mxu0 %vm286_vm13, %v10223_v29  ;;  %9282 = vmatprep.mubr.msk.f32.mxu1 %vm9408_vm0, %v9403_v0 }
 0x683   : > { %9285 = vmatprep.subr.mxu1 %v9403_v0  ;;  %6937 = vmatprep.mubr.f32.mxu0 %v9403_v0  ;;  %v7182_v18 = vpop.permute.xlu1 %7181 }
 0x684   : > { %v7022_v19 = vpop.permute.xlu0 %7021  ;;  %9283 = vmatmul.mubr.msk.f32.vlgmr.msra.gmra.mxu1 %vm1856_vm12, %v8927_v14  ;;  %v7186_v28 = vsel %vm1312_vm8, %v7182_v18, %v7184_v13  ;;  %v7185_v17 = vsel %vm1312_vm8, %v7180_v10, %v7182_v18 }
 0x685   : > { %v7025_v22 = vsel %vm1143_vm7, %v7020_v50, %v7022_v19  ;;  %v7026_v25 = vsel %vm1143_vm7, %v7022_v19, %v7024_v63  ;;  %9286 = vmatpush3.msra.mxu1 %v7024_v63  ;;  %8928 = vmatmul.mubr.msk.f32.vlgmr.msra.gmra.mxu0 %vm1856_vm12, %v8927_v14 }
 0x686   : > { %7063 = vmatprep.subr.mxu0 %v7026_v25  ;;  %9287 = vmatprep.mubr.msk.f32.mxu1 %vm9408_vm0, %v9403_v0 }
 0x687   : > { %7064 = vmatpush1.msra.mxu0 %v7025_v22  ;;  %9290 = vmatprep.subr.mxu1 %v9403_v0  ;;  %v7344_v24 = vpop.permute.xlu1 %7343 }
 0x688   : > { %v7340_v27 = vpop.permute.xlu0 %7339  ;;  %7097 = vmatprep.mubr.f32.mxu0 %v9403_v0  ;;  %9288 = vmatmul.mubr.msk.f32.vlgmr.msra.gmra.mxu1 %vm1856_vm12, %v8930_v26 }
 0x689   : > { %9291 = vmatpush3.msra.mxu1 %v7184_v13  ;;  %8931 = vmatmul.mubr.msk.f32.vlgmr.msra.gmra.mxu0 %vm1856_vm12, %v8930_v26 }
 0x68a   : > { %7223 = vmatprep.subr.mxu0 %v7186_v28  ;;  %9292 = vmatprep.mubr.msk.f32.mxu1 %vm9408_vm0, %v9403_v0 }
 0x68b   : > { %7224 = vmatpush1.msra.mxu0 %v7185_v17  ;;  %7257 = vmatprep.mubr.f32.mxu0 %v9403_v0  ;;  %v7502_v20 = vpop.permute.xlu1 %7501 }
 0x68c   : > { %v7342_v21 = vpop.permute.xlu0 %7341  ;;  %9293 = vmatmul.mubr.msk.f32.vlgmr.msra.gmra.mxu1 %vm1856_vm12, %v8933_v23  ;;  %9295 = vmatprep.subr.mxu1 %v9403_v0 }
 0x68d   : > { %v7345_v30 = vsel %vm1481_vm9, %v7340_v27, %v7342_v21  ;;  %8934 = vmatmul.mubr.msk.f32.vlgmr.msra.gmra.mxu0 %vm1856_vm12, %v8933_v23  ;;  %9296 = vmatpush3.msra.mxu1 %v7344_v24  ;;  %v7346_v31 = vsel %vm1481_vm9, %v7342_v21, %v7344_v24 }
 0x68e   : > { %7383 = vmatprep.subr.mxu0 %v7346_v31  ;;  %9297 = vmatprep.mubr.msk.f32.mxu1 %vm9408_vm0, %v9403_v0 }
 0x68f   : > { %9300 = vmatprep.subr.mxu1 %v9403_v0  ;;  %7384 = vmatpush1.msra.mxu0 %v7345_v30  ;;  %v7500_v57 = vpop.permute.xlu1 %7499 }
 0x690   : > { %v7504_v36 = vpop.permute.xlu0 %7503  ;;  %7417 = vmatprep.mubr.f32.mxu0 %v9403_v0  ;;  %9298 = vmatmul.mubr.msk.f32.vlgmr.msra.gmra.mxu1 %vm1856_vm12, %v8936_v33  ;;  %v7505_v37 = vsel %vm1650_vm10, %v7500_v57, %v7502_v20 }
 0x691   : > { %9301 = vmatpush3.msra.mxu1 %v7504_v36  ;;  %8937 = vmatmul.mubr.msk.f32.vlgmr.msra.gmra.mxu0 %vm1856_vm12, %v8936_v33  ;;  %v7506_v41 = vsel %vm1650_vm10, %v7502_v20, %v7504_v36 }
 0x692   : > { %9305 = vmatprep.subr.mxu1 %v7681_v40  ;;  %7543 = vmatprep.subr.mxu0 %v7506_v41 }
 0x693   : > { %9302 = vmatprep.mubr.msk.f32.mxu1 %vm9408_vm0, %v9403_v0  ;;  %7544 = vmatpush1.msra.mxu0 %v7505_v37  ;;  %v7687_v46 = vpop.permute.xlu1 %7686 }
 0x694   : > { %9303 = vmatmul.mubr.msk.f32.vlgmr.msra.gmra.mxu1 %vm1856_vm12, %v8939_v42  ;;  %7577 = vmatprep.mubr.f32.mxu0 %v9403_v0  ;;  %v7685_v44 = vpop.permute.xlu0 %7684 }
 0x695   : > { %9306 = vmatpush3.msra.mxu1 %v7681_v40  ;;  %8940 = vmatmul.mubr.msk.f32.vlgmr.msra.gmra.mxu0 %vm1856_vm12, %v8939_v42 }
 0x696   : > { %7722 = vmatprep.subr.mxu0 %v7680_v45  ;;  %9307 = vmatprep.mubr.msk.f32.mxu1 %vm1856_vm12, %v7685_v44 }
 0x697   : > { %7723 = vmatpush1.msra.mxu0 %v7679_v43  ;;  %8946 = vmatprep.subr.msk.mxu1 %vm314_vm2, %v7846_v12  ;;  %v8017_v50 = vpop.permute.xlu1 %8016 }
 0x698   : > { %9308 = vmatmul.mubr.msk.f32.vlgmr.msra.gmra.mxu1 %vm1856_vm12, %v7687_v46  ;;  %7756 = vmatprep.mubr.f32.mxu0 %v9403_v0 }
 0x699   : > { %8947 = vmatpush1.msk.msra.mxu1 %vm314_vm2, %v7675_v39  ;;  %9310 = vmatprep.subr.msk.mxu0 %vm314_vm2, %v7676_v47 }
 0x69a   : > { %9315 = vmatprep.subr.mxu1 %v8011_v48  ;;  %8942 = vmatmul.mubr.msk.f32.vlgmr.msra.gmra.mxu0 %vm1856_vm12, %v7685_v44 }
 0x69b   : > { %9311 = vmatpush3.msk.msra.mxu0 %vm314_vm2, %v7676_v47  ;;  %7921 = vmatprep.mubr.f32.mxu1 %v9403_v0  ;;  %v8019_v51 = vpop.permute.xlu1 %8018 }
 0x69c   : > { %8054 = vmatprep.subr.mxu0 %v8010_v49  ;;  %8948 = vmatmul.mubr.msk.f32.vlgmr.msra.gmra.mxu1 %vm310_vm4, %v10277_v35 }
 0x69d   : > { %9316 = vmatpush3.msra.mxu1 %v8011_v48  ;;  %7762 = vmatprep.mubr.f32.mxu0 %v9403_v0 }
 0x69e   : > { %9389 = vmatprep.subr.msk.mxu1 %vm287_vm14, %v10064_v7  ;;  %8943 = vmatmul.mubr.msk.f32.gmra.mxu0 %vm1856_vm12, %v7687_v46 }
 0x69f   : > { %7927 = vmatprep.mubr.f32.mxu1 %v9403_v0  ;;  %9312 = vmatprep.mubr.msk.f32.mxu0 %vm310_vm4, %v10277_v35 }
 0x6a0   : > { %8949 = vmatmul.mubr.msk.f32.gmra.mxu1 %vm310_vm4, %v10272_v16 }
 0x6a1   : > { %9317 = vmatprep.mubr.msk.f32.mxu1 %vm1856_vm12, %v8017_v50  ;;  %v10419_v52 = vpop.permute.xlu0 %7660 }
 0x6a2   : > { %9313 = vmatmul.mubr.msk.f32.vlgmr.msra.gmra.mxu0 %vm310_vm4, %v10272_v16  ;;  %v8689_v16 = vld [vmem:[%s10493_s5] sm:$0xff] }
 0x6a3   : > { %8055 = vmatpush1.msra.mxu0 %v8009_v53  ;;  %8088 = vmatprep.mubr.f32.mxu0 %v9403_v0 }
 0x6a4   : > { %9320 = vmatprep.subr.mxu0 %v10070_v9  ;;  %9318 = vmatmul.mubr.msk.f32.vlgmr.msra.gmra.mxu1 %vm1856_vm12, %v8019_v51 }
 0x6a5   : > { %9390 = vmatpush1.msk.msra.mxu1 %vm286_vm13, %v10059_v3  ;;  %8257 = vmatprep.mubr.f32.mxu1 %v9403_v0  ;;  %v8186_v7 = vpop.permute.xlu0 %8185  ;;  %v8188_v3 = vpop.permute.xlu1 %8187 }
 0x6a6   : > { %9325 = vmatprep.subr.mxu1 %v10234_v34  ;;  %8953 = vmatmul.mubr.msk.f32.vlgmr.msra.gmra.mxu0 %vm1856_vm12, %v8017_v50 }
 0x6a7   : > { %9321 = vmatpush3.msra.mxu0 %v10070_v9  ;;  %8094 = vmatprep.mubr.f32.mxu0 %v9403_v0 }
 0x6a8   : > { %9391 = vmatprep.subr.msk.mxu0 %vm287_vm14, %v10228_v32  ;;  %8957 = vmatmul.mubr.msk.f32.vlgmr.msra.gmra.mxu1 %vm1856_vm12, %v8186_v7 }
 0x6a9   : > { %9326 = vmatpush3.msra.mxu1 %v10234_v34  ;;  %8263 = vmatprep.mubr.f32.mxu1 %v9403_v0  ;;  %v8355_v9 = vpop.permute.xlu0 %8354  ;;  %v8357_v32 = vpop.permute.xlu1 %8356 }
 0x6aa   : > { %8954 = vmatmul.mubr.msk.f32.gmra.mxu0 %vm1856_vm12, %v8019_v51  ;;  %8693 = vperm.xlu0 %9375, %v8689_v16  }
 0x6ab   : > { %9322 = vmatprep.mubr.msk.f32.mxu0 %vm1856_vm12, %v8186_v7 }
 0x6ac   : > { %8958 = vmatmul.mubr.msk.f32.gmra.mxu1 %vm1856_vm12, %v8188_v3 }
 0x6ad   : > { %9327 = vmatprep.mubr.msk.f32.mxu1 %vm1856_vm12, %v8355_v9  ;;  %v10454_v34 = vpop.permute.xlu0 %8523 }
 0x6ae   : > { %9323 = vmatmul.mubr.msk.f32.vlgmr.msra.gmra.mxu0 %vm1856_vm12, %v8188_v3 }
 0x6af   : > { %9392 = vmatpush1.msk.msra.mxu0 %vm286_vm13, %v10223_v29  ;;  %8426 = vmatprep.mubr.f32.mxu0 %v9403_v0  ;;  %v8690_v29 = vld [vmem:[%s10493_s5 + $0x8] sm:$0xff] }
 0x6b0   : > { %9328 = vmatmul.mubr.msk.f32.vlgmr.msra.gmra.mxu1 %vm1856_vm12, %v8357_v32  ;;  %8698 = vperm.xlu1 %9376, %v8690_v29  }
 0x6b1   : > { %8595 = vmatprep.mubr.f32.mxu1 %v9403_v0 }
 0x6b2   : > { %8961 = vmatmul.mubr.msk.f32.vlgmr.msra.gmra.mxu0 %vm1856_vm12, %v8355_v9 }
 0x6b3   : > { %8432 = vmatprep.mubr.f32.mxu0 %v9403_v0 }
 0x6b6   : > { %8962 = vmatmul.mubr.msk.f32.gmra.mxu0 %vm1856_vm12, %v8357_v32 }
 0x6b7   : > { %9332 = vmatprep.mubr.msk.f32.mxu0 %vm1856_vm12, %v10454_v34 }
 0x72e   : > { %v6380_v35 = vpop.f32.mrf.mxu1 }
 0x72f   : > { %v6309_v54 = vpop.f32.mrf.mxu0 }
 0x730   : > { %v9264_v55 = vpop.f32.mrf.mxu1 }
 0x731   : > { %v6311_v56 = vpop.f32.mrf.mxu0 }
 0x738   : > { %v6538_v11 = vpop.f32.mrf.mxu1  ;;  %v6467_v58 = vpop.f32.mrf.mxu0 }
 0x739   : > { %v6539_v18 = vadd.f32 %v6538_v11, %v6380_v35  ;;  %v6468_v22 = vadd.f32 %v6467_v58, %v6309_v54 }
 0x73a   : > { %v9269_v59 = vpop.f32.mrf.mxu1  ;;  %v6469_v60 = vpop.f32.mrf.mxu0 }
 0x73b   : > { %v6470_v27 = vadd.f32 %v6469_v60, %v6311_v56 }
 0x73c   : > { %v6698_v61 = vpop.f32.mrf.mxu1  ;;  %v6627_v62 = vpop.f32.mrf.mxu0 }
 0x73d   : > { %v6704_v26 = vadd.f32 %v6698_v61, %v6539_v18  ;;  %v6702_v28 = vadd.f32 %v6627_v62, %v6468_v22  ;;  %v8526_v62 = vpop.permute.xlu1 %8525 }
 0x73e   : > { %v9274_v63 = vpop.f32.mrf.mxu1  ;;  %v6629_v1 = vpop.f32.mrf.mxu0 }
 0x73f   : > { %v6703_v21 = vadd.f32 %v6629_v1, %v6470_v27 }
 0x740   : > { %v6861_v2 = vpop.f32.mrf.mxu1 }
 0x741   : > { %v6790_v4 = vpop.f32.mrf.mxu0  ;;  %v6867_v17 = vadd.f32 %v6861_v2, %v6704_v26 }
 0x742   : > { %v9279_v5 = vpop.f32.mrf.mxu1  ;;  %v6865_v30 = vadd.f32 %v6790_v4, %v6702_v28 }
 0x743   : > { %v6792_v8 = vpop.f32.mrf.mxu0 }
 0x744   : > { %v7010_v10 = vpop.f32.mrf.mxu1  ;;  %v6866_v36 = vadd.f32 %v6792_v8, %v6703_v21 }
 0x745   : > { %v6939_v13 = vpop.f32.mrf.mxu0  ;;  %v7016_v33 = vadd.f32 %v7010_v10, %v6867_v17 }
 0x746   : > { %v9284_v14 = vpop.f32.mrf.mxu1  ;;  %v7014_v37 = vadd.f32 %v6939_v13, %v6865_v30 }
 0x747   : > { %v6941_v19 = vpop.f32.mrf.mxu0 }
 0x748   : > { %v7170_v25 = vpop.f32.mrf.mxu1  ;;  %v7015_v42 = vadd.f32 %v6941_v19, %v6866_v36 }
 0x749   : > { %v7099_v24 = vpop.f32.mrf.mxu0  ;;  %v7176_v40 = vadd.f32 %v7170_v25, %v7016_v33 }
 0x74a   : > { %v9289_v23 = vpop.f32.mrf.mxu1  ;;  %v7174_v12 = vadd.f32 %v7099_v24, %v7014_v37 }
 0x74b   : > { %v7101_v20 = vpop.f32.mrf.mxu0 }
 0x74c   : > { %v7330_v31 = vpop.f32.mrf.mxu1  ;;  %v7175_v43 = vadd.f32 %v7101_v20, %v7015_v42 }
 0x74d   : > { %v7259_v57 = vpop.f32.mrf.mxu0  ;;  %v7336_v45 = vadd.f32 %v7330_v31, %v7176_v40 }
 0x74e   : > { %v9294_v39 = vpop.f32.mrf.mxu1  ;;  %v7334_v47 = vadd.f32 %v7259_v57, %v7174_v12 }
 0x74f   : > { %v7261_v41 = vpop.f32.mrf.mxu0 }
 0x750   : > { %v7490_v44 = vpop.f32.mrf.mxu1  ;;  %v7335_v51 = vadd.f32 %v7261_v41, %v7175_v43 }
 0x751   : > { %v7419_v46 = vpop.f32.mrf.mxu0  ;;  %v7496_v49 = vadd.f32 %v7490_v44, %v7336_v45 }
 0x752   : > { %v9299_v48 = vpop.f32.mrf.mxu1  ;;  %v7494_v53 = vadd.f32 %v7419_v46, %v7334_v47 }
 0x753   : > { %v7421_v50 = vpop.f32.mrf.mxu0 }
 0x754   : > { %v7650_v7 = vpop.f32.mrf.mxu1  ;;  %v7495_v32 = vadd.f32 %v7421_v50, %v7335_v51 }
 0x755   : > { %v7656_v3 = vadd.f32 %v7650_v7, %v7496_v49  ;;  %v7579_v9 = vpop.f32.mrf.mxu0 }
 0x756   : > { %v7654_v29 = vadd.f32 %v7579_v9, %v7494_v53  ;;  %v9304_v16 = vpop.f32.mrf.mxu1  ;;  %v8694_v53 = vpop.permute.xlu0 %8693 }
 0x757   : > { %v7665_v35 = vadd.f32 %v10419_v52, %v7656_v3  ;;  %v7581_v54 = vpop.f32.mrf.mxu0 }
 0x758   : > { %v7663_v55 = vadd.f32 %v10419_v52, %v7654_v29  ;;  %v7655_v56 = vadd.f32 %v7581_v54, %v7495_v32  ;;  %v9309_v15 = vpop.f32.mrf.mxu1 }
 0x759   : > { %v7668_v11 = vmax.f32 %v7665_v35, 0.0 }
 0x75a   : > { %v7666_v58 = vmax.f32 %v7663_v55, 0.0  ;;  %v7664_v59 = vadd.f32 %v10419_v52, %v7655_v56  ;;  %v7758_v38 = vpop.f32.mrf.mxu0  ;;  %v7835_v2 = vpop.f32.mrf.mxu1 }
 0x75b   : > { %v7671_v60 = vsel %vm288_vm15, %v7668_v11, 0.0 }
 0x75c   : > { %7674 = vst.msk [vmem:[#allocation6 + $0x18] sm:$0xff] %vm1829_vm11, %v7671_v60  ;;  %v7667_v61 = vmax.f32 %v7664_v59, 0.0  ;;  %v7760_v52 = vpop.f32.mrf.mxu0  ;;  %v7923_v4 = vpop.f32.mrf.mxu1 }
 0x75d   : > { %v7924_v17 = vadd.f32 %v7923_v4, %v7758_v38 }
 0x75e   : > { %9393 = vmatprep.subr.msk.mxu1 %vm287_vm14, %v7667_v61  ;;  %v7764_v1 = vpop.f32.mrf.mxu0  ;;  %v7925_v8 = vpop.f32.mrf.mxu1 }
 0x75f   : > { %9394 = vmatpush1.msk.msra.mxu1 %vm286_vm13, %v7666_v58  ;;  %v7926_v20 = vadd.f32 %v7925_v8, %v7760_v52  ;;  %v8699_v58 = vpop.permute.xlu1 %8698 }
 0x760   : > { %8965 = vmatmul.mubr.msk.f32.vlgmr.msra.gmra.mxu1 %vm1856_vm12, %v10454_v34  ;;  %v7766_v6 = vpop.f32.mrf.mxu0  ;;  %v7929_v10 = vpop.f32.mrf.mxu1 }
 0x761   : > { %8601 = vmatprep.mubr.f32.mxu1 %v9403_v0  ;;  %v7930_v31 = vadd.f32 %v7929_v10, %v7764_v1 }
 0x762   : > { %v9314_v5 = vpop.f32.mrf.mxu0  ;;  %v7931_v0 = vpop.f32.mrf.mxu1 }
 0x763   : > { %v8522_v63 = vld [vmem:[#allocation6 + $0x18] sm:$0xff]  ;;  %v8006_v57 = vadd.f32 %v9314_v5, %v9309_v15  ;;  %v7932_v36 = vadd.f32 %v7931_v0, %v7766_v6 }
 0x764   : > { %9330 = vmatprep.subr.mxu0 %v8522_v63  ;;  %8966 = vmatmul.mubr.msk.f32.gmra.mxu1 %vm1856_vm12, %v8526_v62  ;;  %v8000_v34 = vpop.f32.mrf.mxu0  ;;  %v9319_v18 = vpop.f32.mrf.mxu1 }
 0x765   : > { %9331 = vmatpush3.msra.mxu0 %v8522_v63  ;;  %v8001_v39 = vadd.f32 %v8000_v34, %v7835_v2  ;;  %v8181_v44 = vadd.f32 %v9319_v18, %v8006_v57 }
 0x766   : > { %9333 = vmatmul.mubr.msk.f32.vlgmr.msra.gmra.mxu0 %vm1856_vm12, %v8526_v62  ;;  %v8090_v13 = vpop.f32.mrf.mxu0  ;;  %v8167_v22 = vpop.f32.mrf.mxu1 }
 0x767   : > { %v8176_v33 = vadd.f32 %v8090_v13, %v7924_v17  ;;  %v8178_v43 = vadd.f32 %v8167_v22, %v8001_v39 }
 0x768   : > { %v8092_v14 = vpop.f32.mrf.mxu0  ;;  %v8259_v26 = vpop.f32.mrf.mxu1 }
 0x769   : > { %v8177_v37 = vadd.f32 %v8092_v14, %v7926_v20  ;;  %v8345_v12 = vadd.f32 %v8259_v26, %v8176_v33 }
 0x76a   : > { %v8096_v19 = vpop.f32.mrf.mxu0  ;;  %v8261_v27 = vpop.f32.mrf.mxu1 }
 0x76b   : > { %v8179_v42 = vadd.f32 %v8096_v19, %v7930_v31  ;;  %v8346_v46 = vadd.f32 %v8261_v27, %v8177_v37 }
 0x76c   : > { %v8098_v25 = vpop.f32.mrf.mxu0  ;;  %v8265_v23 = vpop.f32.mrf.mxu1 }
 0x76d   : > { %v8180_v45 = vadd.f32 %v8098_v25, %v7932_v36  ;;  %v8348_v49 = vadd.f32 %v8265_v23, %v8179_v42 }
 0x76e   : > { %v9324_v24 = vpop.f32.mrf.mxu0  ;;  %v8267_v30 = vpop.f32.mrf.mxu1 }
 0x76f   : > { %v8350_v51 = vadd.f32 %v9324_v24, %v8181_v44  ;;  %v8349_v3 = vadd.f32 %v8267_v30, %v8180_v45 }
 0x770   : > { %v8336_v28 = vpop.f32.mrf.mxu0  ;;  %v9329_v41 = vpop.f32.mrf.mxu1 }
 0x771   : > { %v8347_v29 = vadd.f32 %v8336_v28, %v8178_v43  ;;  %v8519_v11 = vadd.f32 %v9329_v41, %v8350_v51 }
 0x772   : > { %v8428_v21 = vpop.f32.mrf.mxu0  ;;  %v8505_v48 = vpop.f32.mrf.mxu1 }
 0x773   : > { %v8514_v50 = vadd.f32 %v8428_v21, %v8345_v12  ;;  %v8516_v52 = vadd.f32 %v8505_v48, %v8347_v29 }
 0x774   : > { %v8430_v40 = vpop.f32.mrf.mxu0 }
 0x775   : > { %v8515_v9 = vadd.f32 %v8430_v40, %v8346_v46 }
 0x776   : > { %v8434_v47 = vpop.f32.mrf.mxu0 }
 0x777   : > { %v8517_v54 = vadd.f32 %v8434_v47, %v8348_v49 }
 0x778   : > { %v8436_v16 = vpop.f32.mrf.mxu0 }
 0x779   : > { %v8518_v60 = vadd.f32 %v8436_v16, %v8349_v3 }
 0x820   : > { %v8597_v7 = vpop.f32.mrf.mxu1 }
 0x821   : > { %v8683_v32 = vadd.f32 %v8597_v7, %v8514_v50 }
 0x822   : > { %v8599_v35 = vpop.f32.mrf.mxu1 }
 0x823   : > { %v8701_v55 = vadd.f32 %v8694_v53, %v8683_v32  ;;  %v8684_v56 = vadd.f32 %v8599_v35, %v8515_v9 }
 0x824   : > { %v8603_v59 = vpop.f32.mrf.mxu1 }
 0x825   : > { %v8707_v62 = vmax.f32 %v8701_v55, 0.0  ;;  %v8702_v63 = vadd.f32 %v8694_v53, %v8684_v56  ;;  %v8686_v38 = vadd.f32 %v8603_v59, %v8517_v54 }
 0x826   : > { %v9334_v61 = vpop.f32.mrf.mxu0  ;;  %v8605_v1 = vpop.f32.mrf.mxu1 }
 0x827   : > { %v8688_v15 = vadd.f32 %v9334_v61, %v8519_v11  ;;  %8713 = vst [vmem:[%s251_s13] sm:$0xff] %v8707_v62  ;;  %v8708_v6 = vmax.f32 %v8702_v63, 0.0  ;;  %v8704_v4 = vadd.f32 %v8699_v58, %v8686_v38  ;;  %v8687_v5 = vadd.f32 %v8605_v1, %v8518_v60 }
 0x828   : > { %v8674_v2 = vpop.f32.mrf.mxu0 }
 0x829   : > { %v8706_v8 = vadd.f32 %v8699_v58, %v8688_v15  ;;  %v8685_v34 = vadd.f32 %v8674_v2, %v8516_v52  ;;  %8714 = vst [vmem:[%s251_s13 + $0x8] sm:$0xff] %v8708_v6  ;;  %v8710_v10 = vmax.f32 %v8704_v4, 0.0  ;;  %v8705_v13 = vadd.f32 %v8699_v58, %v8687_v5 }
 0x82b   : > { %v8712_v0 = vmax.f32 %v8706_v8, 0.0  ;;  %v8703_v14 = vadd.f32 %v8694_v53, %v8685_v34  ;;  %8716 = vst [vmem:[%s251_s13 + $0x18] sm:$0xff] %v8710_v10  ;;  %v8711_v18 = vmax.f32 %v8705_v13, 0.0 }
 0x82d   : > { %8718 = vst.msk [vmem:[%s251_s13 + $0x28] sm:$0xff] %vm1829_vm11, %v8712_v0  ;;  %v8709_v19 = vmax.f32 %v8703_v14, 0.0  ;;  %8717 = vst [vmem:[%s251_s13 + $0x20] sm:$0xff] %v8711_v18 }
 0x82f   : > { %8715 = vst.msk [vmem:[%s251_s13 + $0x10] sm:$0xff] %vm1829_vm11, %v8709_v19 }
 0x830 PF: > { %s16_s21 = sadd.s32 1, %s9401_s21  }
 0x831   : > { %p13_p4 = scmp.ge.s32.totalorder %s16_s21, 4  }
 0x833   :  { %15 = sbr.rel (!%p13_p4) target bundleno = 1 (0x1), region = 117 }

</bundles_post_ra>
